<compile_context>
chip_gen: v7x
topology: tpu7x:2x2x1
jax: 0.10.0
libtpu: 0.0.40
codegen_flags: <defaults>
</compile_context>

<pallas_src>
import functools

import jax
import jax.numpy as jnp
from jax.experimental import pallas as pl
from jax.experimental.pallas import tpu as pltpu


# ----------------------------------------------------------------------------
# Fused forward-pass kernel
# ----------------------------------------------------------------------------

def _stgcn_kernel(
    x_ref, adjb_ref,
    # ST block 1
    b1t1w_ref, b1t1b_ref, b1gw_ref, b1gb_ref, b1t2w_ref, b1t2b_ref,
    b1lng_ref, b1lnb_ref,
    # ST block 2
    b2t1w_ref, b2t1b_ref, b2gw_ref, b2gb_ref, b2t2w_ref, b2t2b_ref,
    b2lng_ref, b2lnb_ref,
    # output head
    tow_ref, tob_ref, ng_ref, nb_ref,
    fc1w_ref, fc1b_ref, fc2w_ref, fc2b_ref,
    o_ref,
    *, n_nodes, t_steps, hid,
):
    nt = n_nodes * t_steps
    # Rows are time-major: row = t * n_nodes + node.  A temporal shift of +-1
    # step is therefore a +-n_nodes row shift; the sequence boundaries get a
    # reused zero block (torch Conv1d padding=1 semantics).
    zpad = jnp.zeros((n_nodes, hid), jnp.float32)

    def tconv_glu(h, w_ref, b_ref):
        """conv1(h) * sigmoid(conv2(h)); K=3, 'same' zero padding over time.

        One fused K=3*hid matmul: w_ref rows = [tap t-1 | tap t | tap t+1]
        (hid rows each), w_ref cols = [conv1 | conv2] (hid cols each)."""
        h_m1 = jnp.concatenate([zpad, h[: nt - n_nodes, :]], axis=0)   # h[t-1]
        h_p1 = jnp.concatenate([h[n_nodes:, :], zpad], axis=0)         # h[t+1]
        h3 = jnp.concatenate([h_m1, h, h_p1], axis=-1)                 # (nt, 3*hid)
        ab = (
            jnp.dot(h3, w_ref[...], preferred_element_type=jnp.float32)
            + b_ref[...]
        )
        return ab[:, :hid] * jax.nn.sigmoid(ab[:, hid:])

    def gconv(h, w_ref, b_ref):
        # adj @ (h @ W) per time step: batched matmul over the time axis on
        # the time-major slab (no kron, no (NT)^2 adjacency).
        support = jnp.dot(h, w_ref[...], preferred_element_type=jnp.float32)
        s3 = support.reshape(t_steps, n_nodes, hid)
        mixed = jnp.einsum("tnm,tmc->tnc", adjb_ref[...], s3,
                           preferred_element_type=jnp.float32)
        return mixed.reshape(nt, hid) + b_ref[...]

    def lnorm(h, g_ref, b_ref):
        mu = jnp.mean(h, axis=-1, keepdims=True)
        xc = h - mu
        var = jnp.mean(xc * xc, axis=-1, keepdims=True)
        return xc * jax.lax.rsqrt(var + 1e-5) * g_ref[...] + b_ref[...]

    # ST block 1
    h = tconv_glu(x_ref[...], b1t1w_ref, b1t1b_ref)
    h = gconv(h, b1gw_ref, b1gb_ref)
    h = tconv_glu(h, b1t2w_ref, b1t2b_ref)
    h = lnorm(h, b1lng_ref, b1lnb_ref)
    # ST block 2
    h = tconv_glu(h, b2t1w_ref, b2t1b_ref)
    h = gconv(h, b2gw_ref, b2gb_ref)
    h = tconv_glu(h, b2t2w_ref, b2t2b_ref)
    h = lnorm(h, b2lng_ref, b2lnb_ref)
    # Output head: temporal GLU -> layernorm -> fc1 -> relu -> fc2.
    h = tconv_glu(h, tow_ref, tob_ref)
    h = lnorm(h, ng_ref, nb_ref)
    h = jnp.dot(h, fc1w_ref[...], preferred_element_type=jnp.float32) + fc1b_ref[...]
    h = jnp.maximum(h, 0.0)
    # fc2 (hid -> 1) as VPU multiply + lane reduction (no width-1 matmul).
    o_ref[...] = jnp.sum(h * fc2w_ref[...], axis=-1, keepdims=True) + fc2b_ref[...]


# ----------------------------------------------------------------------------
# One-time host-side weight re-layout (hoisted out of the per-step forward)
# ----------------------------------------------------------------------------

_VMEM = pl.BlockSpec(memory_space=pltpu.MemorySpace.VMEM)


def _glu_weight(p, cin_pad):
    """Fuse the two torch Conv1d weights (Cout, Cin, K=3) of a GLU layer into
    one (3*cin_pad, 2*Cout) matrix: rows grouped by tap [t-1, t, t+1],
    columns [conv1 | conv2].  Bias -> (1, 2*Cout)."""
    w1, w2 = p["w1"], p["w2"]
    cin = w1.shape[1]
    if cin < cin_pad:                       # pad Cin so every layer is uniform
        padw = ((0, 0), (0, cin_pad - cin), (0, 0))
        w1 = jnp.pad(w1, padw)
        w2 = jnp.pad(w2, padw)

    def to2d(w):
        cout, ci, k = w.shape
        return jnp.transpose(w, (2, 1, 0)).reshape(k * ci, cout)

    w = jnp.concatenate([to2d(w1), to2d(w2)], axis=1)
    b = jnp.concatenate([p["b1"], p["b2"]]).reshape(1, -1)
    return w, b


def prepare_stgcn(adj, params, t_steps):
    """Run ONCE: repack weights into the kernel layout and broadcast the
    adjacency over time.  Keeps all constant prep out of the per-step jit."""
    hid = params["fc1_w"].shape[0]
    b1, b2 = params["block1"], params["block2"]
    b1t1w, b1t1b = _glu_weight(b1["t1"], hid)
    b1t2w, b1t2b = _glu_weight(b1["t2"], hid)
    b2t1w, b2t1b = _glu_weight(b2["t1"], hid)
    b2t2w, b2t2b = _glu_weight(b2["t2"], hid)
    tow, tob = _glu_weight(params["temporal_output"], hid)

    packed = dict(
        adj_b=jnp.broadcast_to(adj, (t_steps,) + adj.shape),
        b1t1w=b1t1w, b1t1b=b1t1b,
        b1gw=b1["gw"], b1gb=b1["gb"].reshape(1, -1),
        b1t2w=b1t2w, b1t2b=b1t2b,
        b1lng=b1["ln_g"].reshape(1, -1), b1lnb=b1["ln_b"].reshape(1, -1),
        b2t1w=b2t1w, b2t1b=b2t1b,
        b2gw=b2["gw"], b2gb=b2["gb"].reshape(1, -1),
        b2t2w=b2t2w, b2t2b=b2t2b,
        b2lng=b2["ln_g"].reshape(1, -1), b2lnb=b2["ln_b"].reshape(1, -1),
        tow=tow, tob=tob,
        ng=params["norm_g"].reshape(1, -1), nb=params["norm_b"].reshape(1, -1),
        fc1w=params["fc1_w"], fc1b=params["fc1_b"].reshape(1, -1),
        fc2w=params["fc2_w"].reshape(1, -1), fc2b=params["fc2_b"].reshape(1, 1),
    )
    return jax.tree_util.tree_map(jnp.asarray, packed)


# ----------------------------------------------------------------------------
# Per-step fused forward
# ----------------------------------------------------------------------------

@jax.jit
def stgcn_forward(x, packed):
    n, t, cin = x.shape
    nt = n * t
    hid = packed["fc1w"].shape[0]

    # Time-major (row = t*N + n), channels-last slab; pad channels to hid so
    # every temporal GLU layer has an identical fused weight shape.
    x_slab = jnp.transpose(x, (1, 0, 2)).reshape(nt, cin)
    if cin < hid:
        x_slab = jnp.pad(x_slab, ((0, 0), (0, hid - cin)))

    args = (
        x_slab, packed["adj_b"],
        packed["b1t1w"], packed["b1t1b"], packed["b1gw"], packed["b1gb"],
        packed["b1t2w"], packed["b1t2b"], packed["b1lng"], packed["b1lnb"],
        packed["b2t1w"], packed["b2t1b"], packed["b2gw"], packed["b2gb"],
        packed["b2t2w"], packed["b2t2b"], packed["b2lng"], packed["b2lnb"],
        packed["tow"], packed["tob"], packed["ng"], packed["nb"],
        packed["fc1w"], packed["fc1b"], packed["fc2w"], packed["fc2b"],
    )

    flops = (
        5 * 2 * nt * (3 * hid) * (2 * hid)                   # fused GLU dots
        + 2 * (2 * nt * hid * hid + 2 * t * n * n * hid)     # graph convs
        + 2 * nt * hid * hid + 2 * nt * hid                  # fc head
    )
    transcendentals = 5 * nt * hid                           # sigmoids
    bytes_accessed = sum(int(a.size) * a.dtype.itemsize for a in args) + nt * 4

    out = pl.pallas_call(
        functools.partial(_stgcn_kernel, n_nodes=n, t_steps=t, hid=hid),
        out_shape=jax.ShapeDtypeStruct((nt, 1), jnp.float32),
        in_specs=[_VMEM] * len(args),
        out_specs=_VMEM,
        compiler_params=pltpu.CompilerParams(
            vmem_limit_bytes=max(4 * bytes_accessed, 16 * 1024 * 1024)),
        cost_estimate=pl.CostEstimate(
            flops=flops, transcendentals=transcendentals,
            bytes_accessed=bytes_accessed),
    )(*args)

    # rows are t*N + n  ->  (N, T, 1)
    return jnp.transpose(out.reshape(t, n, 1), (1, 0, 2))


# ----------------------------------------------------------------------------
# Pure-JAX reference (mirrors the PyTorch module op-for-op) for validation
# ----------------------------------------------------------------------------

def _conv1d_same(x_ntc, w, b):
    """torch Conv1d(kernel=3, padding=1) in channels-last layout."""
    n, t, cin = x_ntc.shape
    cout, _, k = w.shape
    p = (k - 1) // 2
    xp = jnp.pad(x_ntc, ((0, 0), (p, p), (0, 0)))
    cols = jnp.concatenate([xp[:, i:i + t, :] for i in range(k)], axis=-1)
    w2d = jnp.transpose(w, (2, 1, 0)).reshape(k * cin, cout)
    return jnp.einsum("ntk,ko->nto", cols, w2d,
                      precision=jax.lax.Precision.HIGHEST) + b


@jax.jit
def stgcn_reference(x, adj, params):
    hp = jax.lax.Precision.HIGHEST

    def temporal(h, p):
        return _conv1d_same(h, p["w1"], p["b1"]) * jax.nn.sigmoid(
            _conv1d_same(h, p["w2"], p["b2"]))

    def graph(h, w, b):
        support = jnp.einsum("ntc,cd->ntd", h, w, precision=hp)
        return jnp.einsum("nm,mtd->ntd", adj, support, precision=hp) + b

    def lnorm(h, g, b):
        mu = jnp.mean(h, -1, keepdims=True)
        var = jnp.mean((h - mu) ** 2, -1, keepdims=True)
        return (h - mu) * jax.lax.rsqrt(var + 1e-5) * g + b

    def block(h, p):
        h = temporal(h, p["t1"])
        h = graph(h, p["gw"], p["gb"])
        h = temporal(h, p["t2"])
        return lnorm(h, p["ln_g"], p["ln_b"])

    h = block(x, params["block1"])
    h = block(h, params["block2"])
    h = temporal(h, params["temporal_output"])
    h = lnorm(h, params["norm_g"], params["norm_b"])
    h = jnp.maximum(
        jnp.einsum("ntc,cd->ntd", h, params["fc1_w"], precision=hp)
        + params["fc1_b"], 0.0)
    return (jnp.einsum("ntc,cd->ntd", h, params["fc2_w"], precision=hp)
            + params["fc2_b"])


# ----------------------------------------------------------------------------
# Deterministic synthetic parameter initialization (torch-like shapes)
# ----------------------------------------------------------------------------

def init_params(key, input_dim, hidden):
    keys = iter(jax.random.split(key, 64))

    def u(shape, scale=0.1):
        return jax.random.uniform(next(keys), shape, jnp.float32, -scale, scale)

    def xavier(cin, cout):
        s = (6.0 / (cin + cout)) ** 0.5
        return jax.random.uniform(next(keys), (cin, cout), jnp.float32, -s, s)

    def temporal(cin, cout, k=3):
        return dict(w1=u((cout, cin, k)), b1=u((cout,)),
                    w2=u((cout, cin, k)), b2=u((cout,)))

    def block(cin, hid, cout):
        return dict(
            t1=temporal(cin, hid),
            gw=xavier(hid, hid), gb=jnp.zeros((hid,), jnp.float32),
            t2=temporal(hid, cout),
            ln_g=jnp.ones((cout,), jnp.float32), ln_b=jnp.zeros((cout,), jnp.float32),
        )

    return dict(
        block1=block(input_dim, hidden, hidden),
        block2=block(hidden, hidden, hidden),
        temporal_output=temporal(hidden, hidden),
        norm_g=jnp.ones((hidden,), jnp.float32), norm_b=jnp.zeros((hidden,), jnp.float32),
        fc1_w=u((hidden, hidden)), fc1_b=u((hidden,)),
        fc2_w=u((hidden, 1)), fc2_b=u((1,)),
    )


# ----------------------------------------------------------------------------
# Main
# ----------------------------------------------------------------------------

if __name__ == "__main__":
    N_NODES, T_STEPS, INPUT_DIM, HIDDEN = 16, 8, 4, 32

    key = jax.random.PRNGKey(0)
    kx, ka, kp = jax.random.split(key, 3)

    # x: (nodes, time_steps, input_dim) -- the layout the PyTorch module expects
    x = jax.random.normal(kx, (N_NODES, T_STEPS, INPUT_DIM), jnp.float32)
    adj = jax.random.uniform(ka, (N_NODES, N_NODES), jnp.float32)
    adj = adj / jnp.sum(adj, axis=1, keepdims=True)       # row-normalized adjacency

    params = init_params(kp, INPUT_DIM, HIDDEN)

    packed = prepare_stgcn(adj, params, T_STEPS)          # one-time weight repack

    out = stgcn_forward(x, packed)
    jax.block_until_ready(out)

    assert out.shape == (N_NODES, T_STEPS, 1), out.shape
    assert bool(jnp.all(jnp.isfinite(out)))

    ref = stgcn_reference(x, adj, params)
    max_diff = float(jnp.max(jnp.abs(out - ref)))
    assert max_diff < 2e-2, f"mismatch vs pure-JAX reference: {max_diff}"

    print("KERNEL_OK")
</pallas_src>

<mosaic_0001>
module attributes {stable_mosaic.version = 11 : i64} {
  func.func @_stgcn_kernel(%arg0: memref<128x32xf32, #tpu.memory_space<vmem>>, %arg1: memref<8x16x16xf32, #tpu.memory_space<vmem>>, %arg2: memref<96x64xf32, #tpu.memory_space<vmem>>, %arg3: memref<1x64xf32, #tpu.memory_space<vmem>>, %arg4: memref<32x32xf32, #tpu.memory_space<vmem>>, %arg5: memref<1x32xf32, #tpu.memory_space<vmem>>, %arg6: memref<96x64xf32, #tpu.memory_space<vmem>>, %arg7: memref<1x64xf32, #tpu.memory_space<vmem>>, %arg8: memref<1x32xf32, #tpu.memory_space<vmem>>, %arg9: memref<1x32xf32, #tpu.memory_space<vmem>>, %arg10: memref<96x64xf32, #tpu.memory_space<vmem>>, %arg11: memref<1x64xf32, #tpu.memory_space<vmem>>, %arg12: memref<32x32xf32, #tpu.memory_space<vmem>>, %arg13: memref<1x32xf32, #tpu.memory_space<vmem>>, %arg14: memref<96x64xf32, #tpu.memory_space<vmem>>, %arg15: memref<1x64xf32, #tpu.memory_space<vmem>>, %arg16: memref<1x32xf32, #tpu.memory_space<vmem>>, %arg17: memref<1x32xf32, #tpu.memory_space<vmem>>, %arg18: memref<96x64xf32, #tpu.memory_space<vmem>>, %arg19: memref<1x64xf32, #tpu.memory_space<vmem>>, %arg20: memref<1x32xf32, #tpu.memory_space<vmem>>, %arg21: memref<1x32xf32, #tpu.memory_space<vmem>>, %arg22: memref<32x32xf32, #tpu.memory_space<vmem>>, %arg23: memref<1x32xf32, #tpu.memory_space<vmem>>, %arg24: memref<1x32xf32, #tpu.memory_space<vmem>>, %arg25: memref<1x1xf32, #tpu.memory_space<vmem>>, %arg26: memref<128x1xf32, #tpu.memory_space<vmem>>) attributes {dimension_semantics = [], scalar_prefetch = 0 : i64, scratch_operands = 0 : i64, tpu.core_type = #tpu.core_type<tc>} {
    %cst = arith.constant 0.000000e+00 : f32
    %0 = vector.broadcast %cst : f32 to vector<16x32xf32>
    %c0 = arith.constant 0 : index
    %c0_0 = arith.constant 0 : index
    %1 = vector.load %arg0[%c0, %c0_0] : memref<128x32xf32, #tpu.memory_space<vmem>>, vector<128x32xf32>
    %2 = vector.extract_strided_slice %1 {offsets = [0, 0], sizes = [112, 32], strides = [1, 1]} : vector<128x32xf32> to vector<112x32xf32>
    %3 = tpu.concatenate %0, %2 in 0 : vector<16x32xf32>, vector<112x32xf32> -> vector<128x32xf32>
    %4 = vector.extract_strided_slice %1 {offsets = [16, 0], sizes = [112, 32], strides = [1, 1]} : vector<128x32xf32> to vector<112x32xf32>
    %5 = tpu.concatenate %4, %0 in 0 : vector<112x32xf32>, vector<16x32xf32> -> vector<128x32xf32>
    %6 = tpu.concatenate %3, %1, %5 in 1 : vector<128x32xf32>, vector<128x32xf32>, vector<128x32xf32> -> vector<128x96xf32>
    %c0_1 = arith.constant 0 : index
    %c0_2 = arith.constant 0 : index
    %7 = vector.load %arg2[%c0_1, %c0_2] : memref<96x64xf32, #tpu.memory_space<vmem>>, vector<96x64xf32>
    %cst_3 = arith.constant dense<0.000000e+00> : vector<128x64xf32>
    %8 = tpu.matmul %6, %7, %cst_3 {dimension_numbers = #tpu.dot_dimension_numbers<[1], [0], [0], [1], [0, 0, 1, 1], [], []>} : vector<128x96xf32>, vector<96x64xf32>, vector<128x64xf32> -> vector<128x64xf32>
    %c0_4 = arith.constant 0 : index
    %c0_5 = arith.constant 0 : index
    %9 = vector.load %arg3[%c0_4, %c0_5] : memref<1x64xf32, #tpu.memory_space<vmem>>, vector<1x64xf32>
    %10 = vector.broadcast %9 : vector<1x64xf32> to vector<128x64xf32>
    %11 = arith.addf %8, %10 : vector<128x64xf32>
    %12 = vector.extract_strided_slice %11 {offsets = [0, 0], sizes = [128, 32], strides = [1, 1]} : vector<128x64xf32> to vector<128x32xf32>
    %13 = vector.extract_strided_slice %11 {offsets = [0, 32], sizes = [128, 32], strides = [1, 1]} : vector<128x64xf32> to vector<128x32xf32>
    %14 = arith.negf %13 : vector<128x32xf32>
    %15 = math.exp %14 : vector<128x32xf32>
    %cst_6 = arith.constant 1.000000e+00 : f32
    %16 = vector.broadcast %cst_6 : f32 to vector<128x32xf32>
    %17 = arith.addf %16, %15 : vector<128x32xf32>
    %18 = arith.divf %16, %17 : vector<128x32xf32>
    %19 = arith.mulf %12, %18 : vector<128x32xf32>
    %c0_7 = arith.constant 0 : index
    %c0_8 = arith.constant 0 : index
    %20 = vector.load %arg4[%c0_7, %c0_8] : memref<32x32xf32, #tpu.memory_space<vmem>>, vector<32x32xf32>
    %cst_9 = arith.constant dense<0.000000e+00> : vector<128x32xf32>
    %21 = tpu.matmul %19, %20, %cst_9 {dimension_numbers = #tpu.dot_dimension_numbers<[1], [0], [0], [1], [0, 0, 1, 1], [], []>} : vector<128x32xf32>, vector<32x32xf32>, vector<128x32xf32> -> vector<128x32xf32>
    %22 = vector.shape_cast %21 : vector<128x32xf32> to vector<8x16x32xf32>
    %c0_10 = arith.constant 0 : index
    %c0_11 = arith.constant 0 : index
    %c0_12 = arith.constant 0 : index
    %23 = vector.load %arg1[%c0_10, %c0_11, %c0_12] : memref<8x16x16xf32, #tpu.memory_space<vmem>>, vector<8x16x16xf32>
    "tpu.trace_start"() <{level = 10 : i32, message = "tnm,tmc->tnc"}> : () -> ()
    %cst_13 = arith.constant dense<0.000000e+00> : vector<8x16x32xf32>
    %24 = tpu.matmul %23, %22, %cst_13 {dimension_numbers = #tpu.dot_dimension_numbers<[2], [1], [1], [2], [0, 0, 0, 1, 1, 2], [0], [0]>} : vector<8x16x16xf32>, vector<8x16x32xf32>, vector<8x16x32xf32> -> vector<8x16x32xf32>
    "tpu.trace_stop"() : () -> ()
    %25 = vector.shape_cast %24 : vector<8x16x32xf32> to vector<128x32xf32>
    %c0_14 = arith.constant 0 : index
    %c0_15 = arith.constant 0 : index
    %26 = vector.load %arg5[%c0_14, %c0_15] : memref<1x32xf32, #tpu.memory_space<vmem>>, vector<1x32xf32>
    %27 = vector.broadcast %26 : vector<1x32xf32> to vector<128x32xf32>
    %28 = arith.addf %25, %27 : vector<128x32xf32>
    %29 = vector.extract_strided_slice %28 {offsets = [0, 0], sizes = [112, 32], strides = [1, 1]} : vector<128x32xf32> to vector<112x32xf32>
    %30 = tpu.concatenate %0, %29 in 0 : vector<16x32xf32>, vector<112x32xf32> -> vector<128x32xf32>
    %31 = vector.extract_strided_slice %28 {offsets = [16, 0], sizes = [112, 32], strides = [1, 1]} : vector<128x32xf32> to vector<112x32xf32>
    %32 = tpu.concatenate %31, %0 in 0 : vector<112x32xf32>, vector<16x32xf32> -> vector<128x32xf32>
    %33 = tpu.concatenate %30, %28, %32 in 1 : vector<128x32xf32>, vector<128x32xf32>, vector<128x32xf32> -> vector<128x96xf32>
    %c0_16 = arith.constant 0 : index
    %c0_17 = arith.constant 0 : index
    %34 = vector.load %arg6[%c0_16, %c0_17] : memref<96x64xf32, #tpu.memory_space<vmem>>, vector<96x64xf32>
    %cst_18 = arith.constant dense<0.000000e+00> : vector<128x64xf32>
    %35 = tpu.matmul %33, %34, %cst_18 {dimension_numbers = #tpu.dot_dimension_numbers<[1], [0], [0], [1], [0, 0, 1, 1], [], []>} : vector<128x96xf32>, vector<96x64xf32>, vector<128x64xf32> -> vector<128x64xf32>
    %c0_19 = arith.constant 0 : index
    %c0_20 = arith.constant 0 : index
    %36 = vector.load %arg7[%c0_19, %c0_20] : memref<1x64xf32, #tpu.memory_space<vmem>>, vector<1x64xf32>
    %37 = vector.broadcast %36 : vector<1x64xf32> to vector<128x64xf32>
    %38 = arith.addf %35, %37 : vector<128x64xf32>
    %39 = vector.extract_strided_slice %38 {offsets = [0, 0], sizes = [128, 32], strides = [1, 1]} : vector<128x64xf32> to vector<128x32xf32>
    %40 = vector.extract_strided_slice %38 {offsets = [0, 32], sizes = [128, 32], strides = [1, 1]} : vector<128x64xf32> to vector<128x32xf32>
    %41 = arith.negf %40 : vector<128x32xf32>
    %42 = math.exp %41 : vector<128x32xf32>
    %cst_21 = arith.constant 1.000000e+00 : f32
    %43 = vector.broadcast %cst_21 : f32 to vector<128x32xf32>
    %44 = arith.addf %43, %42 : vector<128x32xf32>
    %45 = arith.divf %43, %44 : vector<128x32xf32>
    %46 = arith.mulf %39, %45 : vector<128x32xf32>
    %cst_22 = arith.constant dense<0.000000e+00> : vector<128xf32>
    %47 = vector.multi_reduction <add>, %46, %cst_22 [1] : vector<128x32xf32> to vector<128xf32>
    %48 = vector.shape_cast %47 : vector<128xf32> to vector<128x1xf32>
    %cst_23 = arith.constant 3.200000e+01 : f32
    %49 = vector.broadcast %cst_23 : f32 to vector<128x1xf32>
    %50 = arith.divf %48, %49 : vector<128x1xf32>
    %51 = vector.broadcast %50 : vector<128x1xf32> to vector<128x32xf32>
    %52 = arith.subf %46, %51 : vector<128x32xf32>
    %53 = arith.mulf %52, %52 : vector<128x32xf32>
    %cst_24 = arith.constant dense<0.000000e+00> : vector<128xf32>
    %54 = vector.multi_reduction <add>, %53, %cst_24 [1] : vector<128x32xf32> to vector<128xf32>
    %55 = vector.shape_cast %54 : vector<128xf32> to vector<128x1xf32>
    %cst_25 = arith.constant 3.200000e+01 : f32
    %56 = vector.broadcast %cst_25 : f32 to vector<128x1xf32>
    %57 = arith.divf %55, %56 : vector<128x1xf32>
    %cst_26 = arith.constant 9.99999974E-6 : f32
    %58 = vector.broadcast %cst_26 : f32 to vector<128x1xf32>
    %59 = arith.addf %57, %58 : vector<128x1xf32>
    %60 = math.rsqrt %59 : vector<128x1xf32>
    %61 = vector.broadcast %60 : vector<128x1xf32> to vector<128x32xf32>
    %62 = arith.mulf %52, %61 : vector<128x32xf32>
    %c0_27 = arith.constant 0 : index
    %c0_28 = arith.constant 0 : index
    %63 = vector.load %arg8[%c0_27, %c0_28] : memref<1x32xf32, #tpu.memory_space<vmem>>, vector<1x32xf32>
    %64 = vector.broadcast %63 : vector<1x32xf32> to vector<128x32xf32>
    %65 = arith.mulf %62, %64 : vector<128x32xf32>
    %c0_29 = arith.constant 0 : index
    %c0_30 = arith.constant 0 : index
    %66 = vector.load %arg9[%c0_29, %c0_30] : memref<1x32xf32, #tpu.memory_space<vmem>>, vector<1x32xf32>
    %67 = vector.broadcast %66 : vector<1x32xf32> to vector<128x32xf32>
    %68 = arith.addf %65, %67 : vector<128x32xf32>
    %69 = vector.extract_strided_slice %68 {offsets = [0, 0], sizes = [112, 32], strides = [1, 1]} : vector<128x32xf32> to vector<112x32xf32>
    %70 = tpu.concatenate %0, %69 in 0 : vector<16x32xf32>, vector<112x32xf32> -> vector<128x32xf32>
    %71 = vector.extract_strided_slice %68 {offsets = [16, 0], sizes = [112, 32], strides = [1, 1]} : vector<128x32xf32> to vector<112x32xf32>
    %72 = tpu.concatenate %71, %0 in 0 : vector<112x32xf32>, vector<16x32xf32> -> vector<128x32xf32>
    %73 = tpu.concatenate %70, %68, %72 in 1 : vector<128x32xf32>, vector<128x32xf32>, vector<128x32xf32> -> vector<128x96xf32>
    %c0_31 = arith.constant 0 : index
    %c0_32 = arith.constant 0 : index
    %74 = vector.load %arg10[%c0_31, %c0_32] : memref<96x64xf32, #tpu.memory_space<vmem>>, vector<96x64xf32>
    %cst_33 = arith.constant dense<0.000000e+00> : vector<128x64xf32>
    %75 = tpu.matmul %73, %74, %cst_33 {dimension_numbers = #tpu.dot_dimension_numbers<[1], [0], [0], [1], [0, 0, 1, 1], [], []>} : vector<128x96xf32>, vector<96x64xf32>, vector<128x64xf32> -> vector<128x64xf32>
    %c0_34 = arith.constant 0 : index
    %c0_35 = arith.constant 0 : index
    %76 = vector.load %arg11[%c0_34, %c0_35] : memref<1x64xf32, #tpu.memory_space<vmem>>, vector<1x64xf32>
    %77 = vector.broadcast %76 : vector<1x64xf32> to vector<128x64xf32>
    %78 = arith.addf %75, %77 : vector<128x64xf32>
    %79 = vector.extract_strided_slice %78 {offsets = [0, 0], sizes = [128, 32], strides = [1, 1]} : vector<128x64xf32> to vector<128x32xf32>
    %80 = vector.extract_strided_slice %78 {offsets = [0, 32], sizes = [128, 32], strides = [1, 1]} : vector<128x64xf32> to vector<128x32xf32>
    %81 = arith.negf %80 : vector<128x32xf32>
    %82 = math.exp %81 : vector<128x32xf32>
    %cst_36 = arith.constant 1.000000e+00 : f32
    %83 = vector.broadcast %cst_36 : f32 to vector<128x32xf32>
    %84 = arith.addf %83, %82 : vector<128x32xf32>
    %85 = arith.divf %83, %84 : vector<128x32xf32>
    %86 = arith.mulf %79, %85 : vector<128x32xf32>
    %c0_37 = arith.constant 0 : index
    %c0_38 = arith.constant 0 : index
    %87 = vector.load %arg12[%c0_37, %c0_38] : memref<32x32xf32, #tpu.memory_space<vmem>>, vector<32x32xf32>
    %cst_39 = arith.constant dense<0.000000e+00> : vector<128x32xf32>
    %88 = tpu.matmul %86, %87, %cst_39 {dimension_numbers = #tpu.dot_dimension_numbers<[1], [0], [0], [1], [0, 0, 1, 1], [], []>} : vector<128x32xf32>, vector<32x32xf32>, vector<128x32xf32> -> vector<128x32xf32>
    %89 = vector.shape_cast %88 : vector<128x32xf32> to vector<8x16x32xf32>
    %c0_40 = arith.constant 0 : index
    %c0_41 = arith.constant 0 : index
    %c0_42 = arith.constant 0 : index
    %90 = vector.load %arg1[%c0_40, %c0_41, %c0_42] : memref<8x16x16xf32, #tpu.memory_space<vmem>>, vector<8x16x16xf32>
    "tpu.trace_start"() <{level = 10 : i32, message = "tnm,tmc->tnc"}> : () -> ()
    %cst_43 = arith.constant dense<0.000000e+00> : vector<8x16x32xf32>
    %91 = tpu.matmul %90, %89, %cst_43 {dimension_numbers = #tpu.dot_dimension_numbers<[2], [1], [1], [2], [0, 0, 0, 1, 1, 2], [0], [0]>} : vector<8x16x16xf32>, vector<8x16x32xf32>, vector<8x16x32xf32> -> vector<8x16x32xf32>
    "tpu.trace_stop"() : () -> ()
    %92 = vector.shape_cast %91 : vector<8x16x32xf32> to vector<128x32xf32>
    %c0_44 = arith.constant 0 : index
    %c0_45 = arith.constant 0 : index
    %93 = vector.load %arg13[%c0_44, %c0_45] : memref<1x32xf32, #tpu.memory_space<vmem>>, vector<1x32xf32>
    %94 = vector.broadcast %93 : vector<1x32xf32> to vector<128x32xf32>
    %95 = arith.addf %92, %94 : vector<128x32xf32>
    %96 = vector.extract_strided_slice %95 {offsets = [0, 0], sizes = [112, 32], strides = [1, 1]} : vector<128x32xf32> to vector<112x32xf32>
    %97 = tpu.concatenate %0, %96 in 0 : vector<16x32xf32>, vector<112x32xf32> -> vector<128x32xf32>
    %98 = vector.extract_strided_slice %95 {offsets = [16, 0], sizes = [112, 32], strides = [1, 1]} : vector<128x32xf32> to vector<112x32xf32>
    %99 = tpu.concatenate %98, %0 in 0 : vector<112x32xf32>, vector<16x32xf32> -> vector<128x32xf32>
    %100 = tpu.concatenate %97, %95, %99 in 1 : vector<128x32xf32>, vector<128x32xf32>, vector<128x32xf32> -> vector<128x96xf32>
    %c0_46 = arith.constant 0 : index
    %c0_47 = arith.constant 0 : index
    %101 = vector.load %arg14[%c0_46, %c0_47] : memref<96x64xf32, #tpu.memory_space<vmem>>, vector<96x64xf32>
    %cst_48 = arith.constant dense<0.000000e+00> : vector<128x64xf32>
    %102 = tpu.matmul %100, %101, %cst_48 {dimension_numbers = #tpu.dot_dimension_numbers<[1], [0], [0], [1], [0, 0, 1, 1], [], []>} : vector<128x96xf32>, vector<96x64xf32>, vector<128x64xf32> -> vector<128x64xf32>
    %c0_49 = arith.constant 0 : index
    %c0_50 = arith.constant 0 : index
    %103 = vector.load %arg15[%c0_49, %c0_50] : memref<1x64xf32, #tpu.memory_space<vmem>>, vector<1x64xf32>
    %104 = vector.broadcast %103 : vector<1x64xf32> to vector<128x64xf32>
    %105 = arith.addf %102, %104 : vector<128x64xf32>
    %106 = vector.extract_strided_slice %105 {offsets = [0, 0], sizes = [128, 32], strides = [1, 1]} : vector<128x64xf32> to vector<128x32xf32>
    %107 = vector.extract_strided_slice %105 {offsets = [0, 32], sizes = [128, 32], strides = [1, 1]} : vector<128x64xf32> to vector<128x32xf32>
    %108 = arith.negf %107 : vector<128x32xf32>
    %109 = math.exp %108 : vector<128x32xf32>
    %cst_51 = arith.constant 1.000000e+00 : f32
    %110 = vector.broadcast %cst_51 : f32 to vector<128x32xf32>
    %111 = arith.addf %110, %109 : vector<128x32xf32>
    %112 = arith.divf %110, %111 : vector<128x32xf32>
    %113 = arith.mulf %106, %112 : vector<128x32xf32>
    %cst_52 = arith.constant dense<0.000000e+00> : vector<128xf32>
    %114 = vector.multi_reduction <add>, %113, %cst_52 [1] : vector<128x32xf32> to vector<128xf32>
    %115 = vector.shape_cast %114 : vector<128xf32> to vector<128x1xf32>
    %cst_53 = arith.constant 3.200000e+01 : f32
    %116 = vector.broadcast %cst_53 : f32 to vector<128x1xf32>
    %117 = arith.divf %115, %116 : vector<128x1xf32>
    %118 = vector.broadcast %117 : vector<128x1xf32> to vector<128x32xf32>
    %119 = arith.subf %113, %118 : vector<128x32xf32>
    %120 = arith.mulf %119, %119 : vector<128x32xf32>
    %cst_54 = arith.constant dense<0.000000e+00> : vector<128xf32>
    %121 = vector.multi_reduction <add>, %120, %cst_54 [1] : vector<128x32xf32> to vector<128xf32>
    %122 = vector.shape_cast %121 : vector<128xf32> to vector<128x1xf32>
    %cst_55 = arith.constant 3.200000e+01 : f32
    %123 = vector.broadcast %cst_55 : f32 to vector<128x1xf32>
    %124 = arith.divf %122, %123 : vector<128x1xf32>
    %cst_56 = arith.constant 9.99999974E-6 : f32
    %125 = vector.broadcast %cst_56 : f32 to vector<128x1xf32>
    %126 = arith.addf %124, %125 : vector<128x1xf32>
    %127 = math.rsqrt %126 : vector<128x1xf32>
    %128 = vector.broadcast %127 : vector<128x1xf32> to vector<128x32xf32>
    %129 = arith.mulf %119, %128 : vector<128x32xf32>
    %c0_57 = arith.constant 0 : index
    %c0_58 = arith.constant 0 : index
    %130 = vector.load %arg16[%c0_57, %c0_58] : memref<1x32xf32, #tpu.memory_space<vmem>>, vector<1x32xf32>
    %131 = vector.broadcast %130 : vector<1x32xf32> to vector<128x32xf32>
    %132 = arith.mulf %129, %131 : vector<128x32xf32>
    %c0_59 = arith.constant 0 : index
    %c0_60 = arith.constant 0 : index
    %133 = vector.load %arg17[%c0_59, %c0_60] : memref<1x32xf32, #tpu.memory_space<vmem>>, vector<1x32xf32>
    %134 = vector.broadcast %133 : vector<1x32xf32> to vector<128x32xf32>
    %135 = arith.addf %132, %134 : vector<128x32xf32>
    %136 = vector.extract_strided_slice %135 {offsets = [0, 0], sizes = [112, 32], strides = [1, 1]} : vector<128x32xf32> to vector<112x32xf32>
    %137 = tpu.concatenate %0, %136 in 0 : vector<16x32xf32>, vector<112x32xf32> -> vector<128x32xf32>
    %138 = vector.extract_strided_slice %135 {offsets = [16, 0], sizes = [112, 32], strides = [1, 1]} : vector<128x32xf32> to vector<112x32xf32>
    %139 = tpu.concatenate %138, %0 in 0 : vector<112x32xf32>, vector<16x32xf32> -> vector<128x32xf32>
    %140 = tpu.concatenate %137, %135, %139 in 1 : vector<128x32xf32>, vector<128x32xf32>, vector<128x32xf32> -> vector<128x96xf32>
    %c0_61 = arith.constant 0 : index
    %c0_62 = arith.constant 0 : index
    %141 = vector.load %arg18[%c0_61, %c0_62] : memref<96x64xf32, #tpu.memory_space<vmem>>, vector<96x64xf32>
    %cst_63 = arith.constant dense<0.000000e+00> : vector<128x64xf32>
    %142 = tpu.matmul %140, %141, %cst_63 {dimension_numbers = #tpu.dot_dimension_numbers<[1], [0], [0], [1], [0, 0, 1, 1], [], []>} : vector<128x96xf32>, vector<96x64xf32>, vector<128x64xf32> -> vector<128x64xf32>
    %c0_64 = arith.constant 0 : index
    %c0_65 = arith.constant 0 : index
    %143 = vector.load %arg19[%c0_64, %c0_65] : memref<1x64xf32, #tpu.memory_space<vmem>>, vector<1x64xf32>
    %144 = vector.broadcast %143 : vector<1x64xf32> to vector<128x64xf32>
    %145 = arith.addf %142, %144 : vector<128x64xf32>
    %146 = vector.extract_strided_slice %145 {offsets = [0, 0], sizes = [128, 32], strides = [1, 1]} : vector<128x64xf32> to vector<128x32xf32>
    %147 = vector.extract_strided_slice %145 {offsets = [0, 32], sizes = [128, 32], strides = [1, 1]} : vector<128x64xf32> to vector<128x32xf32>
    %148 = arith.negf %147 : vector<128x32xf32>
    %149 = math.exp %148 : vector<128x32xf32>
    %cst_66 = arith.constant 1.000000e+00 : f32
    %150 = vector.broadcast %cst_66 : f32 to vector<128x32xf32>
    %151 = arith.addf %150, %149 : vector<128x32xf32>
    %152 = arith.divf %150, %151 : vector<128x32xf32>
    %153 = arith.mulf %146, %152 : vector<128x32xf32>
    %cst_67 = arith.constant dense<0.000000e+00> : vector<128xf32>
    %154 = vector.multi_reduction <add>, %153, %cst_67 [1] : vector<128x32xf32> to vector<128xf32>
    %155 = vector.shape_cast %154 : vector<128xf32> to vector<128x1xf32>
    %cst_68 = arith.constant 3.200000e+01 : f32
    %156 = vector.broadcast %cst_68 : f32 to vector<128x1xf32>
    %157 = arith.divf %155, %156 : vector<128x1xf32>
    %158 = vector.broadcast %157 : vector<128x1xf32> to vector<128x32xf32>
    %159 = arith.subf %153, %158 : vector<128x32xf32>
    %160 = arith.mulf %159, %159 : vector<128x32xf32>
    %cst_69 = arith.constant dense<0.000000e+00> : vector<128xf32>
    %161 = vector.multi_reduction <add>, %160, %cst_69 [1] : vector<128x32xf32> to vector<128xf32>
    %162 = vector.shape_cast %161 : vector<128xf32> to vector<128x1xf32>
    %cst_70 = arith.constant 3.200000e+01 : f32
    %163 = vector.broadcast %cst_70 : f32 to vector<128x1xf32>
    %164 = arith.divf %162, %163 : vector<128x1xf32>
    %cst_71 = arith.constant 9.99999974E-6 : f32
    %165 = vector.broadcast %cst_71 : f32 to vector<128x1xf32>
    %166 = arith.addf %164, %165 : vector<128x1xf32>
    %167 = math.rsqrt %166 : vector<128x1xf32>
    %168 = vector.broadcast %167 : vector<128x1xf32> to vector<128x32xf32>
    %169 = arith.mulf %159, %168 : vector<128x32xf32>
    %c0_72 = arith.constant 0 : index
    %c0_73 = arith.constant 0 : index
    %170 = vector.load %arg20[%c0_72, %c0_73] : memref<1x32xf32, #tpu.memory_space<vmem>>, vector<1x32xf32>
    %171 = vector.broadcast %170 : vector<1x32xf32> to vector<128x32xf32>
    %172 = arith.mulf %169, %171 : vector<128x32xf32>
    %c0_74 = arith.constant 0 : index
    %c0_75 = arith.constant 0 : index
    %173 = vector.load %arg21[%c0_74, %c0_75] : memref<1x32xf32, #tpu.memory_space<vmem>>, vector<1x32xf32>
    %174 = vector.broadcast %173 : vector<1x32xf32> to vector<128x32xf32>
    %175 = arith.addf %172, %174 : vector<128x32xf32>
    %c0_76 = arith.constant 0 : index
    %c0_77 = arith.constant 0 : index
    %176 = vector.load %arg22[%c0_76, %c0_77] : memref<32x32xf32, #tpu.memory_space<vmem>>, vector<32x32xf32>
    %cst_78 = arith.constant dense<0.000000e+00> : vector<128x32xf32>
    %177 = tpu.matmul %175, %176, %cst_78 {dimension_numbers = #tpu.dot_dimension_numbers<[1], [0], [0], [1], [0, 0, 1, 1], [], []>} : vector<128x32xf32>, vector<32x32xf32>, vector<128x32xf32> -> vector<128x32xf32>
    %c0_79 = arith.constant 0 : index
    %c0_80 = arith.constant 0 : index
    %178 = vector.load %arg23[%c0_79, %c0_80] : memref<1x32xf32, #tpu.memory_space<vmem>>, vector<1x32xf32>
    %179 = vector.broadcast %178 : vector<1x32xf32> to vector<128x32xf32>
    %180 = arith.addf %177, %179 : vector<128x32xf32>
    %cst_81 = arith.constant 0.000000e+00 : f32
    %181 = vector.broadcast %cst_81 : f32 to vector<128x32xf32>
    %182 = arith.maximumf %180, %181 : vector<128x32xf32>
    %c0_82 = arith.constant 0 : index
    %c0_83 = arith.constant 0 : index
    %183 = vector.load %arg24[%c0_82, %c0_83] : memref<1x32xf32, #tpu.memory_space<vmem>>, vector<1x32xf32>
    %184 = vector.broadcast %183 : vector<1x32xf32> to vector<128x32xf32>
    %185 = arith.mulf %182, %184 : vector<128x32xf32>
    %cst_84 = arith.constant dense<0.000000e+00> : vector<128xf32>
    %186 = vector.multi_reduction <add>, %185, %cst_84 [1] : vector<128x32xf32> to vector<128xf32>
    %187 = vector.shape_cast %186 : vector<128xf32> to vector<128x1xf32>
    %c0_85 = arith.constant 0 : index
    %c0_86 = arith.constant 0 : index
    %188 = vector.load %arg25[%c0_85, %c0_86] : memref<1x1xf32, #tpu.memory_space<vmem>>, vector<1x1xf32>
    %189 = vector.broadcast %188 : vector<1x1xf32> to vector<128x1xf32>
    %190 = arith.addf %187, %189 : vector<128x1xf32>
    %c0_87 = arith.constant 0 : index
    %c0_88 = arith.constant 0 : index
    %191 = vector.load %arg26[%c0_87, %c0_88] : memref<128x1xf32, #tpu.memory_space<vmem>>, vector<128x1xf32>
    tpu.vector_store %arg26[%c0_87, %c0_88], %190 {strides = array<i32>} : memref<128x1xf32, #tpu.memory_space<vmem>>, vector<128x1xf32>,
    return
  }
}

</mosaic_0001>

<bundles_post_ra>
// kernel: stgcn_forward.1
= control target key start
LH: loop header
LB: loop body
LE: loop exit
PB: predicated region body
PF: predicated region fallthrough
CT: control target
= control target key end

     0   :  { %s7202_s29 = smov 32   ;;  %v7203_v34 = vmov 0.0   ;;  %vm211_vm0 = vcmask 261120   ;;  %vm228_vm1 = vcmask 523264   ;;  %vm264_vm2 = vcmask 785408   ;;  %s9813_s0 = inlined_call_operand.vmem [shape: f32[128,32], index: 0, kind: input, shape index: {}]   ;;  %s9814_s2 = inlined_call_operand.vmem [shape: f32[96,64], index: 2, kind: input, shape index: {}]   ;;  %s9815_s4 = inlined_call_operand.vmem [shape: f32[32,32], index: 4, kind: input, shape index: {}]   ;;  %s9816_s3 = inlined_call_operand.vmem [shape: f32[1,64], index: 3, kind: input, shape index: {}]   ;;  %s9817_s1 = inlined_call_operand.vmem [shape: f32[8,16,16], index: 1, kind: input, shape index: {}]   ;;  %s9818_s6 = inlined_call_operand.vmem [shape: f32[96,64], index: 6, kind: input, shape index: {}]   ;;  %s9819_s5 = inlined_call_operand.vmem [shape: f32[1,32], index: 5, kind: input, shape index: {}]   ;;  %s9820_s7 = inlined_call_operand.vmem [shape: f32[1,64], index: 7, kind: input, shape index: {}]   ;;  %s9821_s10 = inlined_call_operand.vmem [shape: f32[96,64], index: 10, kind: input, shape index: {}]   ;;  %s9822_s8 = inlined_call_operand.vmem [shape: f32[1,32], index: 8, kind: input, shape index: {}]   ;;  %s9823_s9 = inlined_call_operand.vmem [shape: f32[1,32], index: 9, kind: input, shape index: {}]   ;;  %s9824_s12 = inlined_call_operand.vmem [shape: f32[32,32], index: 12, kind: input, shape index: {}]   ;;  %s9825_s11 = inlined_call_operand.vmem [shape: f32[1,64], index: 11, kind: input, shape index: {}]   ;;  %s9826_s14 = inlined_call_operand.vmem [shape: f32[96,64], index: 14, kind: input, shape index: {}]   ;;  %s9827_s13 = inlined_call_operand.vmem [shape: f32[1,32], index: 13, kind: input, shape index: {}]   ;;  %s9828_s15 = inlined_call_operand.vmem [shape: f32[1,64], index: 15, kind: input, shape index: {}]   ;;  %s9829_s18 = inlined_call_operand.vmem [shape: f32[96,64], index: 18, kind: input, shape index: {}]   ;;  %s9830_s16 = inlined_call_operand.vmem [shape: f32[1,32], index: 16, kind: input, shape index: {}]   ;;  %s9831_s17 = inlined_call_operand.vmem [shape: f32[1,32], index: 17, kind: input, shape index: {}]   ;;  %s9832_s19 = inlined_call_operand.vmem [shape: f32[1,64], index: 19, kind: input, shape index: {}]   ;;  %s9833_s22 = inlined_call_operand.vmem [shape: f32[32,32], index: 22, kind: input, shape index: {}]   ;;  %s9834_s20 = inlined_call_operand.vmem [shape: f32[1,32], index: 20, kind: input, shape index: {}]   ;;  %s9835_s21 = inlined_call_operand.vmem [shape: f32[1,32], index: 21, kind: input, shape index: {}]   ;;  %s9836_s25 = inlined_call_operand.<no memory space> [shape: f32[1,1], index: 25, kind: input, shape index: {}]   ;;  %s9837_s23 = inlined_call_operand.vmem [shape: f32[1,32], index: 23, kind: input, shape index: {}]   ;;  %s9838_s24 = inlined_call_operand.vmem [shape: f32[1,32], index: 24, kind: input, shape index: {}]   ;;  %s9839_s26 = inlined_call_operand.vmem [shape: f32[128,1], index: 26, kind: output, shape index: {}]  }
   0x1   :  { %9846 = sst [smem:[#allocation3_spill]] %s9813_s0  ;;  %vm847_vm3 = vcmask 130048   ;;  %vm5584_vm4 = vcmask 7168  }
   0x2   :  { %9847 = sst [smem:[#allocation4_spill]] %s9814_s2  ;;  %s7204_s2 = smov 96  }
   0x3   :  { %9848 = sst [smem:[#allocation5_spill]] %s9815_s4 }
   0x4   :  { %9849 = sst [smem:[#allocation6_spill]] %s9816_s3  ;;  %s9859_s27 = sld [smem:[#allocation5_spill]] }
   0x5   :  { %9850 = sst [smem:[#allocation7_spill]] %s9817_s1  ;;  %s7201_s1 = smov 64  }
   0x6   :  { %9851 = sst [smem:[#allocation8_spill]] %s9818_s6 }
   0x7   :  { %9852 = sst [smem:[#allocation9_spill]] %s9819_s5  ;;  %s9858_s5 = sld [smem:[#allocation4_spill]] }
   0x8   :  { %9853 = sst [smem:[#allocation10_spill]] %s9820_s7  ;;  %s9857_s7 = sld [smem:[#allocation3_spill]] }
   0x9   :  { %9854 = sst [smem:[#allocation11_spill]] %s9821_s10  ;;  %s9864_s4 = sld [smem:[#allocation10_spill]] }
   0xa   :  { %9855 = sst [smem:[#allocation12_spill]] %s9822_s8  ;;  %s9860_s8 = sld [smem:[#allocation6_spill]] }
   0xb   :  { %9856 = sst [smem:[#allocation13_spill]] %s9823_s9 }
   0xc   :  { %s9867_s30 = sld [smem:[#allocation13_spill]] }
   0xd   :  { %v245_v4 = vld [vmem:[%s9858_s5] sm:$0xff]  ;;  %v246_v5 = vld [vmem:[%s9858_s5 + $0x8] sm:$0xff]  ;;  %v247_v6 = vld [vmem:[%s9858_s5 + $0x10] sm:$0xff] }
   0xe   :  { %v7343_v0 = vld [vmem:[%s9857_s7 + $0x10] sm:$0xff]  ;;  %v7348_v1 = vld [vmem:[%s9857_s7] sm:$0xff]  ;;  %v7357_v2 = vld [vmem:[%s9857_s7 + $0x18] sm:$0xff]  ;;  %v6573_v7 = vpack.c.bf16 %v246_v5, %v245_v4 }
   0xf   :  { %166 = vrot.lane.b32.xlu1 %v7343_v0, %s7201_s1  ;;  %117 = vrot.lane.b32.xlu0 %v7348_v1, %s7202_s29  ;;  %v7362_v3 = vld [vmem:[%s9857_s7 + $0x8] sm:$0xff]  ;;  %v248_v8 = vld [vmem:[%s9858_s5 + $0x18] sm:$0xff] }
  0x10   :  { %v6577_v9 = vpack.c.bf16 %v248_v8, %v247_v6  ;;  %v249_v10 = vld [vmem:[%s9858_s5 + $0x20] sm:$0xff]  ;;  %v250_v11 = vld [vmem:[%s9858_s5 + $0x28] sm:$0xff]  ;;  %6574 = vmatprep.subr.bf16.mxu0 %v6573_v7  ;;  %v251_v15 = vld [vmem:[%s9858_s5 + $0x30] sm:$0xff] }
  0x11   :  { %v7393_v12 = vld [vmem:[%s9857_s7 + $0x28] sm:$0xff]  ;;  %v7398_v13 = vld [vmem:[%s9857_s7 + $0x20] sm:$0xff]  ;;  %6576 = vmatpush3.bf16.msra.mxu0 %v6573_v7  ;;  %v6581_v14 = vpack.c.bf16 %v250_v11, %v249_v10  ;;  %v252_v16 = vld [vmem:[%s9858_s5 + $0x38] sm:$0xff] }
  0x12   :  { %6578 = vmatprep.subr.bf16.mxu0 %v6577_v9  ;;  %v6585_v17 = vpack.c.bf16 %v252_v16, %v251_v15  ;;  %v253_v18 = vld [vmem:[%s9858_s5 + $0x40] sm:$0xff]  ;;  %v254_v19 = vld [vmem:[%s9858_s5 + $0x48] sm:$0xff]  ;;  %v7423_v20 = vld [vmem:[%s9857_s7 + $0x38] sm:$0xff] }
  0x13   :  { %168 = vrot.lane.b32.xlu1 %v7357_v2, %s7201_s1  ;;  %119 = vrot.lane.b32.xlu0 %v7362_v3, %s7202_s29  ;;  %v7428_v21 = vld [vmem:[%s9857_s7 + $0x30] sm:$0xff]  ;;  %v6589_v22 = vpack.c.bf16 %v254_v19, %v253_v18  ;;  %v256_v24 = vld [vmem:[%s9858_s5 + $0x58] sm:$0xff] }
  0x14   :  { %v255_v23 = vld [vmem:[%s9858_s5 + $0x50] sm:$0xff]  ;;  %v7447_v26 = vld [vmem:[%s9857_s7 + $0x48] sm:$0xff]  ;;  %v7452_v27 = vld [vmem:[%s9857_s7 + $0x40] sm:$0xff]  ;;  %s9862_s5 = sld [smem:[#allocation8_spill]] }
  0x15   :  { %6580 = vmatpush3.bf16.msra.mxu0 %v6577_v9  ;;  %v6593_v25 = vpack.c.bf16 %v256_v24, %v255_v23  ;;  %v7465_v28 = vld [vmem:[%s9857_s7 + $0x58] sm:$0xff]  ;;  %v7470_v29 = vld [vmem:[%s9857_s7 + $0x50] sm:$0xff]  ;;  %v7483_v30 = vld [vmem:[%s9857_s7 + $0x68] sm:$0xff] }
  0x16   :  { %6582 = vmatprep.subr.bf16.mxu0 %v6581_v14  ;;  %v7488_v31 = vld [vmem:[%s9857_s7 + $0x60] sm:$0xff]  ;;  %v100_v32 = vld [vmem:[%s9857_s7 + $0x78] sm:$0xff]  ;;  %v99_v33 = vld [vmem:[%s9857_s7 + $0x70] sm:$0xff]  ;;  %s9865_s7 = sld [smem:[#allocation11_spill]] }
  0x17   :  { %123 = vrot.lane.b32.xlu1 %v7357_v2, %s7202_s29  ;;  %121 = vrot.lane.b32.xlu0 %v7343_v0, %s7202_s29 }
  0x19   :  { %6584 = vmatpush3.bf16.msra.mxu0 %v6581_v14 }
  0x1a   :  { %6586 = vmatprep.subr.bf16.mxu0 %v6585_v17 }
  0x1b   :  { %172 = vrot.lane.b32.xlu1 %v7393_v12, %s7201_s1  ;;  %170 = vrot.lane.b32.xlu0 %v7398_v13, %s7201_s1 }
  0x1d   :  { %6588 = vmatpush3.bf16.msra.mxu0 %v6585_v17 }
  0x1e   :  { %6590 = vmatprep.subr.bf16.mxu0 %v6589_v22 }
  0x1f   :  { %127 = vrot.lane.b32.xlu1 %v7393_v12, %s7202_s29  ;;  %125 = vrot.lane.b32.xlu0 %v7398_v13, %s7202_s29 }
  0x21   :  { %6592 = vmatpush3.bf16.msra.mxu0 %v6589_v22 }
  0x22   :  { %6594 = vmatprep.subr.bf16.mxu0 %v6593_v25 }
  0x23   :  { %176 = vrot.lane.b32.xlu1 %v7423_v20, %s7201_s1  ;;  %174 = vrot.lane.b32.xlu0 %v7428_v21, %s7201_s1 }
  0x25   :  { %6596 = vmatpush3.bf16.msra.mxu0 %v6593_v25 }
  0x27   :  { %131 = vrot.lane.b32.xlu1 %v7423_v20, %s7202_s29  ;;  %129 = vrot.lane.b32.xlu0 %v7428_v21, %s7202_s29 }
  0x2b   :  { %180 = vrot.lane.b32.xlu1 %v7447_v26, %s7201_s1  ;;  %178 = vrot.lane.b32.xlu0 %v7452_v27, %s7201_s1 }
  0x2f   :  { %135 = vrot.lane.b32.xlu1 %v7447_v26, %s7202_s29  ;;  %133 = vrot.lane.b32.xlu0 %v7452_v27, %s7202_s29 }
  0x33   :  { %184 = vrot.lane.b32.xlu1 %v7465_v28, %s7201_s1  ;;  %182 = vrot.lane.b32.xlu0 %v7470_v29, %s7201_s1 }
  0x37   :  { %139 = vrot.lane.b32.xlu1 %v7465_v28, %s7202_s29  ;;  %137 = vrot.lane.b32.xlu0 %v7470_v29, %s7202_s29 }
  0x3b   :  { %188 = vrot.lane.b32.xlu1 %v7483_v30, %s7201_s1  ;;  %186 = vrot.lane.b32.xlu0 %v7488_v31, %s7201_s1 }
  0x3f   :  { %143 = vrot.lane.b32.xlu1 %v7483_v30, %s7202_s29  ;;  %141 = vrot.lane.b32.xlu0 %v7488_v31, %s7202_s29 }
  0x43   :  { %192 = vrot.lane.b32.xlu1 %v100_v32, %s7201_s1  ;;  %190 = vrot.lane.b32.xlu0 %v99_v33, %s7201_s1 }
  0x47   :  { %145 = vrot.lane.b32.xlu0 %v99_v33, %s7202_s29  ;;  %147 = vrot.lane.b32.xlu1 %v100_v32, %s7202_s29 }
  0x4b   :  { %194 = vrot.lane.b32.xlu0 %v7203_v34, %s7201_s1 }
  0x81   :  { %v167_v35 = vpop.permute.xlu1 %166  ;;  %v118_v36 = vpop.permute.xlu0 %117 }
  0x82   :  { %v212_v37 = vsel %vm211_vm0, 0.0, %v118_v36  ;;  %v634_v36 = vld [vmem:[%s9859_s27] sm:$0xff] }
  0x83   :  { %v229_v38 = vsel %vm228_vm1, %v212_v37, %v167_v35  ;;  %v7584_v37 = vld [vmem:[%s9860_s8] ss:$0 sm:$0xff]  ;;  %s9863_s8 = sld [smem:[#allocation9_spill]] }
  0x84   :  { %6149 = vmatprep.mubr.msk.f32.mxu0 %vm264_vm2, %v229_v38 }
  0x85   :  { %v169_v39 = vpop.permute.xlu1 %168  ;;  %v120_v40 = vpop.permute.xlu0 %119 }
  0x86   :  { %v213_v41 = vsel %vm211_vm0, 0.0, %v120_v40 }
  0x87   :  { %v230_v42 = vsel %vm228_vm1, %v213_v41, %v169_v39 }
  0x88   :  { %6150 = vmatmul.mubr.msk.f32.vlgmr.msra.gmra.mrb[0].mxu0 %vm264_vm2, %v230_v42 }
  0x89   :  { %v124_v43 = vpop.permute.xlu1 %123  ;;  %v122_v44 = vpop.permute.xlu0 %121 }
  0x8a   :  { %v215_v45 = vsel %vm211_vm0, %v7362_v3, %v124_v43  ;;  %v214_v46 = vsel %vm211_vm0, %v7348_v1, %v122_v44 }
  0x8d   :  { %v173_v47 = vpop.permute.xlu1 %172  ;;  %v171_v48 = vpop.permute.xlu0 %170 }
  0x8e   :  { %v232_v49 = vsel %vm228_vm1, %v215_v45, %v173_v47  ;;  %v231_v50 = vsel %vm228_vm1, %v214_v46, %v171_v48 }
  0x8f   :  { %6152 = vmatprep.mubr.msk.f32.mxu0 %vm264_vm2, %v231_v50  ;;  %v636_v50 = vld [vmem:[%s9859_s27 + $0x10] sm:$0xff] }
  0x90   :  { %6153 = vmatmul.mubr.msk.f32.gmra.mrb[2].mxu0 %vm264_vm2, %v232_v49 }
  0x91   :  { %v128_v51 = vpop.permute.xlu1 %127  ;;  %v126_v52 = vpop.permute.xlu0 %125 }
  0x92   :  { %v217_v53 = vsel %vm211_vm0, %v7357_v2, %v128_v51  ;;  %v216_v54 = vsel %vm211_vm0, %v7343_v0, %v126_v52  ;;  %v637_v51 = vld [vmem:[%s9859_s27 + $0x18] sm:$0xff] }
  0x93   :  { %v6601_v52 = vpack.c.bf16 %v637_v51, %v636_v50 }
  0x95   :  { %v177_v55 = vpop.permute.xlu1 %176  ;;  %v175_v56 = vpop.permute.xlu0 %174 }
  0x96   :  { %v234_v57 = vsel %vm228_vm1, %v217_v53, %v177_v55  ;;  %v233_v58 = vsel %vm228_vm1, %v216_v54, %v175_v56 }
  0x97   :  { %6155 = vmatprep.mubr.msk.f32.mxu0 %vm264_vm2, %v233_v58 }
  0x98   :  { %6156 = vmatmul.mubr.msk.f32.gmra.mrb[4].mxu0 %vm264_vm2, %v234_v57 }
  0x99   :  { %v132_v59 = vpop.permute.xlu1 %131  ;;  %v130_v60 = vpop.permute.xlu0 %129 }
  0x9a   :  { %v219_v61 = vsel %vm211_vm0, %v7393_v12, %v132_v59  ;;  %v218_v62 = vsel %vm211_vm0, %v7398_v13, %v130_v60 }
  0x9d   :  { %v181_v63 = vpop.permute.xlu1 %180  ;;  %v179_v0 = vpop.permute.xlu0 %178 }
  0x9e   :  { %v236_v1 = vsel %vm228_vm1, %v219_v61, %v181_v63  ;;  %v235_v2 = vsel %vm228_vm1, %v218_v62, %v179_v0 }
  0x9f   :  { %6158 = vmatprep.mubr.msk.f32.mxu0 %vm264_vm2, %v235_v2 }
  0xa0   :  { %6159 = vmatmul.mubr.msk.f32.gmra.mrb[6].mxu0 %vm264_vm2, %v236_v1 }
  0xa1   :  { %v136_v3 = vpop.permute.xlu1 %135  ;;  %v134_v4 = vpop.permute.xlu0 %133 }
  0xa2   :  { %v221_v5 = vsel %vm211_vm0, %v7423_v20, %v136_v3  ;;  %v220_v6 = vsel %vm211_vm0, %v7428_v21, %v134_v4 }
  0xa5   :  { %v185_v7 = vpop.permute.xlu1 %184  ;;  %v183_v8 = vpop.permute.xlu0 %182 }
  0xa6   :  { %v238_v9 = vsel %vm228_vm1, %v221_v5, %v185_v7  ;;  %v237_v10 = vsel %vm228_vm1, %v220_v6, %v183_v8 }
  0xa7   :  { %6161 = vmatprep.mubr.msk.f32.mxu0 %vm264_vm2, %v237_v10 }
  0xa8   :  { %6162 = vmatmul.mubr.msk.f32.gmra.mrb[8].mxu0 %vm264_vm2, %v238_v9 }
  0xa9   :  { %v140_v11 = vpop.permute.xlu1 %139  ;;  %v138_v12 = vpop.permute.xlu0 %137 }
  0xaa   :  { %v223_v13 = vsel %vm211_vm0, %v7447_v26, %v140_v11  ;;  %v222_v14 = vsel %vm211_vm0, %v7452_v27, %v138_v12 }
  0xad   :  { %v189_v15 = vpop.permute.xlu1 %188  ;;  %v187_v16 = vpop.permute.xlu0 %186 }
  0xae   :  { %v240_v17 = vsel %vm228_vm1, %v223_v13, %v189_v15  ;;  %v239_v18 = vsel %vm228_vm1, %v222_v14, %v187_v16 }
  0xaf   :  { %6164 = vmatprep.mubr.msk.f32.mxu0 %vm264_vm2, %v239_v18 }
  0xb0   :  { %6165 = vmatmul.mubr.msk.f32.gmra.mrb[10].mxu0 %vm264_vm2, %v240_v17 }
  0xb1   :  { %v144_v19 = vpop.permute.xlu1 %143  ;;  %v142_v20 = vpop.permute.xlu0 %141 }
  0xb2   :  { %v225_v21 = vsel %vm211_vm0, %v7465_v28, %v144_v19  ;;  %v224_v22 = vsel %vm211_vm0, %v7470_v29, %v142_v20 }
  0xb5   :  { %v193_v23 = vpop.permute.xlu1 %192  ;;  %v191_v24 = vpop.permute.xlu0 %190 }
  0xb6   :  { %v242_v25 = vsel %vm228_vm1, %v225_v21, %v193_v23  ;;  %v241_v26 = vsel %vm228_vm1, %v224_v22, %v191_v24 }
  0xb7   :  { %6167 = vmatprep.mubr.msk.f32.mxu0 %vm264_vm2, %v241_v26 }
  0xb8   :  { %6168 = vmatmul.mubr.msk.f32.gmra.mrb[12].mxu0 %vm264_vm2, %v242_v25 }
  0xb9   :  { %v146_v27 = vpop.permute.xlu0 %145  ;;  %v148_v32 = vpop.permute.xlu1 %147 }
  0xba   :  { %v227_v33 = vsel %vm211_vm0, %v7483_v30, %v148_v32  ;;  %v226_v28 = vsel %vm211_vm0, %v7488_v31, %v146_v27  ;;  %v635_v30 = vld [vmem:[%s9859_s27 + $0x8] sm:$0xff]  ;;  %s9861_s27 = sld [smem:[#allocation7_spill]] }
  0xbb   :  { %v6597_v31 = vpack.c.bf16 %v635_v30, %v634_v36 }
  0xbd   :  { %v7567_v34 = vpop.permute.xlu0 %194  ;;  %6598 = vmatprep.subr.bf16.mxu1 %v6597_v31 }
  0xbe   :  { %v243_v29 = vsel %vm228_vm1, %v226_v28, %v7567_v34  ;;  %v244_v35 = vsel %vm228_vm1, %v227_v33, %v7567_v34  ;;  %6600 = vmatpush3.bf16.msra.mxu1 %v6597_v31 }
  0xbf   :  { %6170 = vmatprep.mubr.msk.f32.mxu0 %vm264_vm2, %v243_v29  ;;  %6602 = vmatprep.subr.bf16.mxu1 %v6601_v52 }
  0xc0   :  { %6171 = vmatmul.mubr.msk.f32.gmra.mrb[14].mxu0 %vm264_vm2, %v244_v35 }
  0xc2   :  { %6604 = vmatpush3.bf16.msra.mxu1 %v6601_v52 }
 0x15b   :  { %v6151_v38 = vpop.f32.mrb[0].mxu0 }
 0x15c   :  { %v7587_v39 = vadd.f32 %v6151_v38, %v7584_v37  ;;  %v379_v40 = vpop.f32.mrb[1].mxu0 }
 0x15d   :  { %v7590_v41 = vadd.f32 %v7584_v37, %v379_v40 }
 0x15e   :  { %v5623_v42 = vmul.f32 -1.442695, %v7587_v39 }
 0x15f   :  { %v5622_v43 = vmul.f32 -1.442695, %v7590_v41 }
 0x160   :  { %6785 = vpow2.f32 %v5623_v42 }
 0x161   :  { %6787 = vpow2.f32 %v5622_v43 }
 0x163   :  { %v6154_v44 = vpop.f32.mrb[2].mxu0 }
 0x164   :  { %v7595_v45 = vadd.f32 %v6154_v44, %v7584_v37  ;;  %v389_v46 = vpop.f32.mrb[3].mxu0 }
 0x165   :  { %v7598_v47 = vadd.f32 %v7584_v37, %v389_v46 }
 0x166   :  { %v5625_v48 = vmul.f32 -1.442695, %v7595_v45 }
 0x167   :  { %v5624_v49 = vmul.f32 -1.442695, %v7598_v47 }
 0x168   :  { %6789 = vpow2.f32 %v5625_v48 }
 0x169   :  { %6791 = vpow2.f32 %v5624_v49 }
 0x16a   :  { %v6786_v53 = vpop.eup %6785 }
 0x16b   :  { %v6788_v54 = vpop.eup %6787  ;;  %v507_v55 = vadd.f32 1.0, %v6786_v53  ;;  %v6157_v56 = vpop.f32.mrb[4].mxu0 }
 0x16c   :  { %v506_v57 = vadd.f32 1.0, %v6788_v54  ;;  %v7609_v58 = vadd.f32 %v6157_v56, %v7584_v37  ;;  %v399_v59 = vpop.f32.mrb[5].mxu0 }
 0x16d   :  { %6793 = vrcp.f32 %v507_v55  ;;  %v7612_v60 = vadd.f32 %v7584_v37, %v399_v59 }
 0x16e   :  { %6795 = vrcp.f32 %v506_v57  ;;  %v5627_v61 = vmul.f32 -1.442695, %v7609_v58 }
 0x16f   :  { %v5626_v62 = vmul.f32 -1.442695, %v7612_v60 }
 0x170   :  { %6797 = vpow2.f32 %v5627_v61 }
 0x171   :  { %6799 = vpow2.f32 %v5626_v62 }
 0x172   :  { %v6790_v63 = vpop.eup %6789 }
 0x173   :  { %v6792_v0 = vpop.eup %6791  ;;  %v509_v1 = vadd.f32 1.0, %v6790_v63  ;;  %v6160_v2 = vpop.f32.mrb[6].mxu0 }
 0x174   :  { %v508_v3 = vadd.f32 1.0, %v6792_v0  ;;  %v7617_v4 = vadd.f32 %v6160_v2, %v7584_v37  ;;  %v409_v5 = vpop.f32.mrb[7].mxu0 }
 0x175   :  { %6801 = vrcp.f32 %v509_v1  ;;  %v7620_v6 = vadd.f32 %v7584_v37, %v409_v5 }
 0x176   :  { %6803 = vrcp.f32 %v508_v3  ;;  %v5629_v7 = vmul.f32 -1.442695, %v7617_v4 }
 0x177   :  { %v6794_v8 = vpop.eup %6793  ;;  %v5628_v9 = vmul.f32 -1.442695, %v7620_v6 }
 0x178   :  { %v6796_v10 = vpop.eup %6795  ;;  %6805 = vpow2.f32 %v5629_v7  ;;  %572 = vrot.lane.b32.xlu0 %v6794_v8, %s7204_s2 }
 0x179   :  { %6807 = vpow2.f32 %v5628_v9  ;;  %570 = vrot.lane.b32.xlu1 %v6796_v10, %s7204_s2 }
 0x17a   :  { %v6798_v11 = vpop.eup %6797 }
 0x17b   :  { %v6800_v12 = vpop.eup %6799  ;;  %v511_v13 = vadd.f32 1.0, %v6798_v11  ;;  %v6163_v14 = vpop.f32.mrb[8].mxu0 }
 0x17c   :  { %v510_v15 = vadd.f32 1.0, %v6800_v12  ;;  %v7627_v16 = vadd.f32 %v6163_v14, %v7584_v37  ;;  %v419_v17 = vpop.f32.mrb[9].mxu0 }
 0x17d   :  { %6809 = vrcp.f32 %v511_v13  ;;  %v7630_v18 = vadd.f32 %v7584_v37, %v419_v17 }
 0x17e   :  { %6811 = vrcp.f32 %v510_v15  ;;  %v5631_v19 = vmul.f32 -1.442695, %v7627_v16 }
 0x17f   :  { %v6802_v20 = vpop.eup %6801  ;;  %v5630_v21 = vmul.f32 -1.442695, %v7630_v18 }
 0x180   :  { %v6804_v22 = vpop.eup %6803  ;;  %6813 = vpow2.f32 %v5631_v19  ;;  %576 = vrot.lane.b32.xlu0 %v6802_v20, %s7204_s2 }
 0x181   :  { %6815 = vpow2.f32 %v5630_v21  ;;  %574 = vrot.lane.b32.xlu1 %v6804_v22, %s7204_s2 }
 0x182   :  { %v6806_v23 = vpop.eup %6805 }
 0x183   :  { %v6808_v24 = vpop.eup %6807  ;;  %v513_v25 = vadd.f32 1.0, %v6806_v23  ;;  %v6166_v26 = vpop.f32.mrb[10].mxu0 }
 0x184   :  { %v512_v27 = vadd.f32 1.0, %v6808_v24  ;;  %v7637_v32 = vadd.f32 %v6166_v26, %v7584_v37  ;;  %v429_v33 = vpop.f32.mrb[11].mxu0 }
 0x185   :  { %6817 = vrcp.f32 %v513_v25  ;;  %v7640_v28 = vadd.f32 %v7584_v37, %v429_v33 }
 0x186   :  { %6819 = vrcp.f32 %v512_v27  ;;  %v5633_v29 = vmul.f32 -1.442695, %v7637_v32 }
 0x187   :  { %v6810_v35 = vpop.eup %6809  ;;  %v5632_v36 = vmul.f32 -1.442695, %v7640_v28 }
 0x188   :  { %v6812_v30 = vpop.eup %6811  ;;  %6821 = vpow2.f32 %v5633_v29  ;;  %580 = vrot.lane.b32.xlu0 %v6810_v35, %s7204_s2 }
 0x189   :  { %6823 = vpow2.f32 %v5632_v36  ;;  %578 = vrot.lane.b32.xlu1 %v6812_v30, %s7204_s2 }
 0x18a   :  { %v6814_v31 = vpop.eup %6813 }
 0x18b   :  { %v6816_v38 = vpop.eup %6815  ;;  %v515_v40 = vadd.f32 1.0, %v6814_v31  ;;  %v6169_v42 = vpop.f32.mrb[12].mxu0 }
 0x18c   :  { %v514_v43 = vadd.f32 1.0, %v6816_v38  ;;  %v7647_v44 = vadd.f32 %v6169_v42, %v7584_v37  ;;  %v439_v46 = vpop.f32.mrb[13].mxu0 }
 0x18d   :  { %6825 = vrcp.f32 %v515_v40  ;;  %v7650_v48 = vadd.f32 %v7584_v37, %v439_v46 }
 0x18e   :  { %6827 = vrcp.f32 %v514_v43  ;;  %v5635_v49 = vmul.f32 -1.442695, %v7647_v44 }
 0x18f   :  { %v6818_v50 = vpop.eup %6817  ;;  %v5634_v51 = vmul.f32 -1.442695, %v7650_v48 }
 0x190   :  { %v6820_v52 = vpop.eup %6819  ;;  %6829 = vpow2.f32 %v5635_v49  ;;  %584 = vrot.lane.b32.xlu0 %v6818_v50, %s7204_s2 }
 0x191   :  { %6831 = vpow2.f32 %v5634_v51  ;;  %582 = vrot.lane.b32.xlu1 %v6820_v52, %s7204_s2 }
 0x192   :  { %v6822_v53 = vpop.eup %6821 }
 0x193   :  { %v6824_v54 = vpop.eup %6823  ;;  %v517_v55 = vadd.f32 1.0, %v6822_v53  ;;  %v6172_v56 = vpop.f32.mrb[14].mxu0  ;;  %v832_v53 = vld [vmem:[%s9861_s27 + $0x8] sm:$0xff] }
 0x194   :  { %v516_v57 = vadd.f32 1.0, %v6824_v54  ;;  %v7657_v59 = vadd.f32 %v6172_v56, %v7584_v37  ;;  %v449_v61 = vpop.f32.mrb[15].mxu0  ;;  %v833_v54 = vld [vmem:[%s9861_s27 + $0x10] sm:$0xff] }
 0x195   :  { %6833 = vrcp.f32 %v517_v55  ;;  %v7660_v62 = vadd.f32 %v7584_v37, %v449_v61  ;;  %v835_v61 = vld [vmem:[%s9861_s27 + $0x20] sm:$0xff] }
 0x196   :  { %6835 = vrcp.f32 %v516_v57  ;;  %v5637_v63 = vmul.f32 -1.442695, %v7657_v59 }
 0x197   :  { %v6826_v0 = vpop.eup %6825  ;;  %v5636_v1 = vmul.f32 -1.442695, %v7660_v62 }
 0x198   :  { %v6828_v2 = vpop.eup %6827  ;;  %6837 = vpow2.f32 %v5637_v63  ;;  %588 = vrot.lane.b32.xlu0 %v6826_v0, %s7204_s2 }
 0x199   :  { %6839 = vpow2.f32 %v5636_v1  ;;  %586 = vrot.lane.b32.xlu1 %v6828_v2, %s7204_s2  ;;  %v836_v1 = vld [vmem:[%s9861_s27 + $0x28] sm:$0xff]  ;;  %v837_v2 = vld [vmem:[%s9861_s27 + $0x30] sm:$0xff] }
 0x19a   :  { %v6830_v3 = vpop.eup %6829 }
 0x19b   :  { %v6832_v5 = vpop.eup %6831  ;;  %v519_v7 = vadd.f32 1.0, %v6830_v3 }
 0x19c   :  { %v518_v8 = vadd.f32 1.0, %v6832_v5 }
 0x19d   :  { %6841 = vrcp.f32 %v519_v7 }
 0x19e   :  { %6843 = vrcp.f32 %v518_v8  ;;  %v838_v8 = vld [vmem:[%s9861_s27 + $0x38] sm:$0xff] }
 0x19f   :  { %v6834_v37 = vpop.eup %6833 }
 0x1a0   :  { %v6836_v9 = vpop.eup %6835  ;;  %592 = vrot.lane.b32.xlu0 %v6834_v37, %s7204_s2  ;;  %v839_v37 = vld [vmem:[%s9861_s27 + $0x40] sm:$0xff] }
 0x1a1   :  { %590 = vrot.lane.b32.xlu1 %v6836_v9, %s7204_s2 }
 0x1a2   :  { %v6838_v10 = vpop.eup %6837 }
 0x1a3   :  { %v6840_v11 = vpop.eup %6839  ;;  %v521_v12 = vadd.f32 1.0, %v6838_v10 }
 0x1a4   :  { %v520_v13 = vadd.f32 1.0, %v6840_v11 }
 0x1a5   :  { %6845 = vrcp.f32 %v521_v12  ;;  %v840_v12 = vld [vmem:[%s9861_s27 + $0x48] sm:$0xff] }
 0x1a6   :  { %6847 = vrcp.f32 %v520_v13  ;;  %v841_v13 = vld [vmem:[%s9861_s27 + $0x50] sm:$0xff] }
 0x1a7   :  { %v6842_v14 = vpop.eup %6841 }
 0x1a8   :  { %v6844_v15 = vpop.eup %6843  ;;  %596 = vrot.lane.b32.xlu0 %v6842_v14, %s7204_s2 }
 0x1a9   :  { %594 = vrot.lane.b32.xlu1 %v6844_v15, %s7204_s2 }
 0x1af   :  { %v6846_v17 = vpop.eup %6845 }
 0x1b0   :  { %v6848_v19 = vpop.eup %6847  ;;  %600 = vrot.lane.b32.xlu0 %v6846_v17, %s7204_s2 }
 0x1b1   :  { %598 = vrot.lane.b32.xlu1 %v6848_v19, %s7204_s2  ;;  %v842_v19 = vld [vmem:[%s9861_s27 + $0x58] sm:$0xff] }
 0x1ea   :  { %v573_v20 = vpop.permute.xlu0 %572 }
 0x1eb   :  { %v571_v21 = vpop.permute.xlu1 %570  ;;  %v619_v23 = vmul.f32 %v573_v20, %v7587_v39  ;;  %v845_v20 = vld [vmem:[%s9861_s27 + $0x70] sm:$0xff] }
 0x1ec   :  { %v618_v22 = vmul.f32 %v571_v21, %v7590_v41 }
 0x1ee   :  { %6181 = vmatprep.mubr.msk.f32.mxu1 %vm211_vm0, %v618_v22 }
 0x1ef   :  { %6182 = vmatmul.mubr.msk.f32.vlgmr.msra.gmra.mrb[0].mxu1 %vm211_vm0, %v619_v23 }
 0x1f2   :  { %v577_v24 = vpop.permute.xlu0 %576 }
 0x1f3   :  { %v575_v25 = vpop.permute.xlu1 %574  ;;  %v621_v27 = vmul.f32 %v577_v24, %v7595_v45  ;;  %v844_v24 = vld [vmem:[%s9861_s27 + $0x68] sm:$0xff] }
 0x1f4   :  { %v620_v26 = vmul.f32 %v575_v25, %v7598_v47 }
 0x1f6   :  { %6184 = vmatprep.mubr.msk.f32.mxu1 %vm211_vm0, %v620_v26 }
 0x1f7   :  { %6185 = vmatmul.mubr.msk.f32.gmra.mrb[2].mxu1 %vm211_vm0, %v621_v27 }
 0x1fa   :  { %v581_v33 = vpop.permute.xlu0 %580 }
 0x1fb   :  { %v579_v29 = vpop.permute.xlu1 %578  ;;  %v623_v39 = vmul.f32 %v581_v33, %v7609_v58  ;;  %v846_v33 = vld [vmem:[%s9861_s27 + $0x78] sm:$0xff] }
 0x1fc   :  { %v622_v41 = vmul.f32 %v579_v29, %v7612_v60  ;;  %v1657_v29 = vld [vmem:[%s9862_s5] sm:$0xff] }
 0x1fe   :  { %6187 = vmatprep.mubr.msk.f32.mxu1 %vm211_vm0, %v622_v41  ;;  %v1658_v41 = vld [vmem:[%s9862_s5 + $0x8] sm:$0xff] }
 0x1ff   :  { %6188 = vmatmul.mubr.msk.f32.gmra.mrb[4].mxu1 %vm211_vm0, %v623_v39  ;;  %v1659_v39 = vld [vmem:[%s9862_s5 + $0x10] sm:$0xff] }
 0x202   :  { %v585_v35 = vpop.permute.xlu0 %584 }
 0x203   :  { %v583_v36 = vpop.permute.xlu1 %582  ;;  %v625_v45 = vmul.f32 %v585_v35, %v7617_v4  ;;  %v6637_v35 = vpack.c.bf16 %v1658_v41, %v1657_v29 }
 0x204   :  { %v624_v47 = vmul.f32 %v583_v36, %v7620_v6  ;;  %v1660_v36 = vld [vmem:[%s9862_s5 + $0x18] sm:$0xff] }
 0x206   :  { %6190 = vmatprep.mubr.msk.f32.mxu1 %vm211_vm0, %v624_v47  ;;  %v6641_v47 = vpack.c.bf16 %v1660_v36, %v1659_v39 }
 0x207   :  { %6191 = vmatmul.mubr.msk.f32.gmra.mrb[6].mxu1 %vm211_vm0, %v625_v45  ;;  %v1661_v45 = vld [vmem:[%s9862_s5 + $0x20] sm:$0xff] }
 0x20a   :  { %v589_v30 = vpop.permute.xlu0 %588 }
 0x20b   :  { %v587_v31 = vpop.permute.xlu1 %586  ;;  %v627_v58 = vmul.f32 %v589_v30, %v7627_v16  ;;  %v1662_v30 = vld [vmem:[%s9862_s5 + $0x28] sm:$0xff] }
 0x20c   :  { %v626_v60 = vmul.f32 %v587_v31, %v7630_v18  ;;  %v6645_v31 = vpack.c.bf16 %v1662_v30, %v1661_v45 }
 0x20e   :  { %6193 = vmatprep.mubr.msk.f32.mxu1 %vm211_vm0, %v626_v60  ;;  %v1663_v60 = vld [vmem:[%s9862_s5 + $0x30] sm:$0xff] }
 0x20f   :  { %6194 = vmatmul.mubr.msk.f32.gmra.mrb[8].mxu1 %vm211_vm0, %v627_v58  ;;  %v1664_v58 = vld [vmem:[%s9862_s5 + $0x38] sm:$0xff] }
 0x212   :  { %v593_v38 = vpop.permute.xlu0 %592 }
 0x213   :  { %v591_v40 = vpop.permute.xlu1 %590  ;;  %v629_v4 = vmul.f32 %v593_v38, %v7637_v32  ;;  %v6649_v38 = vpack.c.bf16 %v1664_v58, %v1663_v60 }
 0x214   :  { %v628_v6 = vmul.f32 %v591_v40, %v7640_v28  ;;  %v1665_v40 = vld [vmem:[%s9862_s5 + $0x40] sm:$0xff] }
 0x216   :  { %6196 = vmatprep.mubr.msk.f32.mxu1 %vm211_vm0, %v628_v6  ;;  %v1666_v6 = vld [vmem:[%s9862_s5 + $0x48] sm:$0xff] }
 0x217   :  { %6197 = vmatmul.mubr.msk.f32.gmra.mrb[10].mxu1 %vm211_vm0, %v629_v4  ;;  %v6653_v4 = vpack.c.bf16 %v1666_v6, %v1665_v40 }
 0x21a   :  { %v597_v42 = vpop.permute.xlu0 %596 }
 0x21b   :  { %v595_v43 = vpop.permute.xlu1 %594  ;;  %v631_v16 = vmul.f32 %v597_v42, %v7647_v44  ;;  %v843_v44 = vld [vmem:[%s9861_s27 + $0x60] sm:$0xff]  ;;  %v1667_v42 = vld [vmem:[%s9862_s5 + $0x50] sm:$0xff] }
 0x21c   :  { %v630_v18 = vmul.f32 %v595_v43, %v7650_v48  ;;  %v831_v48 = vld [vmem:[%s9861_s27] sm:$0xff]  ;;  %6251 = vmatprep.mubr.msk.f32.mxu0 %vm847_vm3, %v843_v44  ;;  %v1668_v43 = vld [vmem:[%s9862_s5 + $0x58] sm:$0xff] }
 0x21e   :  { %6199 = vmatprep.mubr.msk.f32.mxu1 %vm211_vm0, %v630_v18  ;;  %v6657_v18 = vpack.c.bf16 %v1668_v43, %v1667_v42 }
 0x21f   :  { %6200 = vmatmul.mubr.msk.f32.gmra.mrb[12].mxu1 %vm211_vm0, %v631_v16  ;;  %v5670_v16 = vld [vmem:[%s9863_s8] ss:$0 sm:$0xff]  ;;  %s9866_s8 = sld [smem:[#allocation12_spill]] }
 0x222   :  { %v601_v46 = vpop.permute.xlu0 %600 }
 0x223   :  { %v599_v49 = vpop.permute.xlu1 %598  ;;  %v633_v32 = vmul.f32 %v601_v46, %v7657_v59  ;;  %v834_v59 = vld [vmem:[%s9861_s27 + $0x18] sm:$0xff] }
 0x224   :  { %v632_v28 = vmul.f32 %v599_v49, %v7660_v62 }
 0x226   :  { %6202 = vmatprep.mubr.msk.f32.mxu1 %vm211_vm0, %v632_v28 }
 0x227   :  { %6203 = vmatmul.mubr.msk.f32.gmra.mrb[14].mxu1 %vm211_vm0, %v633_v32 }
 0x228   :  { %6209 = vmatprep.mubr.msk.f32.mxu1 %vm847_vm3, %v831_v48 }
 0x2c2   :  { %v6183_v50 = vpop.f32.mrb[0].mxu1 }
 0x2c3   :  { %v752_v51 = vpop.f32.mrb[1].mxu1 }
 0x2c4   :  { %v6605_v52 = vpack.c.bf16 %v6183_v50, %v752_v51 }
 0x2c6   :  { %6606 = vmatprep.subr.bf16.mxu1 %v6605_v52 }
 0x2c7   :  { %6608 = vmatpush3.bf16.msra.mxu1 %v6605_v52 }
 0x2ca   :  { %v6186_v55 = vpop.f32.mrb[2].mxu1  ;;  %6210 = vmatmul.mubr.msk.f32.vlgmr.msra.gmra.mrb[16].mxu1 %vm847_vm3, %v832_v53 }
 0x2cb   :  { %v762_v56 = vpop.f32.mrb[3].mxu1  ;;  %6216 = vmatprep.mubr.msk.f32.mxu1 %vm847_vm3, %v833_v54 }
 0x2cc   :  { %v6609_v57 = vpack.c.bf16 %v6186_v55, %v762_v56 }
 0x2ce   :  { %6610 = vmatprep.subr.bf16.mxu1 %v6609_v57 }
 0x2cf   :  { %6612 = vmatpush3.bf16.msra.mxu1 %v6609_v57 }
 0x2d2   :  { %v6189_v62 = vpop.f32.mrb[4].mxu1  ;;  %6217 = vmatmul.mubr.msk.f32.vlgmr.msra.gmra.mrb[18].mxu1 %vm847_vm3, %v834_v59 }
 0x2d3   :  { %v772_v63 = vpop.f32.mrb[5].mxu1  ;;  %6223 = vmatprep.mubr.msk.f32.mxu1 %vm847_vm3, %v835_v61 }
 0x2d4   :  { %v6613_v0 = vpack.c.bf16 %v6189_v62, %v772_v63 }
 0x2d6   :  { %6614 = vmatprep.subr.bf16.mxu1 %v6613_v0 }
 0x2d7   :  { %6616 = vmatpush3.bf16.msra.mxu1 %v6613_v0 }
 0x2da   :  { %v6192_v3 = vpop.f32.mrb[6].mxu1  ;;  %6224 = vmatmul.mubr.msk.f32.vlgmr.msra.gmra.mrb[20].mxu1 %vm847_vm3, %v836_v1 }
 0x2db   :  { %v782_v5 = vpop.f32.mrb[7].mxu1  ;;  %6230 = vmatprep.mubr.msk.f32.mxu1 %vm847_vm3, %v837_v2 }
 0x2dc   :  { %v6617_v7 = vpack.c.bf16 %v6192_v3, %v782_v5 }
 0x2de   :  { %6618 = vmatprep.subr.bf16.mxu1 %v6617_v7 }
 0x2df   :  { %6620 = vmatpush3.bf16.msra.mxu1 %v6617_v7 }
 0x2e2   :  { %v6195_v9 = vpop.f32.mrb[8].mxu1  ;;  %6231 = vmatmul.mubr.msk.f32.vlgmr.msra.gmra.mrb[22].mxu1 %vm847_vm3, %v838_v8 }
 0x2e3   :  { %v792_v10 = vpop.f32.mrb[9].mxu1  ;;  %6237 = vmatprep.mubr.msk.f32.mxu1 %vm847_vm3, %v839_v37 }
 0x2e4   :  { %v6621_v11 = vpack.c.bf16 %v6195_v9, %v792_v10 }
 0x2e6   :  { %6622 = vmatprep.subr.bf16.mxu1 %v6621_v11 }
 0x2e7   :  { %6624 = vmatpush3.bf16.msra.mxu1 %v6621_v11 }
 0x2ea   :  { %v6198_v14 = vpop.f32.mrb[10].mxu1  ;;  %6238 = vmatmul.mubr.msk.f32.vlgmr.msra.gmra.mrb[24].mxu1 %vm847_vm3, %v840_v12 }
 0x2eb   :  { %v802_v15 = vpop.f32.mrb[11].mxu1  ;;  %6244 = vmatprep.mubr.msk.f32.mxu1 %vm847_vm3, %v841_v13 }
 0x2ec   :  { %v6625_v17 = vpack.c.bf16 %v6198_v14, %v802_v15 }
 0x2ee   :  { %6626 = vmatprep.subr.bf16.mxu1 %v6625_v17 }
 0x2ef   :  { %6628 = vmatpush3.bf16.msra.mxu1 %v6625_v17 }
 0x2f2   :  { %v6201_v21 = vpop.f32.mrb[12].mxu1  ;;  %6245 = vmatmul.mubr.msk.f32.vlgmr.msra.gmra.mrb[26].mxu1 %vm847_vm3, %v842_v19 }
 0x2f3   :  { %v812_v22 = vpop.f32.mrb[13].mxu1  ;;  %6258 = vmatprep.mubr.msk.f32.mxu1 %vm847_vm3, %v845_v20 }
 0x2f4   :  { %v6629_v23 = vpack.c.bf16 %v6201_v21, %v812_v22 }
 0x2f6   :  { %6630 = vmatprep.subr.bf16.mxu0 %v6629_v23 }
 0x2f7   :  { %6632 = vmatpush3.bf16.msra.mxu0 %v6629_v23 }
 0x2f8   :  { %6638 = vmatprep.subr.bf16.mxu0 %v6637_v35 }
 0x2fa   :  { %v6204_v25 = vpop.f32.mrb[14].mxu1  ;;  %6252 = vmatmul.mubr.msk.f32.vlgmr.msra.gmra.mrb[16].mxu0 %vm847_vm3, %v844_v24 }
 0x2fb   :  { %v822_v26 = vpop.f32.mrb[15].mxu1  ;;  %6640 = vmatpush3.bf16.msra.mxu0 %v6637_v35 }
 0x2fc   :  { %v6633_v27 = vpack.c.bf16 %v6204_v25, %v822_v26  ;;  %6642 = vmatprep.subr.bf16.mxu0 %v6641_v47 }
 0x2fe   :  { %6634 = vmatprep.subr.bf16.mxu1 %v6633_v27 }
 0x2ff   :  { %6636 = vmatpush3.bf16.msra.mxu1 %v6633_v27  ;;  %6644 = vmatpush3.bf16.msra.mxu0 %v6641_v47 }
 0x300   :  { %6646 = vmatprep.subr.bf16.mxu0 %v6645_v31 }
 0x302   :  { %6259 = vmatmul.mubr.msk.f32.vlgmr.msra.gmra.mrb[28].mxu1 %vm847_vm3, %v846_v33 }
 0x303   :  { %6648 = vmatpush3.bf16.msra.mxu0 %v6645_v31 }
 0x304   :  { %6650 = vmatprep.subr.bf16.mxu0 %v6649_v38 }
 0x307   :  { %6652 = vmatpush3.bf16.msra.mxu0 %v6649_v38 }
 0x308   :  { %6654 = vmatprep.subr.bf16.mxu0 %v6653_v4 }
 0x30b   :  { %6656 = vmatpush3.bf16.msra.mxu0 %v6653_v4 }
 0x30c   :  { %6658 = vmatprep.subr.bf16.mxu0 %v6657_v18 }
 0x30f   :  { %6660 = vmatpush3.bf16.msra.mxu0 %v6657_v18 }
 0x39d   :  { %v6211_v46 = vpop.f32.mrb[16].mxu1 }
 0x39e   :  { %v7807_v49 = vadd.f32 %v6211_v46, %v5670_v16  ;;  %v920_v28 = vpop.f32.mrb[17].mxu1 }
 0x39f   :  { %v7809_v32 = vadd.f32 %v5670_v16, %v920_v28 }
 0x3a0   :  { %1537 = vrot.lane.b32.xlu0 %v7807_v49, %s7202_s29 }
 0x3a1   :  { %1535 = vrot.lane.b32.xlu1 %v7809_v32, %s7202_s29 }
 0x3a5   :  { %v6218_v48 = vpop.f32.mrb[18].mxu1 }
 0x3a6   :  { %v7815_v44 = vadd.f32 %v6218_v48, %v5670_v16  ;;  %v1001_v50 = vpop.f32.mrb[19].mxu1 }
 0x3a7   :  { %v7817_v51 = vadd.f32 %v5670_v16, %v1001_v50 }
 0x3a8   :  { %1585 = vrot.lane.b32.xlu0 %v7815_v44, %s7201_s1 }
 0x3a9   :  { %1583 = vrot.lane.b32.xlu1 %v7817_v51, %s7201_s1 }
 0x3ac   :  { %1541 = vrot.lane.b32.xlu0 %v7815_v44, %s7202_s29 }
 0x3ad   :  { %1539 = vrot.lane.b32.xlu1 %v7817_v51, %s7202_s29  ;;  %v6225_v52 = vpop.f32.mrb[20].mxu1 }
 0x3ae   :  { %v7827_v53 = vadd.f32 %v6225_v52, %v5670_v16  ;;  %v1082_v54 = vpop.f32.mrb[21].mxu1 }
 0x3af   :  { %v7829_v55 = vadd.f32 %v5670_v16, %v1082_v54 }
 0x3b0   :  { %1589 = vrot.lane.b32.xlu0 %v7827_v53, %s7201_s1 }
 0x3b1   :  { %1587 = vrot.lane.b32.xlu1 %v7829_v55, %s7201_s1 }
 0x3b4   :  { %1545 = vrot.lane.b32.xlu0 %v7827_v53, %s7202_s29 }
 0x3b5   :  { %1543 = vrot.lane.b32.xlu1 %v7829_v55, %s7202_s29  ;;  %v6232_v56 = vpop.f32.mrb[22].mxu1 }
 0x3b6   :  { %v7839_v57 = vadd.f32 %v6232_v56, %v5670_v16  ;;  %v1163_v59 = vpop.f32.mrb[23].mxu1 }
 0x3b7   :  { %v7841_v61 = vadd.f32 %v5670_v16, %v1163_v59 }
 0x3b8   :  { %1593 = vrot.lane.b32.xlu0 %v7839_v57, %s7201_s1 }
 0x3b9   :  { %1591 = vrot.lane.b32.xlu1 %v7841_v61, %s7201_s1 }
 0x3bc   :  { %1549 = vrot.lane.b32.xlu0 %v7839_v57, %s7202_s29 }
 0x3bd   :  { %1547 = vrot.lane.b32.xlu1 %v7841_v61, %s7202_s29  ;;  %v6239_v62 = vpop.f32.mrb[24].mxu1 }
 0x3be   :  { %v7851_v63 = vadd.f32 %v6239_v62, %v5670_v16  ;;  %v1244_v0 = vpop.f32.mrb[25].mxu1 }
 0x3bf   :  { %v7853_v1 = vadd.f32 %v5670_v16, %v1244_v0 }
 0x3c0   :  { %1597 = vrot.lane.b32.xlu0 %v7851_v63, %s7201_s1 }
 0x3c1   :  { %1595 = vrot.lane.b32.xlu1 %v7853_v1, %s7201_s1 }
 0x3c4   :  { %1553 = vrot.lane.b32.xlu0 %v7851_v63, %s7202_s29 }
 0x3c5   :  { %1551 = vrot.lane.b32.xlu1 %v7853_v1, %s7202_s29  ;;  %v6246_v2 = vpop.f32.mrb[26].mxu1 }
 0x3c6   :  { %v7863_v3 = vadd.f32 %v6246_v2, %v5670_v16  ;;  %v1325_v5 = vpop.f32.mrb[27].mxu1 }
 0x3c7   :  { %v7865_v7 = vadd.f32 %v5670_v16, %v1325_v5 }
 0x3c8   :  { %1601 = vrot.lane.b32.xlu0 %v7863_v3, %s7201_s1 }
 0x3c9   :  { %1599 = vrot.lane.b32.xlu1 %v7865_v7, %s7201_s1 }
 0x3cc   :  { %1557 = vrot.lane.b32.xlu0 %v7863_v3, %s7202_s29 }
 0x3cd   :  { %v6253_v8 = vpop.f32.mrb[16].mxu0  ;;  %1555 = vrot.lane.b32.xlu1 %v7865_v7, %s7202_s29 }
 0x3ce   :  { %v7875_v37 = vadd.f32 %v6253_v8, %v5670_v16  ;;  %v1406_v9 = vpop.f32.mrb[17].mxu0 }
 0x3cf   :  { %v7877_v10 = vadd.f32 %v5670_v16, %v1406_v9 }
 0x3d0   :  { %1605 = vrot.lane.b32.xlu0 %v7875_v37, %s7201_s1 }
 0x3d1   :  { %1603 = vrot.lane.b32.xlu1 %v7877_v10, %s7201_s1 }
 0x3d4   :  { %1561 = vrot.lane.b32.xlu0 %v7875_v37, %s7202_s29 }
 0x3d5   :  { %1559 = vrot.lane.b32.xlu1 %v7877_v10, %s7202_s29  ;;  %v6260_v11 = vpop.f32.mrb[28].mxu1 }
 0x3d6   :  { %v1518_v12 = vadd.f32 %v6260_v11, %v5670_v16  ;;  %v1487_v13 = vpop.f32.mrb[29].mxu1 }
 0x3d7   :  { %v1517_v14 = vadd.f32 %v5670_v16, %v1487_v13 }
 0x3d8   :  { %1609 = vrot.lane.b32.xlu0 %v1518_v12, %s7201_s1 }
 0x3d9   :  { %1607 = vrot.lane.b32.xlu1 %v1517_v14, %s7201_s1 }
 0x3dc   :  { %1565 = vrot.lane.b32.xlu0 %v1518_v12, %s7202_s29 }
 0x3dd   :  { %1563 = vrot.lane.b32.xlu1 %v1517_v14, %s7202_s29 }
 0x412   :  { %v1538_v15 = vpop.permute.xlu0 %1537 }
 0x413   :  { %v1536_v17 = vpop.permute.xlu1 %1535  ;;  %v1626_v22 = vsel %vm211_vm0, 0.0, %v1538_v15 }
 0x414   :  { %v1625_v20 = vsel %vm211_vm0, 0.0, %v1536_v17  ;;  %v7958_v17 = vld [vmem:[%s9864_s4] ss:$0 sm:$0xff] }
 0x41a   :  { %v1586_v19 = vpop.permute.xlu0 %1585 }
 0x41b   :  { %v1584_v21 = vpop.permute.xlu1 %1583  ;;  %v1642_v24 = vsel %vm228_vm1, %v1626_v22, %v1586_v19 }
 0x41c   :  { %v1641_v23 = vsel %vm228_vm1, %v1625_v20, %v1584_v21 }
 0x41d   :  { %6285 = vmatprep.mubr.msk.f32.mxu0 %vm264_vm2, %v1641_v23 }
 0x41e   :  { %v1542_v25 = vpop.permute.xlu0 %1541  ;;  %6286 = vmatmul.mubr.msk.f32.vlgmr.msra.gmra.mrb[18].mxu0 %vm264_vm2, %v1642_v24 }
 0x41f   :  { %v1540_v26 = vpop.permute.xlu1 %1539  ;;  %v1628_v41 = vsel %vm211_vm0, %v7807_v49, %v1542_v25 }
 0x420   :  { %v1627_v33 = vsel %vm211_vm0, %v7809_v32, %v1540_v26 }
 0x422   :  { %v1590_v27 = vpop.permute.xlu0 %1589 }
 0x423   :  { %v1588_v29 = vpop.permute.xlu1 %1587  ;;  %v1644_v35 = vsel %vm228_vm1, %v1628_v41, %v1590_v27 }
 0x424   :  { %v1643_v39 = vsel %vm228_vm1, %v1627_v33, %v1588_v29 }
 0x425   :  { %6288 = vmatprep.mubr.msk.f32.mxu0 %vm264_vm2, %v1643_v39 }
 0x426   :  { %v1546_v36 = vpop.permute.xlu0 %1545  ;;  %6289 = vmatmul.mubr.msk.f32.gmra.mrb[20].mxu0 %vm264_vm2, %v1644_v35 }
 0x427   :  { %v1544_v47 = vpop.permute.xlu1 %1543  ;;  %v1630_v60 = vsel %vm211_vm0, %v7815_v44, %v1546_v36 }
 0x428   :  { %v1629_v30 = vsel %vm211_vm0, %v7817_v51, %v1544_v47 }
 0x42a   :  { %v1594_v45 = vpop.permute.xlu0 %1593 }
 0x42b   :  { %v1592_v31 = vpop.permute.xlu1 %1591  ;;  %v1646_v38 = vsel %vm228_vm1, %v1630_v60, %v1594_v45 }
 0x42c   :  { %v1645_v58 = vsel %vm228_vm1, %v1629_v30, %v1592_v31 }
 0x42d   :  { %6291 = vmatprep.mubr.msk.f32.mxu0 %vm264_vm2, %v1645_v58 }
 0x42e   :  { %v1550_v40 = vpop.permute.xlu0 %1549  ;;  %6292 = vmatmul.mubr.msk.f32.gmra.mrb[22].mxu0 %vm264_vm2, %v1646_v38 }
 0x42f   :  { %v1548_v6 = vpop.permute.xlu1 %1547  ;;  %v1632_v18 = vsel %vm211_vm0, %v7827_v53, %v1550_v40 }
 0x430   :  { %v1631_v42 = vsel %vm211_vm0, %v7829_v55, %v1548_v6 }
 0x432   :  { %v1598_v4 = vpop.permute.xlu0 %1597 }
 0x433   :  { %v1596_v43 = vpop.permute.xlu1 %1595  ;;  %v1648_v46 = vsel %vm228_vm1, %v1632_v18, %v1598_v4 }
 0x434   :  { %v1647_v16 = vsel %vm228_vm1, %v1631_v42, %v1596_v43 }
 0x435   :  { %6294 = vmatprep.mubr.msk.f32.mxu0 %vm264_vm2, %v1647_v16 }
 0x436   :  { %v1554_v49 = vpop.permute.xlu0 %1553  ;;  %6295 = vmatmul.mubr.msk.f32.gmra.mrb[24].mxu0 %vm264_vm2, %v1648_v46 }
 0x437   :  { %v1552_v28 = vpop.permute.xlu1 %1551  ;;  %v1634_v50 = vsel %vm211_vm0, %v7839_v57, %v1554_v49 }
 0x438   :  { %v1633_v48 = vsel %vm211_vm0, %v7841_v61, %v1552_v28 }
 0x43a   :  { %v1602_v32 = vpop.permute.xlu0 %1601 }
 0x43b   :  { %v1600_v44 = vpop.permute.xlu1 %1599  ;;  %v1650_v52 = vsel %vm228_vm1, %v1634_v50, %v1602_v32 }
 0x43c   :  { %v1649_v51 = vsel %vm228_vm1, %v1633_v48, %v1600_v44 }
 0x43d   :  { %6297 = vmatprep.mubr.msk.f32.mxu0 %vm264_vm2, %v1649_v51 }
 0x43e   :  { %v1558_v53 = vpop.permute.xlu0 %1557  ;;  %6298 = vmatmul.mubr.msk.f32.gmra.mrb[26].mxu0 %vm264_vm2, %v1650_v52 }
 0x43f   :  { %v1556_v54 = vpop.permute.xlu1 %1555  ;;  %v1636_v61 = vsel %vm211_vm0, %v7851_v63, %v1558_v53 }
 0x440   :  { %v1635_v56 = vsel %vm211_vm0, %v7853_v1, %v1556_v54 }
 0x442   :  { %v1606_v55 = vpop.permute.xlu0 %1605 }
 0x443   :  { %v1604_v59 = vpop.permute.xlu1 %1603  ;;  %v1652_v62 = vsel %vm228_vm1, %v1636_v61, %v1606_v55 }
 0x444   :  { %v1651_v57 = vsel %vm228_vm1, %v1635_v56, %v1604_v59 }
 0x445   :  { %6300 = vmatprep.mubr.msk.f32.mxu0 %vm264_vm2, %v1651_v57 }
 0x446   :  { %v1562_v0 = vpop.permute.xlu0 %1561  ;;  %6301 = vmatmul.mubr.msk.f32.gmra.mrb[28].mxu0 %vm264_vm2, %v1652_v62 }
 0x447   :  { %v1560_v2 = vpop.permute.xlu1 %1559  ;;  %v1638_v1 = vsel %vm211_vm0, %v7863_v3, %v1562_v0 }
 0x448   :  { %v1637_v8 = vsel %vm211_vm0, %v7865_v7, %v1560_v2 }
 0x44a   :  { %v1610_v5 = vpop.permute.xlu0 %1609 }
 0x44b   :  { %v1608_v9 = vpop.permute.xlu1 %1607  ;;  %v1654_v11 = vsel %vm228_vm1, %v1638_v1, %v1610_v5 }
 0x44c   :  { %v1653_v63 = vsel %vm228_vm1, %v1637_v8, %v1608_v9 }
 0x44d   :  { %6303 = vmatprep.mubr.msk.f32.mxu0 %vm264_vm2, %v1653_v63 }
 0x44e   :  { %v1566_v12 = vpop.permute.xlu0 %1565  ;;  %6304 = vmatmul.mubr.msk.f32.gmra.mrb[30].mxu0 %vm264_vm2, %v1654_v11 }
 0x44f   :  { %v1640_v13 = vsel %vm211_vm0, %v7875_v37, %v1566_v12  ;;  %v1564_v14 = vpop.permute.xlu1 %1563 }
 0x450   :  { %v1639_v7 = vsel %vm211_vm0, %v7877_v10, %v1564_v14  ;;  %v1656_v3 = vsel %vm228_vm1, %v1640_v13, %v7567_v34 }
 0x451   :  { %v1655_v15 = vsel %vm228_vm1, %v1639_v7, %v7567_v34 }
 0x452   :  { %6306 = vmatprep.mubr.msk.f32.mxu0 %vm264_vm2, %v1655_v15 }
 0x453   :  { %6307 = vmatmul.mubr.msk.f32.gmra.mrb[32].mxu0 %vm264_vm2, %v1656_v3 }
 0x4f1   :  { %v6287_v37 = vpop.f32.mrb[18].mxu0 }
 0x4f2   :  { %v7961_v19 = vadd.f32 %v6287_v37, %v7958_v17  ;;  %v1790_v10 = vpop.f32.mrb[19].mxu0 }
 0x4f3   :  { %v7964_v20 = vadd.f32 %v7958_v17, %v1790_v10 }
 0x4f4   :  { %v5689_v21 = vmul.f32 -1.442695, %v7961_v19 }
 0x4f5   :  { %v5688_v22 = vmul.f32 -1.442695, %v7964_v20 }
 0x4f6   :  { %6849 = vpow2.f32 %v5689_v21 }
 0x4f7   :  { %6851 = vpow2.f32 %v5688_v22 }
 0x4f9   :  { %v6290_v23 = vpop.f32.mrb[20].mxu0 }
 0x4fa   :  { %v7969_v24 = vadd.f32 %v6290_v23, %v7958_v17  ;;  %v1800_v25 = vpop.f32.mrb[21].mxu0 }
 0x4fb   :  { %v7972_v26 = vadd.f32 %v7958_v17, %v1800_v25 }
 0x4fc   :  { %v5691_v27 = vmul.f32 -1.442695, %v7969_v24 }
 0x4fd   :  { %v5690_v33 = vmul.f32 -1.442695, %v7972_v26 }
 0x4fe   :  { %6853 = vpow2.f32 %v5691_v27 }
 0x4ff   :  { %6855 = vpow2.f32 %v5690_v33 }
 0x500   :  { %v6850_v29 = vpop.eup %6849 }
 0x501   :  { %v6852_v41 = vpop.eup %6851  ;;  %v1918_v39 = vadd.f32 1.0, %v6850_v29  ;;  %v6293_v35 = vpop.f32.mrb[22].mxu0 }
 0x502   :  { %v1917_v36 = vadd.f32 1.0, %v6852_v41  ;;  %v7977_v47 = vadd.f32 %v6293_v35, %v7958_v17  ;;  %v1810_v45 = vpop.f32.mrb[23].mxu0 }
 0x503   :  { %6857 = vrcp.f32 %v1918_v39  ;;  %v7980_v30 = vadd.f32 %v7958_v17, %v1810_v45 }
 0x504   :  { %6859 = vrcp.f32 %v1917_v36  ;;  %v5693_v31 = vmul.f32 -1.442695, %v7977_v47 }
 0x505   :  { %v5692_v60 = vmul.f32 -1.442695, %v7980_v30 }
 0x506   :  { %6861 = vpow2.f32 %v5693_v31 }
 0x507   :  { %6863 = vpow2.f32 %v5692_v60 }
 0x508   :  { %v6854_v58 = vpop.eup %6853 }
 0x509   :  { %v6856_v38 = vpop.eup %6855  ;;  %v1920_v40 = vadd.f32 1.0, %v6854_v58  ;;  %v6296_v6 = vpop.f32.mrb[24].mxu0 }
 0x50a   :  { %v1919_v4 = vadd.f32 1.0, %v6856_v38  ;;  %v7985_v42 = vadd.f32 %v6296_v6, %v7958_v17  ;;  %v1820_v43 = vpop.f32.mrb[25].mxu0 }
 0x50b   :  { %6865 = vrcp.f32 %v1920_v40  ;;  %v7988_v18 = vadd.f32 %v7958_v17, %v1820_v43 }
 0x50c   :  { %6867 = vrcp.f32 %v1919_v4  ;;  %v5695_v16 = vmul.f32 -1.442695, %v7985_v42 }
 0x50d   :  { %v6858_v46 = vpop.eup %6857  ;;  %v5694_v49 = vmul.f32 -1.442695, %v7988_v18 }
 0x50e   :  { %v6860_v28 = vpop.eup %6859  ;;  %6869 = vpow2.f32 %v5695_v16  ;;  %1983 = vrot.lane.b32.xlu0 %v6858_v46, %s7204_s2 }
 0x50f   :  { %6871 = vpow2.f32 %v5694_v49  ;;  %1981 = vrot.lane.b32.xlu1 %v6860_v28, %s7204_s2 }
 0x510   :  { %v6862_v32 = vpop.eup %6861 }
 0x511   :  { %v6864_v48 = vpop.eup %6863  ;;  %v1922_v44 = vadd.f32 1.0, %v6862_v32  ;;  %v6299_v50 = vpop.f32.mrb[26].mxu0 }
 0x512   :  { %v1921_v51 = vadd.f32 1.0, %v6864_v48  ;;  %v7995_v52 = vadd.f32 %v6299_v50, %v7958_v17  ;;  %v1830_v53 = vpop.f32.mrb[27].mxu0 }
 0x513   :  { %6873 = vrcp.f32 %v1922_v44  ;;  %v7998_v54 = vadd.f32 %v7958_v17, %v1830_v53 }
 0x514   :  { %6875 = vrcp.f32 %v1921_v51  ;;  %v5697_v55 = vmul.f32 -1.442695, %v7995_v52 }
 0x515   :  { %v6866_v56 = vpop.eup %6865  ;;  %v5696_v59 = vmul.f32 -1.442695, %v7998_v54 }
 0x516   :  { %v6868_v61 = vpop.eup %6867  ;;  %6877 = vpow2.f32 %v5697_v55  ;;  %1987 = vrot.lane.b32.xlu0 %v6866_v56, %s7204_s2 }
 0x517   :  { %6879 = vpow2.f32 %v5696_v59  ;;  %1985 = vrot.lane.b32.xlu1 %v6868_v61, %s7204_s2 }
 0x518   :  { %v6870_v57 = vpop.eup %6869 }
 0x519   :  { %v6872_v62 = vpop.eup %6871  ;;  %v1924_v0 = vadd.f32 1.0, %v6870_v57  ;;  %v6302_v2 = vpop.f32.mrb[28].mxu0 }
 0x51a   :  { %v1923_v5 = vadd.f32 1.0, %v6872_v62  ;;  %v8005_v8 = vadd.f32 %v6302_v2, %v7958_v17  ;;  %v1840_v9 = vpop.f32.mrb[29].mxu0 }
 0x51b   :  { %6881 = vrcp.f32 %v1924_v0  ;;  %v8008_v1 = vadd.f32 %v7958_v17, %v1840_v9 }
 0x51c   :  { %6883 = vrcp.f32 %v1923_v5  ;;  %v5699_v63 = vmul.f32 -1.442695, %v8005_v8 }
 0x51d   :  { %v6874_v11 = vpop.eup %6873  ;;  %v5698_v12 = vmul.f32 -1.442695, %v8008_v1 }
 0x51e   :  { %v6876_v13 = vpop.eup %6875  ;;  %6885 = vpow2.f32 %v5699_v63  ;;  %1991 = vrot.lane.b32.xlu0 %v6874_v11, %s7204_s2 }
 0x51f   :  { %6887 = vpow2.f32 %v5698_v12  ;;  %1989 = vrot.lane.b32.xlu1 %v6876_v13, %s7204_s2 }
 0x520   :  { %v6878_v14 = vpop.eup %6877 }
 0x521   :  { %v6880_v7 = vpop.eup %6879  ;;  %v1926_v15 = vadd.f32 1.0, %v6878_v14  ;;  %v6305_v3 = vpop.f32.mrb[30].mxu0 }
 0x522   :  { %v1925_v37 = vadd.f32 1.0, %v6880_v7  ;;  %v8015_v10 = vadd.f32 %v6305_v3, %v7958_v17  ;;  %v1850_v21 = vpop.f32.mrb[31].mxu0 }
 0x523   :  { %6889 = vrcp.f32 %v1926_v15  ;;  %v8018_v22 = vadd.f32 %v7958_v17, %v1850_v21 }
 0x524   :  { %6891 = vrcp.f32 %v1925_v37  ;;  %v5701_v23 = vmul.f32 -1.442695, %v8015_v10 }
 0x525   :  { %v6882_v25 = vpop.eup %6881  ;;  %v5700_v27 = vmul.f32 -1.442695, %v8018_v22 }
 0x526   :  { %v6884_v33 = vpop.eup %6883  ;;  %6893 = vpow2.f32 %v5701_v23  ;;  %1995 = vrot.lane.b32.xlu0 %v6882_v25, %s7204_s2  ;;  %v6308_v29 = vpop.f32.mrb[32].mxu0 }
 0x527   :  { %6895 = vpow2.f32 %v5700_v27  ;;  %v8024_v41 = vadd.f32 %v6308_v29, %v7958_v17  ;;  %1993 = vrot.lane.b32.xlu1 %v6884_v33, %s7204_s2  ;;  %v1860_v39 = vpop.f32.mrb[33].mxu0 }
 0x528   :  { %v6886_v35 = vpop.eup %6885  ;;  %v8028_v36 = vadd.f32 %v7958_v17, %v1860_v39 }
 0x529   :  { %v6888_v45 = vpop.eup %6887  ;;  %v1928_v31 = vadd.f32 1.0, %v6886_v35  ;;  %v5703_v60 = vmul.f32 -1.442695, %v8024_v41 }
 0x52a   :  { %v1927_v58 = vadd.f32 1.0, %v6888_v45  ;;  %v5702_v38 = vmul.f32 -1.442695, %v8028_v36 }
 0x52b   :  { %6897 = vrcp.f32 %v1928_v31 }
 0x52c   :  { %6899 = vrcp.f32 %v1927_v58 }
 0x52d   :  { %v6890_v40 = vpop.eup %6889  ;;  %6901 = vpow2.f32 %v5703_v60 }
 0x52e   :  { %v6892_v6 = vpop.eup %6891  ;;  %6903 = vpow2.f32 %v5702_v38  ;;  %1999 = vrot.lane.b32.xlu0 %v6890_v40, %s7204_s2 }
 0x52f   :  { %1997 = vrot.lane.b32.xlu1 %v6892_v6, %s7204_s2 }
 0x530   :  { %v6894_v4 = vpop.eup %6893 }
 0x531   :  { %v6896_v17 = vpop.eup %6895  ;;  %v1930_v43 = vadd.f32 1.0, %v6894_v4 }
 0x532   :  { %v1929_v16 = vadd.f32 1.0, %v6896_v17 }
 0x533   :  { %6905 = vrcp.f32 %v1930_v43 }
 0x534   :  { %6907 = vrcp.f32 %v1929_v16 }
 0x535   :  { %v6898_v46 = vpop.eup %6897 }
 0x536   :  { %v6900_v49 = vpop.eup %6899  ;;  %2003 = vrot.lane.b32.xlu0 %v6898_v46, %s7204_s2 }
 0x537   :  { %v6902_v28 = vpop.eup %6901  ;;  %2001 = vrot.lane.b32.xlu1 %v6900_v49, %s7204_s2 }
 0x538   :  { %v6904_v32 = vpop.eup %6903  ;;  %v1932_v48 = vadd.f32 1.0, %v6902_v28 }
 0x539   :  { %v1931_v44 = vadd.f32 1.0, %v6904_v32 }
 0x53a   :  { %6909 = vrcp.f32 %v1932_v48 }
 0x53b   :  { %6911 = vrcp.f32 %v1931_v44 }
 0x53d   :  { %v6906_v50 = vpop.eup %6905 }
 0x53e   :  { %v6908_v51 = vpop.eup %6907  ;;  %2007 = vrot.lane.b32.xlu0 %v6906_v50, %s7204_s2 }
 0x53f   :  { %2005 = vrot.lane.b32.xlu1 %v6908_v51, %s7204_s2 }
 0x544   :  { %v6910_v53 = vpop.eup %6909 }
 0x545   :  { %v6912_v55 = vpop.eup %6911  ;;  %2011 = vrot.lane.b32.xlu0 %v6910_v53, %s7204_s2 }
 0x546   :  { %2009 = vrot.lane.b32.xlu1 %v6912_v55, %s7204_s2 }
 0x580   :  { %v1984_v56 = vpop.permute.xlu0 %1983 }
 0x581   :  { %v8041_v59 = vmul.f32 %v1984_v56, %v7961_v19  ;;  %v1982_v61 = vpop.permute.xlu1 %1981 }
 0x582   :  { %v8044_v57 = vmul.f32 %v1982_v61, %v7964_v20 }
 0x583   :  { %v2048_v62 = vsel %vm211_vm0, %v8041_v59, 0.0 }
 0x584   :  { %2049 = vadd.xlane.f32.xlu0 %v2048_v62  ;;  %v2045_v0 = vsel %vm211_vm0, %v8044_v57, 0.0 }
 0x585   :  { %2046 = vadd.xlane.f32.xlu1 %v2045_v0 }
 0x588   :  { %v1988_v2 = vpop.permute.xlu0 %1987 }
 0x589   :  { %v8051_v5 = vmul.f32 %v1988_v2, %v7969_v24  ;;  %v1986_v9 = vpop.permute.xlu1 %1985 }
 0x58a   :  { %v8054_v19 = vmul.f32 %v1986_v9, %v7972_v26 }
 0x58b   :  { %v2054_v20 = vsel %vm211_vm0, %v8051_v5, 0.0 }
 0x58c   :  { %2055 = vadd.xlane.f32.xlu1 %v2054_v20  ;;  %v2051_v63 = vsel %vm211_vm0, %v8054_v19, 0.0 }
 0x58d   :  { %2052 = vadd.xlane.f32.xlu0 %v2051_v63 }
 0x590   :  { %v1992_v11 = vpop.permute.xlu0 %1991 }
 0x591   :  { %v8061_v12 = vmul.f32 %v1992_v11, %v7977_v47  ;;  %v1990_v13 = vpop.permute.xlu1 %1989 }
 0x592   :  { %v8064_v24 = vmul.f32 %v1990_v13, %v7980_v30 }
 0x593   :  { %v2060_v26 = vsel %vm211_vm0, %v8061_v12, 0.0 }
 0x594   :  { %2061 = vadd.xlane.f32.xlu1 %v2060_v26  ;;  %v2057_v14 = vsel %vm211_vm0, %v8064_v24, 0.0 }
 0x595   :  { %2058 = vadd.xlane.f32.xlu0 %v2057_v14 }
 0x598   :  { %v1996_v7 = vpop.permute.xlu0 %1995 }
 0x599   :  { %v8071_v15 = vmul.f32 %v1996_v7, %v7985_v42  ;;  %v1994_v3 = vpop.permute.xlu1 %1993 }
 0x59a   :  { %v8074_v47 = vmul.f32 %v1994_v3, %v7988_v18 }
 0x59b   :  { %v2066_v30 = vsel %vm211_vm0, %v8071_v15, 0.0 }
 0x59c   :  { %2067 = vadd.xlane.f32.xlu1 %v2066_v30  ;;  %v2063_v37 = vsel %vm211_vm0, %v8074_v47, 0.0 }
 0x59d   :  { %2064 = vadd.xlane.f32.xlu0 %v2063_v37 }
 0x5a0   :  { %v2000_v21 = vpop.permute.xlu0 %1999 }
 0x5a1   :  { %v8081_v23 = vmul.f32 %v2000_v21, %v7995_v52  ;;  %v1998_v25 = vpop.permute.xlu1 %1997 }
 0x5a2   :  { %v8084_v42 = vmul.f32 %v1998_v25, %v7998_v54 }
 0x5a3   :  { %v2072_v18 = vsel %vm211_vm0, %v8081_v23, 0.0 }
 0x5a4   :  { %2073 = vadd.xlane.f32.xlu1 %v2072_v18  ;;  %v2069_v27 = vsel %vm211_vm0, %v8084_v42, 0.0 }
 0x5a5   :  { %2070 = vadd.xlane.f32.xlu0 %v2069_v27 }
 0x5a8   :  { %v2004_v33 = vpop.permute.xlu0 %2003 }
 0x5a9   :  { %v8091_v29 = vmul.f32 %v2004_v33, %v8005_v8  ;;  %v2002_v39 = vpop.permute.xlu1 %2001 }
 0x5aa   :  { %v8094_v52 = vmul.f32 %v2002_v39, %v8008_v1 }
 0x5ab   :  { %v2078_v54 = vsel %vm211_vm0, %v8091_v29, 0.0 }
 0x5ac   :  { %2079 = vadd.xlane.f32.xlu1 %v2078_v54  ;;  %v2075_v35 = vsel %vm211_vm0, %v8094_v52, 0.0 }
 0x5ad   :  { %2076 = vadd.xlane.f32.xlu0 %v2075_v35 }
 0x5b0   :  { %v2008_v45 = vpop.permute.xlu0 %2007 }
 0x5b1   :  { %v8101_v31 = vmul.f32 %v2008_v45, %v8015_v10  ;;  %v2006_v60 = vpop.permute.xlu1 %2005 }
 0x5b2   :  { %v8104_v8 = vmul.f32 %v2006_v60, %v8018_v22 }
 0x5b3   :  { %v2084_v1 = vsel %vm211_vm0, %v8101_v31, 0.0 }
 0x5b4   :  { %2085 = vadd.xlane.f32.xlu1 %v2084_v1  ;;  %v2081_v58 = vsel %vm211_vm0, %v8104_v8, 0.0 }
 0x5b5   :  { %2082 = vadd.xlane.f32.xlu0 %v2081_v58 }
 0x5b7   :  { %v2012_v38 = vpop.permute.xlu0 %2011 }
 0x5b8   :  { %v8111_v40 = vmul.f32 %v2012_v38, %v8024_v41  ;;  %v2010_v6 = vpop.permute.xlu1 %2009 }
 0x5b9   :  { %v8114_v10 = vmul.f32 %v2010_v6, %v8028_v36 }
 0x5ba   :  { %v2090_v22 = vsel %vm211_vm0, %v8111_v40, 0.0 }
 0x5bb   :  { %2091 = vadd.xlane.f32.xlu1 %v2090_v22  ;;  %v2087_v4 = vsel %vm211_vm0, %v8114_v10, 0.0 }
 0x5bc   :  { %2088 = vadd.xlane.f32.xlu0 %v2087_v4 }
 0x611   :  { %v2050_v17 = vpop.xlane.xlu0 %2049 }
 0x612   :  { %v2095_v43 = vmul.f32 0.03125, %v2050_v17  ;;  %v2047_v16 = vpop.xlane.xlu1 %2046 }
 0x613   :  { %v2094_v46 = vmul.f32 0.03125, %v2047_v16 }
 0x614   :  { %v8121_v49 = vsub.f32 %v8041_v59, %v2095_v43 }
 0x615   :  { %v8124_v41 = vsub.f32 %v8044_v57, %v2094_v46 }
 0x616   :  { %v2127_v36 = vmul.f32 %v8121_v49, %v8121_v49 }
 0x617   :  { %v2126_v28 = vmul.f32 %v8124_v41, %v8124_v41 }
 0x618   :  { %v2145_v32 = vsel %vm211_vm0, %v2127_v36, 0.0 }
 0x619   :  { %2146 = vadd.xlane.f32.xlu1 %v2145_v32  ;;  %v2056_v48 = vpop.xlane.xlu1 %2055  ;;  %v2142_v44 = vsel %vm211_vm0, %v2126_v28, 0.0 }
 0x61a   :  { %v2097_v50 = vmul.f32 0.03125, %v2056_v48  ;;  %v2053_v51 = vpop.xlane.xlu0 %2052  ;;  %2143 = vadd.xlane.f32.xlu0 %v2142_v44 }
 0x61b   :  { %v2096_v53 = vmul.f32 0.03125, %v2053_v51 }
 0x61c   :  { %v8133_v55 = vsub.f32 %v8051_v5, %v2097_v50 }
 0x61d   :  { %v8136_v56 = vsub.f32 %v8054_v19, %v2096_v53 }
 0x61e   :  { %v2129_v59 = vmul.f32 %v8133_v55, %v8133_v55 }
 0x61f   :  { %v2128_v61 = vmul.f32 %v8136_v56, %v8136_v56 }
 0x620   :  { %v2151_v57 = vsel %vm211_vm0, %v2129_v59, 0.0 }
 0x621   :  { %2152 = vadd.xlane.f32.xlu1 %v2151_v57  ;;  %v2062_v62 = vpop.xlane.xlu1 %2061  ;;  %v2148_v0 = vsel %vm211_vm0, %v2128_v61, 0.0 }
 0x622   :  { %v2099_v2 = vmul.f32 0.03125, %v2062_v62  ;;  %v2059_v9 = vpop.xlane.xlu0 %2058  ;;  %2149 = vadd.xlane.f32.xlu0 %v2148_v0 }
 0x623   :  { %v2098_v5 = vmul.f32 0.03125, %v2059_v9 }
 0x624   :  { %v8145_v20 = vsub.f32 %v8061_v12, %v2099_v2 }
 0x625   :  { %v8148_v19 = vsub.f32 %v8064_v24, %v2098_v5  ;;  %v2440_v5 = vld [vmem:[%s9865_s7 + $0x10] sm:$0xff] }
 0x626   :  { %v2131_v63 = vmul.f32 %v8145_v20, %v8145_v20 }
 0x627   :  { %v2130_v11 = vmul.f32 %v8148_v19, %v8148_v19 }
 0x628   :  { %v2157_v13 = vsel %vm211_vm0, %v2131_v63, 0.0 }
 0x629   :  { %2158 = vadd.xlane.f32.xlu1 %v2157_v13  ;;  %v2068_v26 = vpop.xlane.xlu1 %2067  ;;  %v2154_v14 = vsel %vm211_vm0, %v2130_v11, 0.0  ;;  %v2441_v11 = vld [vmem:[%s9865_s7 + $0x18] sm:$0xff] }
 0x62a   :  { %v2101_v7 = vmul.f32 0.03125, %v2068_v26  ;;  %v2065_v3 = vpop.xlane.xlu0 %2064  ;;  %2155 = vadd.xlane.f32.xlu0 %v2154_v14  ;;  %v6665_v13 = vpack.c.bf16 %v2441_v11, %v2440_v5  ;;  %v2442_v26 = vld [vmem:[%s9865_s7 + $0x20] sm:$0xff]  ;;  %v2443_v14 = vld [vmem:[%s9865_s7 + $0x28] sm:$0xff] }
 0x62b   :  { %v2100_v12 = vmul.f32 0.03125, %v2065_v3  ;;  %v2444_v3 = vld [vmem:[%s9865_s7 + $0x30] sm:$0xff] }
 0x62c   :  { %v8157_v30 = vsub.f32 %v8071_v15, %v2101_v7  ;;  %v6669_v7 = vpack.c.bf16 %v2443_v14, %v2442_v26 }
 0x62d   :  { %v8160_v24 = vsub.f32 %v8074_v47, %v2100_v12  ;;  %v2445_v12 = vld [vmem:[%s9865_s7 + $0x38] sm:$0xff] }
 0x62e   :  { %v2133_v37 = vmul.f32 %v8157_v30, %v8157_v30 }
 0x62f   :  { %v2132_v21 = vmul.f32 %v8160_v24, %v8160_v24 }
 0x630   :  { %v2163_v25 = vsel %vm211_vm0, %v2133_v37, 0.0  ;;  %v6673_v37 = vpack.c.bf16 %v2445_v12, %v2444_v3 }
 0x631   :  { %2164 = vadd.xlane.f32.xlu1 %v2163_v25  ;;  %v2074_v18 = vpop.xlane.xlu1 %2073  ;;  %v2160_v27 = vsel %vm211_vm0, %v2132_v21, 0.0 }
 0x632   :  { %v2103_v33 = vmul.f32 0.03125, %v2074_v18  ;;  %v2071_v39 = vpop.xlane.xlu0 %2070  ;;  %2161 = vadd.xlane.f32.xlu0 %v2160_v27 }
 0x633   :  { %v2102_v15 = vmul.f32 0.03125, %v2071_v39 }
 0x634   :  { %v8169_v54 = vsub.f32 %v8081_v23, %v2103_v33 }
 0x635   :  { %v8172_v47 = vsub.f32 %v8084_v42, %v2102_v15 }
 0x636   :  { %v2135_v35 = vmul.f32 %v8169_v54, %v8169_v54 }
 0x637   :  { %v2134_v45 = vmul.f32 %v8172_v47, %v8172_v47 }
 0x638   :  { %v2169_v60 = vsel %vm211_vm0, %v2135_v35, 0.0 }
 0x639   :  { %2170 = vadd.xlane.f32.xlu1 %v2169_v60  ;;  %v2080_v1 = vpop.xlane.xlu1 %2079  ;;  %v2166_v58 = vsel %vm211_vm0, %v2134_v45, 0.0 }
 0x63a   :  { %v2105_v38 = vmul.f32 0.03125, %v2080_v1  ;;  %v2077_v6 = vpop.xlane.xlu0 %2076  ;;  %2167 = vadd.xlane.f32.xlu0 %v2166_v58  ;;  %v2446_v1 = vld [vmem:[%s9865_s7 + $0x40] sm:$0xff]  ;;  %v2447_v58 = vld [vmem:[%s9865_s7 + $0x48] sm:$0xff] }
 0x63b   :  { %v2104_v23 = vmul.f32 0.03125, %v2077_v6 }
 0x63c   :  { %v8181_v22 = vsub.f32 %v8091_v29, %v2105_v38  ;;  %v2448_v38 = vld [vmem:[%s9865_s7 + $0x50] sm:$0xff] }
 0x63d   :  { %v8184_v42 = vsub.f32 %v8094_v52, %v2104_v23  ;;  %v6677_v23 = vpack.c.bf16 %v2447_v58, %v2446_v1 }
 0x63e   :  { %v2137_v4 = vmul.f32 %v8181_v22, %v8181_v22 }
 0x63f   :  { %v2136_v17 = vmul.f32 %v8184_v42, %v8184_v42 }
 0x640   :  { %v2175_v43 = vsel %vm211_vm0, %v2137_v4, 0.0  ;;  %v2449_v4 = vld [vmem:[%s9865_s7 + $0x58] sm:$0xff] }
 0x641   :  { %2176 = vadd.xlane.f32.xlu1 %v2175_v43  ;;  %v2086_v16 = vpop.xlane.xlu1 %2085  ;;  %v2172_v46 = vsel %vm211_vm0, %v2136_v17, 0.0  ;;  %v6681_v43 = vpack.c.bf16 %v2449_v4, %v2448_v38 }
 0x642   :  { %v2107_v36 = vmul.f32 0.03125, %v2086_v16  ;;  %v2083_v28 = vpop.xlane.xlu0 %2082  ;;  %2173 = vadd.xlane.f32.xlu0 %v2172_v46  ;;  %v8255_v46 = vld [vmem:[%s9866_s8] ss:$0 sm:$0xff] }
 0x643   :  { %v2106_v29 = vmul.f32 0.03125, %v2083_v28 }
 0x644   :  { %v8193_v32 = vsub.f32 %v8101_v31, %v2107_v36 }
 0x645   :  { %v8196_v52 = vsub.f32 %v8104_v8, %v2106_v29 }
 0x646   :  { %v2139_v48 = vmul.f32 %v8193_v32, %v8193_v32 }
 0x647   :  { %v2138_v44 = vmul.f32 %v8196_v52, %v8196_v52 }
 0x648   :  { %v2092_v50 = vpop.xlane.xlu1 %2091  ;;  %v2181_v51 = vsel %vm211_vm0, %v2139_v48, 0.0 }
 0x649   :  { %v2109_v53 = vmul.f32 0.03125, %v2092_v50  ;;  %v2089_v59 = vpop.xlane.xlu0 %2088  ;;  %2182 = vadd.xlane.f32.xlu1 %v2181_v51  ;;  %v2178_v61 = vsel %vm211_vm0, %v2138_v44, 0.0  ;;  %v8261_v50 = vld [vmem:[%s9867_s30] ss:$0 sm:$0xff] }
 0x64a   :  { %v2108_v57 = vmul.f32 0.03125, %v2089_v59  ;;  %2179 = vadd.xlane.f32.xlu0 %v2178_v61 }
 0x64b   :  { %v8205_v31 = vsub.f32 %v8111_v40, %v2109_v53  ;;  %v2438_v40 = vld [vmem:[%s9865_s7] sm:$0xff] }
 0x64c   :  { %v8208_v8 = vsub.f32 %v8114_v10, %v2108_v57  ;;  %v2439_v10 = vld [vmem:[%s9865_s7 + $0x8] sm:$0xff] }
 0x64d   :  { %v2141_v62 = vmul.f32 %v8205_v31, %v8205_v31  ;;  %v6661_v63 = vpack.c.bf16 %v2439_v10, %v2438_v40 }
 0x64e   :  { %v2140_v0 = vmul.f32 %v8208_v8, %v8208_v8 }
 0x64f   :  { %v2187_v2 = vsel %vm211_vm0, %v2141_v62, 0.0  ;;  %6662 = vmatprep.subr.bf16.mxu1 %v6661_v63 }
 0x650   :  { %2188 = vadd.xlane.f32.xlu1 %v2187_v2  ;;  %v2184_v9 = vsel %vm211_vm0, %v2140_v0, 0.0  ;;  %6664 = vmatpush3.bf16.msra.mxu1 %v6661_v63 }
 0x651   :  { %2185 = vadd.xlane.f32.xlu0 %v2184_v9  ;;  %6666 = vmatprep.subr.bf16.mxu1 %v6665_v13 }
 0x654   :  { %6668 = vmatpush3.bf16.msra.mxu1 %v6665_v13 }
 0x655   :  { %6670 = vmatprep.subr.bf16.mxu1 %v6669_v7 }
 0x658   :  { %6672 = vmatpush3.bf16.msra.mxu1 %v6669_v7 }
 0x659   :  { %6674 = vmatprep.subr.bf16.mxu1 %v6673_v37 }
 0x65c   :  { %6676 = vmatpush3.bf16.msra.mxu1 %v6673_v37 }
 0x65d   :  { %6678 = vmatprep.subr.bf16.mxu1 %v6677_v23 }
 0x660   :  { %6680 = vmatpush3.bf16.msra.mxu1 %v6677_v23 }
 0x661   :  { %6682 = vmatprep.subr.bf16.mxu1 %v6681_v43 }
 0x664   :  { %6684 = vmatpush3.bf16.msra.mxu1 %v6681_v43 }
 0x6a6   :  { %v2147_v21 = vpop.xlane.xlu1 %2146 }
 0x6a7   :  { %v2191_v25 = vmul.f32 0.03125, %v2147_v21  ;;  %v2144_v18 = vpop.xlane.xlu0 %2143 }
 0x6a8   :  { %v2190_v27 = vmul.f32 0.03125, %v2144_v18 }
 0x6a9   :  { %v2207_v33 = vadd.f32 1e-05, %v2191_v25 }
 0x6aa   :  { %v2206_v39 = vadd.f32 1e-05, %v2190_v27 }
 0x6ab   :  { %6913 = vrsqrt.f32 %v2207_v33 }
 0x6ac   :  { %6915 = vrsqrt.f32 %v2206_v39 }
 0x6ae   :  { %v2153_v15 = vpop.xlane.xlu1 %2152 }
 0x6af   :  { %v2193_v35 = vmul.f32 0.03125, %v2153_v15  ;;  %v2150_v45 = vpop.xlane.xlu0 %2149 }
 0x6b0   :  { %v2192_v60 = vmul.f32 0.03125, %v2150_v45 }
 0x6b1   :  { %v2209_v6 = vadd.f32 1e-05, %v2193_v35 }
 0x6b2   :  { %v2208_v17 = vadd.f32 1e-05, %v2192_v60 }
 0x6b3   :  { %6917 = vrsqrt.f32 %v2209_v6 }
 0x6b4   :  { %6919 = vrsqrt.f32 %v2208_v17 }
 0x6b5   :  { %v6914_v16 = vpop.eup %6913 }
 0x6b6   :  { %v6916_v36 = vpop.eup %6915  ;;  %v2159_v28 = vpop.xlane.xlu1 %2158  ;;  %v2239_v29 = vmul.f32 %v6914_v16, %v8121_v49 }
 0x6b7   :  { %v2195_v48 = vmul.f32 0.03125, %v2159_v28  ;;  %v2156_v44 = vpop.xlane.xlu0 %2155  ;;  %v2238_v51 = vmul.f32 %v6916_v36, %v8124_v41 }
 0x6b8   :  { %v2194_v53 = vmul.f32 0.03125, %v2156_v44  ;;  %v2262_v59 = vmul.f32 %v8255_v46, %v2239_v29 }
 0x6b9   :  { %v2211_v61 = vadd.f32 1e-05, %v2195_v48  ;;  %v2261_v57 = vmul.f32 %v8255_v46, %v2238_v51 }
 0x6ba   :  { %v2210_v62 = vadd.f32 1e-05, %v2194_v53  ;;  %v8267_v0 = vadd.f32 %v8261_v50, %v2262_v59 }
 0x6bb   :  { %6921 = vrsqrt.f32 %v2211_v61  ;;  %v8270_v49 = vadd.f32 %v8261_v50, %v2261_v57 }
 0x6bc   :  { %6923 = vrsqrt.f32 %v2210_v62  ;;  %2318 = vrot.lane.b32.xlu1 %v8267_v0, %s7202_s29 }
 0x6bd   :  { %v6918_v41 = vpop.eup %6917  ;;  %2316 = vrot.lane.b32.xlu0 %v8270_v49, %s7202_s29 }
 0x6be   :  { %v6920_v2 = vpop.eup %6919  ;;  %v2165_v9 = vpop.xlane.xlu1 %2164  ;;  %v2241_v40 = vmul.f32 %v6918_v41, %v8133_v55 }
 0x6bf   :  { %v2197_v10 = vmul.f32 0.03125, %v2165_v9  ;;  %v2162_v5 = vpop.xlane.xlu0 %2161  ;;  %v2240_v63 = vmul.f32 %v6920_v2, %v8136_v56 }
 0x6c0   :  { %v2196_v11 = vmul.f32 0.03125, %v2162_v5  ;;  %v2264_v13 = vmul.f32 %v8255_v46, %v2241_v40 }
 0x6c1   :  { %v2213_v26 = vadd.f32 1e-05, %v2197_v10  ;;  %v2263_v14 = vmul.f32 %v8255_v46, %v2240_v63 }
 0x6c2   :  { %v2212_v7 = vadd.f32 1e-05, %v2196_v11  ;;  %v8281_v3 = vadd.f32 %v8261_v50, %v2264_v13 }
 0x6c3   :  { %6925 = vrsqrt.f32 %v2213_v26  ;;  %v8284_v12 = vadd.f32 %v8261_v50, %v2263_v14 }
 0x6c4   :  { %6927 = vrsqrt.f32 %v2212_v7  ;;  %2366 = vrot.lane.b32.xlu0 %v8281_v3, %s7201_s1 }
 0x6c5   :  { %v6922_v55 = vpop.eup %6921  ;;  %2364 = vrot.lane.b32.xlu1 %v8284_v12, %s7201_s1 }
 0x6c6   :  { %v6924_v56 = vpop.eup %6923  ;;  %v2171_v37 = vpop.xlane.xlu1 %2170  ;;  %v2243_v21 = vmul.f32 %v6922_v55, %v8145_v20 }
 0x6c7   :  { %v2199_v25 = vmul.f32 0.03125, %v2171_v37  ;;  %v2168_v18 = vpop.xlane.xlu0 %2167  ;;  %v2242_v27 = vmul.f32 %v6924_v56, %v8148_v19 }
 0x6c8   :  { %v2198_v33 = vmul.f32 0.03125, %v2168_v18  ;;  %2322 = vrot.lane.b32.xlu0 %v8281_v3, %s7202_s29  ;;  %v2266_v39 = vmul.f32 %v8255_v46, %v2243_v21 }
 0x6c9   :  { %v2215_v15 = vadd.f32 1e-05, %v2199_v25  ;;  %2320 = vrot.lane.b32.xlu1 %v8284_v12, %s7202_s29  ;;  %v2265_v35 = vmul.f32 %v8255_v46, %v2242_v27 }
 0x6ca   :  { %v2214_v45 = vadd.f32 1e-05, %v2198_v33  ;;  %v8299_v60 = vadd.f32 %v8261_v50, %v2266_v39 }
 0x6cb   :  { %6929 = vrsqrt.f32 %v2215_v15  ;;  %v8302_v20 = vadd.f32 %v8261_v50, %v2265_v35 }
 0x6cc   :  { %6931 = vrsqrt.f32 %v2214_v45  ;;  %2370 = vrot.lane.b32.xlu0 %v8299_v60, %s7201_s1 }
 0x6cd   :  { %v6926_v19 = vpop.eup %6925  ;;  %2368 = vrot.lane.b32.xlu1 %v8302_v20, %s7201_s1 }
 0x6ce   :  { %v6928_v1 = vpop.eup %6927  ;;  %v2177_v58 = vpop.xlane.xlu1 %2176  ;;  %v2245_v38 = vmul.f32 %v6926_v19, %v8157_v30 }
 0x6cf   :  { %v2201_v6 = vmul.f32 0.03125, %v2177_v58  ;;  %v2174_v23 = vpop.xlane.xlu0 %2173  ;;  %v2244_v4 = vmul.f32 %v6928_v1, %v8160_v24 }
 0x6d0   :  { %v2200_v17 = vmul.f32 0.03125, %v2174_v23  ;;  %2326 = vrot.lane.b32.xlu0 %v8299_v60, %s7202_s29  ;;  %v2268_v43 = vmul.f32 %v8255_v46, %v2245_v38 }
 0x6d1   :  { %v2217_v16 = vadd.f32 1e-05, %v2201_v6  ;;  %2324 = vrot.lane.b32.xlu1 %v8302_v20, %s7202_s29  ;;  %v2267_v36 = vmul.f32 %v8255_v46, %v2244_v4 }
 0x6d2   :  { %v2216_v28 = vadd.f32 1e-05, %v2200_v17  ;;  %v8317_v29 = vadd.f32 %v8261_v50, %v2268_v43 }
 0x6d3   :  { %6933 = vrsqrt.f32 %v2217_v16  ;;  %v8320_v30 = vadd.f32 %v8261_v50, %v2267_v36 }
 0x6d4   :  { %6935 = vrsqrt.f32 %v2216_v28  ;;  %2374 = vrot.lane.b32.xlu0 %v8317_v29, %s7201_s1 }
 0x6d5   :  { %v6930_v24 = vpop.eup %6929  ;;  %2372 = vrot.lane.b32.xlu1 %v8320_v30, %s7201_s1 }
 0x6d6   :  { %v6932_v48 = vpop.eup %6931  ;;  %v2183_v44 = vpop.xlane.xlu1 %2182  ;;  %v2247_v51 = vmul.f32 %v6930_v24, %v8169_v54 }
 0x6d7   :  { %v2203_v53 = vmul.f32 0.03125, %v2183_v44  ;;  %v2180_v59 = vpop.xlane.xlu0 %2179  ;;  %v2246_v61 = vmul.f32 %v6932_v48, %v8172_v47 }
 0x6d8   :  { %v2202_v57 = vmul.f32 0.03125, %v2180_v59  ;;  %2330 = vrot.lane.b32.xlu0 %v8317_v29, %s7202_s29  ;;  %v2270_v62 = vmul.f32 %v8255_v46, %v2247_v51 }
 0x6d9   :  { %v2219_v41 = vadd.f32 1e-05, %v2203_v53  ;;  %2328 = vrot.lane.b32.xlu1 %v8320_v30, %s7202_s29  ;;  %v2269_v2 = vmul.f32 %v8255_v46, %v2246_v61 }
 0x6da   :  { %v2218_v9 = vadd.f32 1e-05, %v2202_v57  ;;  %v8335_v40 = vadd.f32 %v8261_v50, %v2270_v62 }
 0x6db   :  { %6937 = vrsqrt.f32 %v2219_v41  ;;  %v8338_v54 = vadd.f32 %v8261_v50, %v2269_v2 }
 0x6dc   :  { %6939 = vrsqrt.f32 %v2218_v9  ;;  %2378 = vrot.lane.b32.xlu0 %v8335_v40, %s7201_s1 }
 0x6dd   :  { %v6934_v47 = vpop.eup %6933  ;;  %v2189_v10 = vpop.xlane.xlu1 %2188  ;;  %2376 = vrot.lane.b32.xlu1 %v8338_v54, %s7201_s1 }
 0x6de   :  { %v6936_v5 = vpop.eup %6935  ;;  %v2205_v63 = vmul.f32 0.03125, %v2189_v10  ;;  %v2186_v11 = vpop.xlane.xlu0 %2185  ;;  %v2249_v13 = vmul.f32 %v6934_v47, %v8181_v22 }
 0x6df   :  { %v2204_v26 = vmul.f32 0.03125, %v2186_v11  ;;  %v2248_v14 = vmul.f32 %v6936_v5, %v8184_v42 }
 0x6e0   :  { %v2221_v7 = vadd.f32 1e-05, %v2205_v63  ;;  %2334 = vrot.lane.b32.xlu0 %v8335_v40, %s7202_s29  ;;  %v2272_v55 = vmul.f32 %v8255_v46, %v2249_v13 }
 0x6e1   :  { %v2220_v56 = vadd.f32 1e-05, %v2204_v26  ;;  %2332 = vrot.lane.b32.xlu1 %v8338_v54, %s7202_s29  ;;  %v2271_v37 = vmul.f32 %v8255_v46, %v2248_v14 }
 0x6e2   :  { %6941 = vrsqrt.f32 %v2221_v7  ;;  %v8353_v21 = vadd.f32 %v8261_v50, %v2272_v55 }
 0x6e3   :  { %6943 = vrsqrt.f32 %v2220_v56  ;;  %v8356_v22 = vadd.f32 %v8261_v50, %v2271_v37 }
 0x6e4   :  { %2382 = vrot.lane.b32.xlu0 %v8353_v21, %s7201_s1 }
 0x6e5   :  { %v6938_v42 = vpop.eup %6937  ;;  %2380 = vrot.lane.b32.xlu1 %v8356_v22, %s7201_s1 }
 0x6e6   :  { %v6940_v25 = vpop.eup %6939  ;;  %v2251_v18 = vmul.f32 %v6938_v42, %v8193_v32 }
 0x6e7   :  { %v2250_v27 = vmul.f32 %v6940_v25, %v8196_v52 }
 0x6e8   :  { %2338 = vrot.lane.b32.xlu0 %v8353_v21, %s7202_s29  ;;  %v2274_v33 = vmul.f32 %v8255_v46, %v2251_v18 }
 0x6e9   :  { %2336 = vrot.lane.b32.xlu1 %v8356_v22, %s7202_s29  ;;  %v2273_v39 = vmul.f32 %v8255_v46, %v2250_v27 }
 0x6ea   :  { %v8371_v15 = vadd.f32 %v8261_v50, %v2274_v33 }
 0x6eb   :  { %v8374_v35 = vadd.f32 %v8261_v50, %v2273_v39 }
 0x6ec   :  { %v6942_v45 = vpop.eup %6941  ;;  %2386 = vrot.lane.b32.xlu0 %v8371_v15, %s7201_s1 }
 0x6ed   :  { %v6944_v32 = vpop.eup %6943  ;;  %2384 = vrot.lane.b32.xlu1 %v8374_v35, %s7201_s1  ;;  %v2253_v52 = vmul.f32 %v6942_v45, %v8205_v31 }
 0x6ee   :  { %v2252_v19 = vmul.f32 %v6944_v32, %v8208_v8 }
 0x6ef   :  { %v2276_v1 = vmul.f32 %v8255_v46, %v2253_v52 }
 0x6f0   :  { %2342 = vrot.lane.b32.xlu0 %v8371_v15, %s7202_s29  ;;  %v2275_v58 = vmul.f32 %v8255_v46, %v2252_v19 }
 0x6f1   :  { %2340 = vrot.lane.b32.xlu1 %v8374_v35, %s7202_s29  ;;  %v2299_v38 = vadd.f32 %v8261_v50, %v2276_v1 }
 0x6f2   :  { %v2298_v6 = vadd.f32 %v8261_v50, %v2275_v58 }
 0x6f4   :  { %2390 = vrot.lane.b32.xlu0 %v2299_v38, %s7201_s1 }
 0x6f5   :  { %2388 = vrot.lane.b32.xlu1 %v2298_v6, %s7201_s1 }
 0x6f8   :  { %2346 = vrot.lane.b32.xlu0 %v2299_v38, %s7202_s29 }
 0x6f9   :  { %2344 = vrot.lane.b32.xlu1 %v2298_v6, %s7202_s29 }
 0x72e   :  { %v2319_v8 = vpop.permute.xlu1 %2318 }
 0x72f   :  { %v2317_v31 = vpop.permute.xlu0 %2316  ;;  %v2407_v17 = vsel %vm211_vm0, 0.0, %v2319_v8  ;;  %v2826_v8 = vld [vmem:[%s9824_s12] sm:$0xff] }
 0x730   :  { %v2406_v46 = vsel %vm211_vm0, 0.0, %v2317_v31 }
 0x736   :  { %v2367_v23 = vpop.permute.xlu0 %2366 }
 0x737   :  { %v2365_v4 = vpop.permute.xlu1 %2364  ;;  %v2423_v50 = vsel %vm228_vm1, %v2407_v17, %v2367_v23 }
 0x738   :  { %v2422_v43 = vsel %vm228_vm1, %v2406_v46, %v2365_v4 }
 0x739   :  { %6333 = vmatprep.mubr.msk.f32.mxu1 %vm264_vm2, %v2422_v43 }
 0x73a   :  { %v2323_v16 = vpop.permute.xlu0 %2322  ;;  %6334 = vmatmul.mubr.msk.f32.vlgmr.msra.gmra.mrb[30].mxu1 %vm264_vm2, %v2423_v50 }
 0x73b   :  { %v2321_v36 = vpop.permute.xlu1 %2320  ;;  %v2409_v44 = vsel %vm211_vm0, %v8267_v0, %v2323_v16 }
 0x73c   :  { %v2408_v24 = vsel %vm211_vm0, %v8270_v49, %v2321_v36 }
 0x73e   :  { %v2371_v28 = vpop.permute.xlu0 %2370 }
 0x73f   :  { %v2369_v48 = vpop.permute.xlu1 %2368  ;;  %v2425_v53 = vsel %vm228_vm1, %v2409_v44, %v2371_v28 }
 0x740   :  { %v2424_v51 = vsel %vm228_vm1, %v2408_v24, %v2369_v48 }
 0x741   :  { %6336 = vmatprep.mubr.msk.f32.mxu1 %vm264_vm2, %v2424_v51 }
 0x742   :  { %v2327_v59 = vpop.permute.xlu0 %2326  ;;  %6337 = vmatmul.mubr.msk.f32.gmra.mrb[32].mxu1 %vm264_vm2, %v2425_v53 }
 0x743   :  { %v2325_v61 = vpop.permute.xlu1 %2324  ;;  %v2411_v49 = vsel %vm211_vm0, %v8281_v3, %v2327_v59  ;;  %v2828_v59 = vld [vmem:[%s9824_s12 + $0x10] sm:$0xff] }
 0x744   :  { %v2410_v62 = vsel %vm211_vm0, %v8284_v12, %v2325_v61  ;;  %v2829_v61 = vld [vmem:[%s9824_s12 + $0x18] sm:$0xff] }
 0x746   :  { %v2375_v57 = vpop.permute.xlu0 %2374 }
 0x747   :  { %v2373_v41 = vpop.permute.xlu1 %2372  ;;  %v2427_v2 = vsel %vm228_vm1, %v2411_v49, %v2375_v57  ;;  %v6689_v49 = vpack.c.bf16 %v2829_v61, %v2828_v59 }
 0x748   :  { %v2426_v0 = vsel %vm228_vm1, %v2410_v62, %v2373_v41 }
 0x749   :  { %6339 = vmatprep.mubr.msk.f32.mxu1 %vm264_vm2, %v2426_v0 }
 0x74a   :  { %v2331_v9 = vpop.permute.xlu0 %2330  ;;  %6340 = vmatmul.mubr.msk.f32.gmra.mrb[34].mxu1 %vm264_vm2, %v2427_v2 }
 0x74b   :  { %v2329_v47 = vpop.permute.xlu1 %2328  ;;  %v2413_v12 = vsel %vm211_vm0, %v8299_v60, %v2331_v9 }
 0x74c   :  { %v2412_v5 = vsel %vm211_vm0, %v8302_v20, %v2329_v47 }
 0x74e   :  { %v2379_v10 = vpop.permute.xlu0 %2378 }
 0x74f   :  { %v2377_v63 = vpop.permute.xlu1 %2376  ;;  %v2429_v11 = vsel %vm228_vm1, %v2413_v12, %v2379_v10 }
 0x750   :  { %v2428_v3 = vsel %vm228_vm1, %v2412_v5, %v2377_v63 }
 0x751   :  { %6342 = vmatprep.mubr.msk.f32.mxu1 %vm264_vm2, %v2428_v3 }
 0x752   :  { %v2335_v13 = vpop.permute.xlu0 %2334  ;;  %6343 = vmatmul.mubr.msk.f32.gmra.mrb[36].mxu1 %vm264_vm2, %v2429_v11 }
 0x753   :  { %v2333_v26 = vpop.permute.xlu1 %2332  ;;  %v2415_v20 = vsel %vm211_vm0, %v8317_v29, %v2335_v13 }
 0x754   :  { %v2414_v7 = vsel %vm211_vm0, %v8320_v30, %v2333_v26 }
 0x756   :  { %v2383_v14 = vpop.permute.xlu0 %2382 }
 0x757   :  { %v2381_v55 = vpop.permute.xlu1 %2380  ;;  %v2431_v56 = vsel %vm228_vm1, %v2415_v20, %v2383_v14 }
 0x758   :  { %v2430_v60 = vsel %vm228_vm1, %v2414_v7, %v2381_v55 }
 0x759   :  { %6345 = vmatprep.mubr.msk.f32.mxu1 %vm264_vm2, %v2430_v60 }
 0x75a   :  { %v2339_v37 = vpop.permute.xlu0 %2338  ;;  %6346 = vmatmul.mubr.msk.f32.gmra.mrb[38].mxu1 %vm264_vm2, %v2431_v56 }
 0x75b   :  { %v2337_v42 = vpop.permute.xlu1 %2336  ;;  %v2417_v30 = vsel %vm211_vm0, %v8335_v40, %v2339_v37 }
 0x75c   :  { %v2416_v18 = vsel %vm211_vm0, %v8338_v54, %v2337_v42 }
 0x75e   :  { %v2387_v25 = vpop.permute.xlu0 %2386 }
 0x75f   :  { %v2385_v27 = vpop.permute.xlu1 %2384  ;;  %v2433_v33 = vsel %vm228_vm1, %v2417_v30, %v2387_v25 }
 0x760   :  { %v2432_v29 = vsel %vm228_vm1, %v2416_v18, %v2385_v27 }
 0x761   :  { %6348 = vmatprep.mubr.msk.f32.mxu1 %vm264_vm2, %v2432_v29 }
 0x762   :  { %v2343_v39 = vpop.permute.xlu0 %2342  ;;  %6349 = vmatmul.mubr.msk.f32.gmra.mrb[40].mxu1 %vm264_vm2, %v2433_v33 }
 0x763   :  { %v2341_v45 = vpop.permute.xlu1 %2340  ;;  %v2419_v54 = vsel %vm211_vm0, %v8353_v21, %v2343_v39 }
 0x764   :  { %v2418_v52 = vsel %vm211_vm0, %v8356_v22, %v2341_v45 }
 0x766   :  { %v2391_v32 = vpop.permute.xlu0 %2390 }
 0x767   :  { %v2389_v19 = vpop.permute.xlu1 %2388  ;;  %v2435_v1 = vsel %vm228_vm1, %v2419_v54, %v2391_v32 }
 0x768   :  { %v2434_v40 = vsel %vm228_vm1, %v2418_v52, %v2389_v19 }
 0x769   :  { %6351 = vmatprep.mubr.msk.f32.mxu1 %vm264_vm2, %v2434_v40 }
 0x76a   :  { %v2347_v58 = vpop.permute.xlu0 %2346  ;;  %6352 = vmatmul.mubr.msk.f32.gmra.mrb[42].mxu1 %vm264_vm2, %v2435_v1 }
 0x76b   :  { %v2421_v38 = vsel %vm211_vm0, %v8371_v15, %v2347_v58  ;;  %v2345_v6 = vpop.permute.xlu1 %2344  ;;  %v2827_v15 = vld [vmem:[%s9824_s12 + $0x8] sm:$0xff] }
 0x76c   :  { %v2420_v22 = vsel %vm211_vm0, %v8374_v35, %v2345_v6  ;;  %v2437_v21 = vsel %vm228_vm1, %v2421_v38, %v7567_v34  ;;  %v6685_v23 = vpack.c.bf16 %v2827_v15, %v2826_v8  ;;  %v8467_v35 = vld [vmem:[%s9825_s11] ss:$0 sm:$0xff] }
 0x76d   :  { %v2436_v31 = vsel %vm228_vm1, %v2420_v22, %v7567_v34 }
 0x76e   :  { %6354 = vmatprep.mubr.msk.f32.mxu1 %vm264_vm2, %v2436_v31  ;;  %6686 = vmatprep.subr.bf16.mxu0 %v6685_v23 }
 0x76f   :  { %6355 = vmatmul.mubr.msk.f32.gmra.mrb[44].mxu1 %vm264_vm2, %v2437_v21  ;;  %6688 = vmatpush3.bf16.msra.mxu0 %v6685_v23 }
 0x770   :  { %6690 = vmatprep.subr.bf16.mxu0 %v6689_v49 }
 0x773   :  { %6692 = vmatpush3.bf16.msra.mxu0 %v6689_v49 }
 0x80d   :  { %v6335_v46 = vpop.f32.mrb[30].mxu1 }
 0x80e   :  { %v8470_v4 = vadd.f32 %v6335_v46, %v8467_v35  ;;  %v2571_v17 = vpop.f32.mrb[31].mxu1 }
 0x80f   :  { %v8473_v43 = vadd.f32 %v8467_v35, %v2571_v17 }
 0x810   :  { %v5724_v50 = vmul.f32 -1.442695, %v8470_v4 }
 0x811   :  { %v5723_v16 = vmul.f32 -1.442695, %v8473_v43 }
 0x812   :  { %6945 = vpow2.f32 %v5724_v50 }
 0x813   :  { %6947 = vpow2.f32 %v5723_v16 }
 0x815   :  { %v6338_v36 = vpop.f32.mrb[32].mxu1 }
 0x816   :  { %v8478_v28 = vadd.f32 %v6338_v36, %v8467_v35  ;;  %v2581_v24 = vpop.f32.mrb[33].mxu1 }
 0x817   :  { %v8481_v48 = vadd.f32 %v8467_v35, %v2581_v24 }
 0x818   :  { %v5726_v44 = vmul.f32 -1.442695, %v8478_v28 }
 0x819   :  { %v5725_v51 = vmul.f32 -1.442695, %v8481_v48 }
 0x81a   :  { %6949 = vpow2.f32 %v5726_v44 }
 0x81b   :  { %6951 = vpow2.f32 %v5725_v51 }
 0x81c   :  { %v6946_v53 = vpop.eup %6945 }
 0x81d   :  { %v6948_v57 = vpop.eup %6947  ;;  %v2699_v62 = vadd.f32 1.0, %v6946_v53  ;;  %v6341_v41 = vpop.f32.mrb[34].mxu1 }
 0x81e   :  { %v2698_v0 = vadd.f32 1.0, %v6948_v57  ;;  %v8492_v2 = vadd.f32 %v6341_v41, %v8467_v35  ;;  %v2591_v9 = vpop.f32.mrb[35].mxu1 }
 0x81f   :  { %6953 = vrcp.f32 %v2699_v62  ;;  %v8495_v47 = vadd.f32 %v8467_v35, %v2591_v9 }
 0x820   :  { %6955 = vrcp.f32 %v2698_v0  ;;  %v5728_v10 = vmul.f32 -1.442695, %v8492_v2 }
 0x821   :  { %v5727_v5 = vmul.f32 -1.442695, %v8495_v47 }
 0x822   :  { %6957 = vpow2.f32 %v5728_v10 }
 0x823   :  { %6959 = vpow2.f32 %v5727_v5 }
 0x824   :  { %v6950_v63 = vpop.eup %6949 }
 0x825   :  { %v6952_v12 = vpop.eup %6951  ;;  %v2701_v3 = vadd.f32 1.0, %v6950_v63  ;;  %v6344_v11 = vpop.f32.mrb[36].mxu1 }
 0x826   :  { %v2700_v13 = vadd.f32 1.0, %v6952_v12  ;;  %v8500_v26 = vadd.f32 %v6344_v11, %v8467_v35  ;;  %v2601_v14 = vpop.f32.mrb[37].mxu1 }
 0x827   :  { %6961 = vrcp.f32 %v2701_v3  ;;  %v8503_v7 = vadd.f32 %v8467_v35, %v2601_v14 }
 0x828   :  { %6963 = vrcp.f32 %v2700_v13  ;;  %v5730_v55 = vmul.f32 -1.442695, %v8500_v26 }
 0x829   :  { %v6954_v20 = vpop.eup %6953  ;;  %v5729_v60 = vmul.f32 -1.442695, %v8503_v7 }
 0x82a   :  { %v6956_v56 = vpop.eup %6955  ;;  %6965 = vpow2.f32 %v5730_v55  ;;  %2764 = vrot.lane.b32.xlu0 %v6954_v20, %s7204_s2 }
 0x82b   :  { %6967 = vpow2.f32 %v5729_v60  ;;  %2762 = vrot.lane.b32.xlu1 %v6956_v56, %s7204_s2 }
 0x82c   :  { %v6958_v37 = vpop.eup %6957 }
 0x82d   :  { %v6960_v42 = vpop.eup %6959  ;;  %v2703_v25 = vadd.f32 1.0, %v6958_v37  ;;  %v6347_v18 = vpop.f32.mrb[38].mxu1 }
 0x82e   :  { %v2702_v27 = vadd.f32 1.0, %v6960_v42  ;;  %v8510_v30 = vadd.f32 %v6347_v18, %v8467_v35  ;;  %v2611_v29 = vpop.f32.mrb[39].mxu1 }
 0x82f   :  { %6969 = vrcp.f32 %v2703_v25  ;;  %v8513_v33 = vadd.f32 %v8467_v35, %v2611_v29 }
 0x830   :  { %6971 = vrcp.f32 %v2702_v27  ;;  %v5732_v39 = vmul.f32 -1.442695, %v8510_v30 }
 0x831   :  { %v6962_v45 = vpop.eup %6961  ;;  %v5731_v32 = vmul.f32 -1.442695, %v8513_v33 }
 0x832   :  { %v6964_v52 = vpop.eup %6963  ;;  %6973 = vpow2.f32 %v5732_v39  ;;  %2768 = vrot.lane.b32.xlu0 %v6962_v45, %s7204_s2 }
 0x833   :  { %6975 = vpow2.f32 %v5731_v32  ;;  %2766 = vrot.lane.b32.xlu1 %v6964_v52, %s7204_s2 }
 0x834   :  { %v6966_v19 = vpop.eup %6965 }
 0x835   :  { %v6968_v54 = vpop.eup %6967  ;;  %v2705_v40 = vadd.f32 1.0, %v6966_v19  ;;  %v6350_v1 = vpop.f32.mrb[40].mxu1 }
 0x836   :  { %v2704_v58 = vadd.f32 1.0, %v6968_v54  ;;  %v8520_v38 = vadd.f32 %v6350_v1, %v8467_v35  ;;  %v2621_v6 = vpop.f32.mrb[41].mxu1 }
 0x837   :  { %6977 = vrcp.f32 %v2705_v40  ;;  %v8523_v22 = vadd.f32 %v8467_v35, %v2621_v6 }
 0x838   :  { %6979 = vrcp.f32 %v2704_v58  ;;  %v5734_v31 = vmul.f32 -1.442695, %v8520_v38 }
 0x839   :  { %v6970_v21 = vpop.eup %6969  ;;  %v5733_v8 = vmul.f32 -1.442695, %v8523_v22 }
 0x83a   :  { %v6972_v15 = vpop.eup %6971  ;;  %6981 = vpow2.f32 %v5734_v31  ;;  %2772 = vrot.lane.b32.xlu0 %v6970_v21, %s7204_s2 }
 0x83b   :  { %6983 = vpow2.f32 %v5733_v8  ;;  %2770 = vrot.lane.b32.xlu1 %v6972_v15, %s7204_s2 }
 0x83c   :  { %v6974_v23 = vpop.eup %6973 }
 0x83d   :  { %v6976_v46 = vpop.eup %6975  ;;  %v2707_v17 = vadd.f32 1.0, %v6974_v23  ;;  %v6353_v50 = vpop.f32.mrb[42].mxu1 }
 0x83e   :  { %v2706_v16 = vadd.f32 1.0, %v6976_v46  ;;  %v8530_v36 = vadd.f32 %v6353_v50, %v8467_v35  ;;  %v2631_v24 = vpop.f32.mrb[43].mxu1 }
 0x83f   :  { %6985 = vrcp.f32 %v2707_v17  ;;  %v8533_v44 = vadd.f32 %v8467_v35, %v2631_v24 }
 0x840   :  { %6987 = vrcp.f32 %v2706_v16  ;;  %v5736_v51 = vmul.f32 -1.442695, %v8530_v36 }
 0x841   :  { %v6978_v53 = vpop.eup %6977  ;;  %v5735_v59 = vmul.f32 -1.442695, %v8533_v44 }
 0x842   :  { %v6980_v61 = vpop.eup %6979  ;;  %6989 = vpow2.f32 %v5736_v51  ;;  %2776 = vrot.lane.b32.xlu0 %v6978_v53, %s7204_s2  ;;  %v6356_v57 = vpop.f32.mrb[44].mxu1 }
 0x843   :  { %6991 = vpow2.f32 %v5735_v59  ;;  %v8539_v62 = vadd.f32 %v6356_v57, %v8467_v35  ;;  %2774 = vrot.lane.b32.xlu1 %v6980_v61, %s7204_s2  ;;  %v2641_v41 = vpop.f32.mrb[45].mxu1  ;;  %v3024_v61 = vld [vmem:[%s9861_s27 + $0x8] sm:$0xff]  ;;  %v3025_v57 = vld [vmem:[%s9861_s27 + $0x10] sm:$0xff] }
 0x844   :  { %v6982_v49 = vpop.eup %6981  ;;  %v8543_v0 = vadd.f32 %v8467_v35, %v2641_v41 }
 0x845   :  { %v6984_v9 = vpop.eup %6983  ;;  %v2709_v10 = vadd.f32 1.0, %v6982_v49  ;;  %v5738_v5 = vmul.f32 -1.442695, %v8539_v62 }
 0x846   :  { %v2708_v63 = vadd.f32 1.0, %v6984_v9  ;;  %v5737_v12 = vmul.f32 -1.442695, %v8543_v0  ;;  %v3027_v9 = vld [vmem:[%s9861_s27 + $0x20] sm:$0xff] }
 0x847   :  { %6993 = vrcp.f32 %v2709_v10 }
 0x848   :  { %6995 = vrcp.f32 %v2708_v63 }
 0x849   :  { %v6986_v3 = vpop.eup %6985  ;;  %6997 = vpow2.f32 %v5738_v5 }
 0x84a   :  { %v6988_v11 = vpop.eup %6987  ;;  %6999 = vpow2.f32 %v5737_v12  ;;  %2780 = vrot.lane.b32.xlu0 %v6986_v3, %s7204_s2  ;;  %v3028_v12 = vld [vmem:[%s9861_s27 + $0x28] sm:$0xff]  ;;  %v3029_v3 = vld [vmem:[%s9861_s27 + $0x30] sm:$0xff] }
 0x84b   :  { %2778 = vrot.lane.b32.xlu1 %v6988_v11, %s7204_s2 }
 0x84c   :  { %v6990_v13 = vpop.eup %6989 }
 0x84d   :  { %v6992_v35 = vpop.eup %6991  ;;  %v2711_v14 = vadd.f32 1.0, %v6990_v13 }
 0x84e   :  { %v2710_v55 = vadd.f32 1.0, %v6992_v35 }
 0x84f   :  { %7001 = vrcp.f32 %v2711_v14  ;;  %v3030_v14 = vld [vmem:[%s9861_s27 + $0x38] sm:$0xff] }
 0x850   :  { %7003 = vrcp.f32 %v2710_v55  ;;  %v3031_v55 = vld [vmem:[%s9861_s27 + $0x40] sm:$0xff] }
 0x851   :  { %v6994_v20 = vpop.eup %6993 }
 0x852   :  { %v6996_v60 = vpop.eup %6995  ;;  %2784 = vrot.lane.b32.xlu0 %v6994_v20, %s7204_s2 }
 0x853   :  { %v6998_v56 = vpop.eup %6997  ;;  %2782 = vrot.lane.b32.xlu1 %v6996_v60, %s7204_s2 }
 0x854   :  { %v7000_v37 = vpop.eup %6999  ;;  %v2713_v42 = vadd.f32 1.0, %v6998_v56 }
 0x855   :  { %v2712_v25 = vadd.f32 1.0, %v7000_v37  ;;  %v3032_v37 = vld [vmem:[%s9861_s27 + $0x48] sm:$0xff] }
 0x856   :  { %7005 = vrcp.f32 %v2713_v42  ;;  %v3033_v42 = vld [vmem:[%s9861_s27 + $0x50] sm:$0xff] }
 0x857   :  { %7007 = vrcp.f32 %v2712_v25 }
 0x859   :  { %v7002_v18 = vpop.eup %7001 }
 0x85a   :  { %v7004_v27 = vpop.eup %7003  ;;  %2788 = vrot.lane.b32.xlu0 %v7002_v18, %s7204_s2 }
 0x85b   :  { %2786 = vrot.lane.b32.xlu1 %v7004_v27, %s7204_s2 }
 0x860   :  { %v7006_v29 = vpop.eup %7005 }
 0x861   :  { %v7008_v39 = vpop.eup %7007  ;;  %2792 = vrot.lane.b32.xlu0 %v7006_v29, %s7204_s2  ;;  %v3034_v29 = vld [vmem:[%s9861_s27 + $0x58] sm:$0xff] }
 0x862   :  { %2790 = vrot.lane.b32.xlu1 %v7008_v39, %s7204_s2  ;;  %v3035_v39 = vld [vmem:[%s9861_s27 + $0x60] sm:$0xff] }
 0x89c   :  { %v2765_v45 = vpop.permute.xlu0 %2764 }
 0x89d   :  { %v2763_v32 = vpop.permute.xlu1 %2762  ;;  %v2811_v19 = vmul.f32 %v2765_v45, %v8470_v4 }
 0x89e   :  { %v2810_v52 = vmul.f32 %v2763_v32, %v8473_v43 }
 0x8a0   :  { %6365 = vmatprep.mubr.msk.f32.mxu0 %vm211_vm0, %v2810_v52 }
 0x8a1   :  { %6366 = vmatmul.mubr.msk.f32.vlgmr.msra.gmra.mrb[34].mxu0 %vm211_vm0, %v2811_v19  ;;  %v3036_v19 = vld [vmem:[%s9861_s27 + $0x68] sm:$0xff] }
 0x8a4   :  { %v2769_v54 = vpop.permute.xlu0 %2768 }
 0x8a5   :  { %v2767_v40 = vpop.permute.xlu1 %2766  ;;  %v2813_v58 = vmul.f32 %v2769_v54, %v8478_v28  ;;  %v3037_v54 = vld [vmem:[%s9861_s27 + $0x70] sm:$0xff] }
 0x8a6   :  { %v2812_v1 = vmul.f32 %v2767_v40, %v8481_v48 }
 0x8a8   :  { %6368 = vmatprep.mubr.msk.f32.mxu0 %vm211_vm0, %v2812_v1 }
 0x8a9   :  { %6369 = vmatmul.mubr.msk.f32.gmra.mrb[36].mxu0 %vm211_vm0, %v2813_v58 }
 0x8ac   :  { %v2773_v6 = vpop.permute.xlu0 %2772 }
 0x8ad   :  { %v2771_v31 = vpop.permute.xlu1 %2770  ;;  %v2815_v4 = vmul.f32 %v2773_v6, %v8492_v2  ;;  %v3038_v6 = vld [vmem:[%s9861_s27 + $0x78] sm:$0xff] }
 0x8ae   :  { %v2814_v43 = vmul.f32 %v2771_v31, %v8495_v47  ;;  %v3848_v31 = vld [vmem:[%s9826_s14] sm:$0xff] }
 0x8b0   :  { %6371 = vmatprep.mubr.msk.f32.mxu0 %vm211_vm0, %v2814_v43  ;;  %v3849_v43 = vld [vmem:[%s9826_s14 + $0x8] sm:$0xff] }
 0x8b1   :  { %6372 = vmatmul.mubr.msk.f32.gmra.mrb[38].mxu0 %vm211_vm0, %v2815_v4  ;;  %v3850_v4 = vld [vmem:[%s9826_s14 + $0x10] sm:$0xff] }
 0x8b4   :  { %v2777_v21 = vpop.permute.xlu0 %2776 }
 0x8b5   :  { %v2775_v8 = vpop.permute.xlu1 %2774  ;;  %v2817_v28 = vmul.f32 %v2777_v21, %v8500_v26  ;;  %v6725_v21 = vpack.c.bf16 %v3849_v43, %v3848_v31 }
 0x8b6   :  { %v2816_v48 = vmul.f32 %v2775_v8, %v8503_v7  ;;  %v3851_v8 = vld [vmem:[%s9826_s14 + $0x18] sm:$0xff] }
 0x8b7   :  { %6726 = vmatprep.subr.bf16.mxu0 %v6725_v21 }
 0x8b8   :  { %6374 = vmatprep.mubr.msk.f32.mxu0 %vm211_vm0, %v2816_v48  ;;  %v6729_v48 = vpack.c.bf16 %v3851_v8, %v3850_v4  ;;  %6728 = vmatpush3.bf16.msra.mxu0 %v6725_v21 }
 0x8b9   :  { %6375 = vmatmul.mubr.msk.f32.gmra.mrb[40].mxu0 %vm211_vm0, %v2817_v28  ;;  %v3852_v28 = vld [vmem:[%s9826_s14 + $0x20] sm:$0xff] }
 0x8ba   :  { %6730 = vmatprep.subr.bf16.mxu0 %v6729_v48 }
 0x8bc   :  { %v2781_v15 = vpop.permute.xlu0 %2780  ;;  %6732 = vmatpush3.bf16.msra.mxu0 %v6729_v48 }
 0x8bd   :  { %v2779_v23 = vpop.permute.xlu1 %2778  ;;  %v2819_v2 = vmul.f32 %v2781_v15, %v8510_v30  ;;  %v3853_v15 = vld [vmem:[%s9826_s14 + $0x28] sm:$0xff] }
 0x8be   :  { %v2818_v47 = vmul.f32 %v2779_v23, %v8513_v33  ;;  %v6733_v23 = vpack.c.bf16 %v3853_v15, %v3852_v28 }
 0x8c0   :  { %6377 = vmatprep.mubr.msk.f32.mxu0 %vm211_vm0, %v2818_v47  ;;  %v3854_v47 = vld [vmem:[%s9826_s14 + $0x30] sm:$0xff]  ;;  %6734 = vmatprep.subr.bf16.mxu0 %v6733_v23 }
 0x8c1   :  { %6378 = vmatmul.mubr.msk.f32.gmra.mrb[42].mxu0 %vm211_vm0, %v2819_v2  ;;  %v3855_v2 = vld [vmem:[%s9826_s14 + $0x38] sm:$0xff] }
 0x8c2   :  { %6736 = vmatpush3.bf16.msra.mxu0 %v6733_v23 }
 0x8c4   :  { %v2785_v46 = vpop.permute.xlu0 %2784 }
 0x8c5   :  { %v2783_v17 = vpop.permute.xlu1 %2782  ;;  %v2821_v26 = vmul.f32 %v2785_v46, %v8520_v38  ;;  %v6737_v46 = vpack.c.bf16 %v3855_v2, %v3854_v47 }
 0x8c6   :  { %v2820_v7 = vmul.f32 %v2783_v17, %v8523_v22  ;;  %v3856_v17 = vld [vmem:[%s9826_s14 + $0x40] sm:$0xff] }
 0x8c7   :  { %6738 = vmatprep.subr.bf16.mxu0 %v6737_v46 }
 0x8c8   :  { %6380 = vmatprep.mubr.msk.f32.mxu0 %vm211_vm0, %v2820_v7  ;;  %v3857_v7 = vld [vmem:[%s9826_s14 + $0x48] sm:$0xff]  ;;  %6740 = vmatpush3.bf16.msra.mxu0 %v6737_v46 }
 0x8c9   :  { %6381 = vmatmul.mubr.msk.f32.gmra.mrb[44].mxu0 %vm211_vm0, %v2821_v26  ;;  %v6741_v26 = vpack.c.bf16 %v3857_v7, %v3856_v17 }
 0x8cb   :  { %6742 = vmatprep.subr.bf16.mxu0 %v6741_v26 }
 0x8cc   :  { %v2789_v50 = vpop.permute.xlu0 %2788  ;;  %6744 = vmatpush3.bf16.msra.mxu0 %v6741_v26 }
 0x8cd   :  { %v2787_v16 = vpop.permute.xlu1 %2786  ;;  %v2823_v30 = vmul.f32 %v2789_v50, %v8530_v36  ;;  %v3858_v50 = vld [vmem:[%s9826_s14 + $0x50] sm:$0xff] }
 0x8ce   :  { %v2822_v33 = vmul.f32 %v2787_v16, %v8533_v44  ;;  %v3023_v44 = vld [vmem:[%s9861_s27] sm:$0xff]  ;;  %v3859_v16 = vld [vmem:[%s9826_s14 + $0x58] sm:$0xff] }
 0x8cf   :  { %6393 = vmatprep.mubr.msk.f32.mxu1 %vm847_vm3, %v3023_v44 }
 0x8d0   :  { %6383 = vmatprep.mubr.msk.f32.mxu0 %vm211_vm0, %v2822_v33  ;;  %v6745_v33 = vpack.c.bf16 %v3859_v16, %v3858_v50 }
 0x8d1   :  { %6384 = vmatmul.mubr.msk.f32.gmra.mrb[46].mxu0 %vm211_vm0, %v2823_v30  ;;  %v5771_v30 = vld [vmem:[%s9827_s13] ss:$0 sm:$0xff] }
 0x8d2   :  { %6746 = vmatprep.subr.bf16.mxu0 %v6745_v33 }
 0x8d3   :  { %v2793_v24 = vpop.permute.xlu0 %2792  ;;  %6748 = vmatpush3.bf16.msra.mxu0 %v6745_v33 }
 0x8d4   :  { %v2791_v51 = vpop.permute.xlu1 %2790  ;;  %v2825_v38 = vmul.f32 %v2793_v24, %v8539_v62 }
 0x8d5   :  { %v2824_v22 = vmul.f32 %v2791_v51, %v8543_v0  ;;  %v3026_v0 = vld [vmem:[%s9861_s27 + $0x18] sm:$0xff] }
 0x8d7   :  { %6386 = vmatprep.mubr.msk.f32.mxu0 %vm211_vm0, %v2824_v22 }
 0x8d8   :  { %6387 = vmatmul.mubr.msk.f32.gmra.mrb[48].mxu0 %vm211_vm0, %v2825_v38 }
 0x974   :  { %v6367_v36 = vpop.f32.mrb[34].mxu0 }
 0x975   :  { %v2944_v53 = vpop.f32.mrb[35].mxu0 }
 0x976   :  { %v6693_v59 = vpack.c.bf16 %v6367_v36, %v2944_v53 }
 0x978   :  { %6694 = vmatprep.subr.bf16.mxu1 %v6693_v59 }
 0x979   :  { %6696 = vmatpush3.bf16.msra.mxu1 %v6693_v59 }
 0x97c   :  { %v6370_v62 = vpop.f32.mrb[36].mxu0  ;;  %6394 = vmatmul.mubr.msk.f32.vlgmr.msra.gmra.mrb[46].mxu1 %vm847_vm3, %v3024_v61 }
 0x97d   :  { %v2954_v41 = vpop.f32.mrb[37].mxu0  ;;  %6400 = vmatprep.mubr.msk.f32.mxu1 %vm847_vm3, %v3025_v57 }
 0x97e   :  { %v6697_v49 = vpack.c.bf16 %v6370_v62, %v2954_v41 }
 0x980   :  { %6698 = vmatprep.subr.bf16.mxu1 %v6697_v49 }
 0x981   :  { %6700 = vmatpush3.bf16.msra.mxu1 %v6697_v49 }
 0x984   :  { %v6373_v10 = vpop.f32.mrb[38].mxu0  ;;  %6401 = vmatmul.mubr.msk.f32.vlgmr.msra.gmra.mrb[48].mxu1 %vm847_vm3, %v3026_v0 }
 0x985   :  { %v2964_v5 = vpop.f32.mrb[39].mxu0  ;;  %6407 = vmatprep.mubr.msk.f32.mxu1 %vm847_vm3, %v3027_v9 }
 0x986   :  { %v6701_v63 = vpack.c.bf16 %v6373_v10, %v2964_v5 }
 0x988   :  { %6702 = vmatprep.subr.bf16.mxu1 %v6701_v63 }
 0x989   :  { %6704 = vmatpush3.bf16.msra.mxu1 %v6701_v63 }
 0x98c   :  { %v6376_v11 = vpop.f32.mrb[40].mxu0  ;;  %6408 = vmatmul.mubr.msk.f32.vlgmr.msra.gmra.mrb[50].mxu1 %vm847_vm3, %v3028_v12 }
 0x98d   :  { %v2974_v13 = vpop.f32.mrb[41].mxu0  ;;  %6414 = vmatprep.mubr.msk.f32.mxu1 %vm847_vm3, %v3029_v3 }
 0x98e   :  { %v6705_v35 = vpack.c.bf16 %v6376_v11, %v2974_v13 }
 0x990   :  { %6706 = vmatprep.subr.bf16.mxu1 %v6705_v35 }
 0x991   :  { %6708 = vmatpush3.bf16.msra.mxu1 %v6705_v35 }
 0x994   :  { %v6379_v20 = vpop.f32.mrb[42].mxu0  ;;  %6415 = vmatmul.mubr.msk.f32.vlgmr.msra.gmra.mrb[52].mxu1 %vm847_vm3, %v3030_v14 }
 0x995   :  { %v2984_v60 = vpop.f32.mrb[43].mxu0  ;;  %6421 = vmatprep.mubr.msk.f32.mxu1 %vm847_vm3, %v3031_v55 }
 0x996   :  { %v6709_v56 = vpack.c.bf16 %v6379_v20, %v2984_v60 }
 0x998   :  { %6710 = vmatprep.subr.bf16.mxu1 %v6709_v56 }
 0x999   :  { %6712 = vmatpush3.bf16.msra.mxu1 %v6709_v56 }
 0x99c   :  { %v6382_v25 = vpop.f32.mrb[44].mxu0  ;;  %6422 = vmatmul.mubr.msk.f32.vlgmr.msra.gmra.mrb[54].mxu1 %vm847_vm3, %v3032_v37 }
 0x99d   :  { %v2994_v18 = vpop.f32.mrb[45].mxu0  ;;  %6428 = vmatprep.mubr.msk.f32.mxu1 %vm847_vm3, %v3033_v42 }
 0x99e   :  { %v6713_v27 = vpack.c.bf16 %v6382_v25, %v2994_v18 }
 0x9a0   :  { %6714 = vmatprep.subr.bf16.mxu1 %v6713_v27 }
 0x9a1   :  { %6716 = vmatpush3.bf16.msra.mxu1 %v6713_v27 }
 0x9a4   :  { %v6385_v45 = vpop.f32.mrb[46].mxu0  ;;  %6429 = vmatmul.mubr.msk.f32.vlgmr.msra.gmra.mrb[56].mxu1 %vm847_vm3, %v3034_v29 }
 0x9a5   :  { %v3004_v32 = vpop.f32.mrb[47].mxu0  ;;  %6435 = vmatprep.mubr.msk.f32.mxu1 %vm847_vm3, %v3035_v39 }
 0x9a6   :  { %v6717_v52 = vpack.c.bf16 %v6385_v45, %v3004_v32 }
 0x9a8   :  { %6718 = vmatprep.subr.bf16.mxu1 %v6717_v52 }
 0x9a9   :  { %6720 = vmatpush3.bf16.msra.mxu1 %v6717_v52 }
 0x9ab   :  { %v6388_v40 = vpop.f32.mrb[48].mxu0 }
 0x9ac   :  { %v3014_v1 = vpop.f32.mrb[49].mxu0  ;;  %6436 = vmatmul.mubr.msk.f32.vlgmr.msra.gmra.mrb[58].mxu1 %vm847_vm3, %v3036_v19 }
 0x9ad   :  { %v6721_v58 = vpack.c.bf16 %v6388_v40, %v3014_v1  ;;  %6442 = vmatprep.mubr.msk.f32.mxu1 %vm847_vm3, %v3037_v54 }
 0x9af   :  { %6722 = vmatprep.subr.bf16.mxu1 %v6721_v58 }
 0x9b0   :  { %6724 = vmatpush3.bf16.msra.mxu1 %v6721_v58 }
 0x9b3   :  { %6443 = vmatmul.mubr.msk.f32.vlgmr.msra.gmra.mrb[60].mxu1 %vm847_vm3, %v3038_v6 }
 0xa4f   :  { %v6395_v24 = vpop.f32.mrb[46].mxu1 }
 0xa50   :  { %v8690_v51 = vadd.f32 %v6395_v24, %v5771_v30  ;;  %v3111_v22 = vpop.f32.mrb[47].mxu1 }
 0xa51   :  { %v8692_v38 = vadd.f32 %v5771_v30, %v3111_v22 }
 0xa52   :  { %3728 = vrot.lane.b32.xlu0 %v8690_v51, %s7202_s29 }
 0xa53   :  { %3726 = vrot.lane.b32.xlu1 %v8692_v38, %s7202_s29 }
 0xa57   :  { %v6402_v44 = vpop.f32.mrb[48].mxu1 }
 0xa58   :  { %v8698_v36 = vadd.f32 %v6402_v44, %v5771_v30  ;;  %v3192_v53 = vpop.f32.mrb[49].mxu1 }
 0xa59   :  { %v8700_v59 = vadd.f32 %v5771_v30, %v3192_v53 }
 0xa5a   :  { %3776 = vrot.lane.b32.xlu0 %v8698_v36, %s7201_s1 }
 0xa5b   :  { %3774 = vrot.lane.b32.xlu1 %v8700_v59, %s7201_s1 }
 0xa5e   :  { %3732 = vrot.lane.b32.xlu0 %v8698_v36, %s7202_s29 }
 0xa5f   :  { %3730 = vrot.lane.b32.xlu1 %v8700_v59, %s7202_s29  ;;  %v6409_v61 = vpop.f32.mrb[50].mxu1 }
 0xa60   :  { %v8710_v57 = vadd.f32 %v6409_v61, %v5771_v30  ;;  %v3273_v62 = vpop.f32.mrb[51].mxu1 }
 0xa61   :  { %v8712_v41 = vadd.f32 %v5771_v30, %v3273_v62 }
 0xa62   :  { %3780 = vrot.lane.b32.xlu0 %v8710_v57, %s7201_s1 }
 0xa63   :  { %3778 = vrot.lane.b32.xlu1 %v8712_v41, %s7201_s1 }
 0xa66   :  { %3736 = vrot.lane.b32.xlu0 %v8710_v57, %s7202_s29 }
 0xa67   :  { %3734 = vrot.lane.b32.xlu1 %v8712_v41, %s7202_s29  ;;  %v6416_v49 = vpop.f32.mrb[52].mxu1 }
 0xa68   :  { %v8722_v0 = vadd.f32 %v6416_v49, %v5771_v30  ;;  %v3354_v9 = vpop.f32.mrb[53].mxu1 }
 0xa69   :  { %v8724_v10 = vadd.f32 %v5771_v30, %v3354_v9 }
 0xa6a   :  { %3784 = vrot.lane.b32.xlu0 %v8722_v0, %s7201_s1 }
 0xa6b   :  { %3782 = vrot.lane.b32.xlu1 %v8724_v10, %s7201_s1 }
 0xa6e   :  { %3740 = vrot.lane.b32.xlu0 %v8722_v0, %s7202_s29 }
 0xa6f   :  { %3738 = vrot.lane.b32.xlu1 %v8724_v10, %s7202_s29  ;;  %v6423_v5 = vpop.f32.mrb[54].mxu1 }
 0xa70   :  { %v8734_v63 = vadd.f32 %v6423_v5, %v5771_v30  ;;  %v3435_v12 = vpop.f32.mrb[55].mxu1 }
 0xa71   :  { %v8736_v3 = vadd.f32 %v5771_v30, %v3435_v12 }
 0xa72   :  { %3788 = vrot.lane.b32.xlu0 %v8734_v63, %s7201_s1 }
 0xa73   :  { %3786 = vrot.lane.b32.xlu1 %v8736_v3, %s7201_s1 }
 0xa76   :  { %3744 = vrot.lane.b32.xlu0 %v8734_v63, %s7202_s29 }
 0xa77   :  { %3742 = vrot.lane.b32.xlu1 %v8736_v3, %s7202_s29  ;;  %v6430_v11 = vpop.f32.mrb[56].mxu1 }
 0xa78   :  { %v8746_v13 = vadd.f32 %v6430_v11, %v5771_v30  ;;  %v3516_v35 = vpop.f32.mrb[57].mxu1 }
 0xa79   :  { %v8748_v14 = vadd.f32 %v5771_v30, %v3516_v35 }
 0xa7a   :  { %3792 = vrot.lane.b32.xlu0 %v8746_v13, %s7201_s1 }
 0xa7b   :  { %3790 = vrot.lane.b32.xlu1 %v8748_v14, %s7201_s1 }
 0xa7e   :  { %3748 = vrot.lane.b32.xlu0 %v8746_v13, %s7202_s29 }
 0xa7f   :  { %3746 = vrot.lane.b32.xlu1 %v8748_v14, %s7202_s29  ;;  %v6437_v55 = vpop.f32.mrb[58].mxu1 }
 0xa80   :  { %v8758_v20 = vadd.f32 %v6437_v55, %v5771_v30  ;;  %v3597_v60 = vpop.f32.mrb[59].mxu1 }
 0xa81   :  { %v8760_v56 = vadd.f32 %v5771_v30, %v3597_v60 }
 0xa82   :  { %3796 = vrot.lane.b32.xlu0 %v8758_v20, %s7201_s1 }
 0xa83   :  { %3794 = vrot.lane.b32.xlu1 %v8760_v56, %s7201_s1 }
 0xa86   :  { %3752 = vrot.lane.b32.xlu0 %v8758_v20, %s7202_s29  ;;  %v6444_v37 = vpop.f32.mrb[60].mxu1 }
 0xa87   :  { %3750 = vrot.lane.b32.xlu1 %v8760_v56, %s7202_s29  ;;  %v3709_v42 = vadd.f32 %v6444_v37, %v5771_v30  ;;  %v3678_v25 = vpop.f32.mrb[61].mxu1 }
 0xa88   :  { %v3708_v18 = vadd.f32 %v5771_v30, %v3678_v25 }
 0xa8a   :  { %3800 = vrot.lane.b32.xlu0 %v3709_v42, %s7201_s1 }
 0xa8b   :  { %3798 = vrot.lane.b32.xlu1 %v3708_v18, %s7201_s1 }
 0xa8e   :  { %3756 = vrot.lane.b32.xlu0 %v3709_v42, %s7202_s29 }
 0xa8f   :  { %3754 = vrot.lane.b32.xlu1 %v3708_v18, %s7202_s29 }
 0xac4   :  { %v3729_v27 = vpop.permute.xlu0 %3728 }
 0xac5   :  { %v3727_v29 = vpop.permute.xlu1 %3726  ;;  %v3817_v52 = vsel %vm211_vm0, 0.0, %v3729_v27 }
 0xac6   :  { %v3816_v45 = vsel %vm211_vm0, 0.0, %v3727_v29  ;;  %v8841_v29 = vld [vmem:[%s9828_s15] ss:$0 sm:$0xff] }
 0xacc   :  { %v3777_v39 = vpop.permute.xlu0 %3776 }
 0xacd   :  { %v3775_v32 = vpop.permute.xlu1 %3774  ;;  %v3833_v54 = vsel %vm228_vm1, %v3817_v52, %v3777_v39 }
 0xace   :  { %v3832_v19 = vsel %vm228_vm1, %v3816_v45, %v3775_v32 }
 0xacf   :  { %6469 = vmatprep.mubr.msk.f32.mxu0 %vm264_vm2, %v3832_v19 }
 0xad0   :  { %v3733_v40 = vpop.permute.xlu0 %3732  ;;  %6470 = vmatmul.mubr.msk.f32.vlgmr.msra.gmra.mrb[50].mxu0 %vm264_vm2, %v3833_v54 }
 0xad1   :  { %v3731_v1 = vpop.permute.xlu1 %3730  ;;  %v3819_v43 = vsel %vm211_vm0, %v8690_v51, %v3733_v40 }
 0xad2   :  { %v3818_v6 = vsel %vm211_vm0, %v8692_v38, %v3731_v1 }
 0xad4   :  { %v3781_v58 = vpop.permute.xlu0 %3780 }
 0xad5   :  { %v3779_v31 = vpop.permute.xlu1 %3778  ;;  %v3835_v21 = vsel %vm228_vm1, %v3819_v43, %v3781_v58 }
 0xad6   :  { %v3834_v4 = vsel %vm228_vm1, %v3818_v6, %v3779_v31 }
 0xad7   :  { %6472 = vmatprep.mubr.msk.f32.mxu0 %vm264_vm2, %v3834_v4 }
 0xad8   :  { %v3737_v8 = vpop.permute.xlu0 %3736  ;;  %6473 = vmatmul.mubr.msk.f32.gmra.mrb[52].mxu0 %vm264_vm2, %v3835_v21 }
 0xad9   :  { %v3735_v48 = vpop.permute.xlu1 %3734  ;;  %v3821_v47 = vsel %vm211_vm0, %v8698_v36, %v3737_v8 }
 0xada   :  { %v3820_v15 = vsel %vm211_vm0, %v8700_v59, %v3735_v48 }
 0xadc   :  { %v3785_v28 = vpop.permute.xlu0 %3784 }
 0xadd   :  { %v3783_v23 = vpop.permute.xlu1 %3782  ;;  %v3837_v46 = vsel %vm228_vm1, %v3821_v47, %v3785_v28 }
 0xade   :  { %v3836_v2 = vsel %vm228_vm1, %v3820_v15, %v3783_v23 }
 0xadf   :  { %6475 = vmatprep.mubr.msk.f32.mxu0 %vm264_vm2, %v3836_v2 }
 0xae0   :  { %v3741_v17 = vpop.permute.xlu0 %3740  ;;  %6476 = vmatmul.mubr.msk.f32.gmra.mrb[54].mxu0 %vm264_vm2, %v3837_v46 }
 0xae1   :  { %v3739_v7 = vpop.permute.xlu1 %3738  ;;  %v3823_v33 = vsel %vm211_vm0, %v8710_v57, %v3741_v17 }
 0xae2   :  { %v3822_v50 = vsel %vm211_vm0, %v8712_v41, %v3739_v7 }
 0xae4   :  { %v3789_v26 = vpop.permute.xlu0 %3788 }
 0xae5   :  { %v3787_v16 = vpop.permute.xlu1 %3786  ;;  %v3839_v24 = vsel %vm228_vm1, %v3823_v33, %v3789_v26 }
 0xae6   :  { %v3838_v30 = vsel %vm228_vm1, %v3822_v50, %v3787_v16 }
 0xae7   :  { %6478 = vmatprep.mubr.msk.f32.mxu0 %vm264_vm2, %v3838_v30 }
 0xae8   :  { %v3745_v51 = vpop.permute.xlu0 %3744  ;;  %6479 = vmatmul.mubr.msk.f32.gmra.mrb[56].mxu0 %vm264_vm2, %v3839_v24 }
 0xae9   :  { %v3743_v22 = vpop.permute.xlu1 %3742  ;;  %v3825_v53 = vsel %vm211_vm0, %v8722_v0, %v3745_v51 }
 0xaea   :  { %v3824_v44 = vsel %vm211_vm0, %v8724_v10, %v3743_v22 }
 0xaec   :  { %v3793_v38 = vpop.permute.xlu0 %3792 }
 0xaed   :  { %v3791_v36 = vpop.permute.xlu1 %3790  ;;  %v3841_v61 = vsel %vm228_vm1, %v3825_v53, %v3793_v38 }
 0xaee   :  { %v3840_v59 = vsel %vm228_vm1, %v3824_v44, %v3791_v36 }
 0xaef   :  { %6481 = vmatprep.mubr.msk.f32.mxu0 %vm264_vm2, %v3840_v59 }
 0xaf0   :  { %v3749_v57 = vpop.permute.xlu0 %3748  ;;  %6482 = vmatmul.mubr.msk.f32.gmra.mrb[58].mxu0 %vm264_vm2, %v3841_v61 }
 0xaf1   :  { %v3747_v62 = vpop.permute.xlu1 %3746  ;;  %v3827_v10 = vsel %vm211_vm0, %v8734_v63, %v3749_v57 }
 0xaf2   :  { %v3826_v49 = vsel %vm211_vm0, %v8736_v3, %v3747_v62 }
 0xaf4   :  { %v3797_v41 = vpop.permute.xlu0 %3796 }
 0xaf5   :  { %v3795_v9 = vpop.permute.xlu1 %3794  ;;  %v3843_v5 = vsel %vm228_vm1, %v3827_v10, %v3797_v41 }
 0xaf6   :  { %v3842_v0 = vsel %vm228_vm1, %v3826_v49, %v3795_v9 }
 0xaf7   :  { %6484 = vmatprep.mubr.msk.f32.mxu0 %vm264_vm2, %v3842_v0 }
 0xaf8   :  { %v3753_v12 = vpop.permute.xlu0 %3752  ;;  %6485 = vmatmul.mubr.msk.f32.gmra.mrb[60].mxu0 %vm264_vm2, %v3843_v5 }
 0xaf9   :  { %v3751_v11 = vpop.permute.xlu1 %3750  ;;  %v3829_v3 = vsel %vm211_vm0, %v8746_v13, %v3753_v12 }
 0xafa   :  { %v3828_v55 = vsel %vm211_vm0, %v8748_v14, %v3751_v11 }
 0xafc   :  { %v3801_v35 = vpop.permute.xlu0 %3800 }
 0xafd   :  { %v3799_v60 = vpop.permute.xlu1 %3798  ;;  %v3845_v37 = vsel %vm228_vm1, %v3829_v3, %v3801_v35 }
 0xafe   :  { %v3844_v63 = vsel %vm228_vm1, %v3828_v55, %v3799_v60 }
 0xaff   :  { %6487 = vmatprep.mubr.msk.f32.mxu0 %vm264_vm2, %v3844_v63 }
 0xb00   :  { %v3757_v42 = vpop.permute.xlu0 %3756  ;;  %6488 = vmatmul.mubr.msk.f32.gmra.mrb[62].mxu0 %vm264_vm2, %v3845_v37 }
 0xb01   :  { %v3831_v25 = vsel %vm211_vm0, %v8758_v20, %v3757_v42  ;;  %v3755_v18 = vpop.permute.xlu1 %3754 }
 0xb02   :  { %v3830_v14 = vsel %vm211_vm0, %v8760_v56, %v3755_v18  ;;  %v3847_v13 = vsel %vm228_vm1, %v3831_v25, %v7567_v34 }
 0xb03   :  { %v3846_v27 = vsel %vm228_vm1, %v3830_v14, %v7567_v34 }
 0xb04   :  { %6490 = vmatprep.mubr.msk.f32.mxu0 %vm264_vm2, %v3846_v27 }
 0xb05   :  { %6491 = vmatmul.mubr.msk.f32.gmra.mrb[64].mxu0 %vm264_vm2, %v3847_v13 }
 0xba3   :  { %v6471_v20 = vpop.f32.mrb[50].mxu0 }
 0xba4   :  { %v8844_v39 = vadd.f32 %v6471_v20, %v8841_v29  ;;  %v3981_v56 = vpop.f32.mrb[51].mxu0 }
 0xba5   :  { %v8847_v45 = vadd.f32 %v8841_v29, %v3981_v56 }
 0xba6   :  { %v5790_v32 = vmul.f32 -1.442695, %v8844_v39 }
 0xba7   :  { %v5789_v52 = vmul.f32 -1.442695, %v8847_v45 }
 0xba8   :  { %7009 = vpow2.f32 %v5790_v32 }
 0xba9   :  { %7011 = vpow2.f32 %v5789_v52 }
 0xbab   :  { %v6474_v19 = vpop.f32.mrb[52].mxu0 }
 0xbac   :  { %v8852_v54 = vadd.f32 %v6474_v19, %v8841_v29  ;;  %v3991_v40 = vpop.f32.mrb[53].mxu0 }
 0xbad   :  { %v8855_v1 = vadd.f32 %v8841_v29, %v3991_v40 }
 0xbae   :  { %v5792_v58 = vmul.f32 -1.442695, %v8852_v54 }
 0xbaf   :  { %v5791_v6 = vmul.f32 -1.442695, %v8855_v1 }
 0xbb0   :  { %7013 = vpow2.f32 %v5792_v58 }
 0xbb1   :  { %7015 = vpow2.f32 %v5791_v6 }
 0xbb2   :  { %v7010_v31 = vpop.eup %7009 }
 0xbb3   :  { %v7012_v43 = vpop.eup %7011  ;;  %v4109_v4 = vadd.f32 1.0, %v7010_v31  ;;  %v6477_v21 = vpop.f32.mrb[54].mxu0 }
 0xbb4   :  { %v4108_v8 = vadd.f32 1.0, %v7012_v43  ;;  %v8860_v48 = vadd.f32 %v6477_v21, %v8841_v29  ;;  %v4001_v28 = vpop.f32.mrb[55].mxu0 }
 0xbb5   :  { %7017 = vrcp.f32 %v4109_v4  ;;  %v8863_v15 = vadd.f32 %v8841_v29, %v4001_v28 }
 0xbb6   :  { %7019 = vrcp.f32 %v4108_v8  ;;  %v5794_v23 = vmul.f32 -1.442695, %v8860_v48 }
 0xbb7   :  { %v5793_v47 = vmul.f32 -1.442695, %v8863_v15 }
 0xbb8   :  { %7021 = vpow2.f32 %v5794_v23 }
 0xbb9   :  { %7023 = vpow2.f32 %v5793_v47 }
 0xbba   :  { %v7014_v2 = vpop.eup %7013 }
 0xbbb   :  { %v7016_v46 = vpop.eup %7015  ;;  %v4111_v17 = vadd.f32 1.0, %v7014_v2  ;;  %v6480_v7 = vpop.f32.mrb[56].mxu0 }
 0xbbc   :  { %v4110_v26 = vadd.f32 1.0, %v7016_v46  ;;  %v8868_v50 = vadd.f32 %v6480_v7, %v8841_v29  ;;  %v4011_v16 = vpop.f32.mrb[57].mxu0 }
 0xbbd   :  { %7025 = vrcp.f32 %v4111_v17  ;;  %v8871_v33 = vadd.f32 %v8841_v29, %v4011_v16 }
 0xbbe   :  { %7027 = vrcp.f32 %v4110_v26  ;;  %v5796_v30 = vmul.f32 -1.442695, %v8868_v50 }
 0xbbf   :  { %v7018_v24 = vpop.eup %7017  ;;  %v5795_v51 = vmul.f32 -1.442695, %v8871_v33 }
 0xbc0   :  { %v7020_v22 = vpop.eup %7019  ;;  %7029 = vpow2.f32 %v5796_v30  ;;  %4174 = vrot.lane.b32.xlu0 %v7018_v24, %s7204_s2 }
 0xbc1   :  { %7031 = vpow2.f32 %v5795_v51  ;;  %4172 = vrot.lane.b32.xlu1 %v7020_v22, %s7204_s2 }
 0xbc2   :  { %v7022_v38 = vpop.eup %7021 }
 0xbc3   :  { %v7024_v44 = vpop.eup %7023  ;;  %v4113_v36 = vadd.f32 1.0, %v7022_v38  ;;  %v6483_v53 = vpop.f32.mrb[58].mxu0 }
 0xbc4   :  { %v4112_v59 = vadd.f32 1.0, %v7024_v44  ;;  %v8878_v61 = vadd.f32 %v6483_v53, %v8841_v29  ;;  %v4021_v57 = vpop.f32.mrb[59].mxu0 }
 0xbc5   :  { %7033 = vrcp.f32 %v4113_v36  ;;  %v8881_v62 = vadd.f32 %v8841_v29, %v4021_v57 }
 0xbc6   :  { %7035 = vrcp.f32 %v4112_v59  ;;  %v5798_v41 = vmul.f32 -1.442695, %v8878_v61 }
 0xbc7   :  { %v7026_v49 = vpop.eup %7025  ;;  %v5797_v9 = vmul.f32 -1.442695, %v8881_v62 }
 0xbc8   :  { %v7028_v10 = vpop.eup %7027  ;;  %7037 = vpow2.f32 %v5798_v41  ;;  %4178 = vrot.lane.b32.xlu0 %v7026_v49, %s7204_s2 }
 0xbc9   :  { %7039 = vpow2.f32 %v5797_v9  ;;  %4176 = vrot.lane.b32.xlu1 %v7028_v10, %s7204_s2 }
 0xbca   :  { %v7030_v0 = vpop.eup %7029 }
 0xbcb   :  { %v7032_v5 = vpop.eup %7031  ;;  %v4115_v12 = vadd.f32 1.0, %v7030_v0  ;;  %v6486_v11 = vpop.f32.mrb[60].mxu0 }
 0xbcc   :  { %v4114_v35 = vadd.f32 1.0, %v7032_v5  ;;  %v8888_v55 = vadd.f32 %v6486_v11, %v8841_v29  ;;  %v4031_v60 = vpop.f32.mrb[61].mxu0 }
 0xbcd   :  { %7041 = vrcp.f32 %v4115_v12  ;;  %v8891_v3 = vadd.f32 %v8841_v29, %v4031_v60 }
 0xbce   :  { %7043 = vrcp.f32 %v4114_v35  ;;  %v5800_v63 = vmul.f32 -1.442695, %v8888_v55 }
 0xbcf   :  { %v7034_v37 = vpop.eup %7033  ;;  %v5799_v42 = vmul.f32 -1.442695, %v8891_v3 }
 0xbd0   :  { %v7036_v25 = vpop.eup %7035  ;;  %7045 = vpow2.f32 %v5800_v63  ;;  %4182 = vrot.lane.b32.xlu0 %v7034_v37, %s7204_s2 }
 0xbd1   :  { %7047 = vpow2.f32 %v5799_v42  ;;  %4180 = vrot.lane.b32.xlu1 %v7036_v25, %s7204_s2 }
 0xbd2   :  { %v7038_v18 = vpop.eup %7037 }
 0xbd3   :  { %v7040_v14 = vpop.eup %7039  ;;  %v4117_v27 = vadd.f32 1.0, %v7038_v18  ;;  %v6489_v13 = vpop.f32.mrb[62].mxu0 }
 0xbd4   :  { %v4116_v20 = vadd.f32 1.0, %v7040_v14  ;;  %v8898_v56 = vadd.f32 %v6489_v13, %v8841_v29  ;;  %v4041_v32 = vpop.f32.mrb[63].mxu0 }
 0xbd5   :  { %7049 = vrcp.f32 %v4117_v27  ;;  %v8901_v52 = vadd.f32 %v8841_v29, %v4041_v32 }
 0xbd6   :  { %7051 = vrcp.f32 %v4116_v20  ;;  %v5802_v19 = vmul.f32 -1.442695, %v8898_v56 }
 0xbd7   :  { %v7042_v40 = vpop.eup %7041  ;;  %v5801_v58 = vmul.f32 -1.442695, %v8901_v52 }
 0xbd8   :  { %v7044_v6 = vpop.eup %7043  ;;  %7053 = vpow2.f32 %v5802_v19  ;;  %4186 = vrot.lane.b32.xlu0 %v7042_v40, %s7204_s2  ;;  %v6492_v31 = vpop.f32.mrb[64].mxu0 }
 0xbd9   :  { %7055 = vpow2.f32 %v5801_v58  ;;  %v8907_v43 = vadd.f32 %v6492_v31, %v8841_v29  ;;  %4184 = vrot.lane.b32.xlu1 %v7044_v6, %s7204_s2  ;;  %v4051_v4 = vpop.f32.mrb[65].mxu0 }
 0xbda   :  { %v7046_v21 = vpop.eup %7045  ;;  %v8911_v8 = vadd.f32 %v8841_v29, %v4051_v4 }
 0xbdb   :  { %v7048_v28 = vpop.eup %7047  ;;  %v4119_v23 = vadd.f32 1.0, %v7046_v21  ;;  %v5804_v47 = vmul.f32 -1.442695, %v8907_v43 }
 0xbdc   :  { %v4118_v2 = vadd.f32 1.0, %v7048_v28  ;;  %v5803_v46 = vmul.f32 -1.442695, %v8911_v8 }
 0xbdd   :  { %7057 = vrcp.f32 %v4119_v23 }
 0xbde   :  { %7059 = vrcp.f32 %v4118_v2 }
 0xbdf   :  { %v7050_v17 = vpop.eup %7049  ;;  %7061 = vpow2.f32 %v5804_v47 }
 0xbe0   :  { %v7052_v7 = vpop.eup %7051  ;;  %7063 = vpow2.f32 %v5803_v46  ;;  %4190 = vrot.lane.b32.xlu0 %v7050_v17, %s7204_s2 }
 0xbe1   :  { %4188 = vrot.lane.b32.xlu1 %v7052_v7, %s7204_s2 }
 0xbe2   :  { %v7054_v26 = vpop.eup %7053 }
 0xbe3   :  { %v7056_v29 = vpop.eup %7055  ;;  %v4121_v16 = vadd.f32 1.0, %v7054_v26 }
 0xbe4   :  { %v4120_v30 = vadd.f32 1.0, %v7056_v29 }
 0xbe5   :  { %7065 = vrcp.f32 %v4121_v16 }
 0xbe6   :  { %7067 = vrcp.f32 %v4120_v30 }
 0xbe7   :  { %v7058_v24 = vpop.eup %7057 }
 0xbe8   :  { %v7060_v51 = vpop.eup %7059  ;;  %4194 = vrot.lane.b32.xlu0 %v7058_v24, %s7204_s2 }
 0xbe9   :  { %v7062_v22 = vpop.eup %7061  ;;  %4192 = vrot.lane.b32.xlu1 %v7060_v51, %s7204_s2 }
 0xbea   :  { %v7064_v38 = vpop.eup %7063  ;;  %v4123_v44 = vadd.f32 1.0, %v7062_v22 }
 0xbeb   :  { %v4122_v36 = vadd.f32 1.0, %v7064_v38 }
 0xbec   :  { %7069 = vrcp.f32 %v4123_v44 }
 0xbed   :  { %7071 = vrcp.f32 %v4122_v36 }
 0xbef   :  { %v7066_v53 = vpop.eup %7065 }
 0xbf0   :  { %v7068_v59 = vpop.eup %7067  ;;  %4198 = vrot.lane.b32.xlu0 %v7066_v53, %s7204_s2 }
 0xbf1   :  { %4196 = vrot.lane.b32.xlu1 %v7068_v59, %s7204_s2 }
 0xbf6   :  { %v7070_v57 = vpop.eup %7069 }
 0xbf7   :  { %v7072_v41 = vpop.eup %7071  ;;  %4202 = vrot.lane.b32.xlu0 %v7070_v57, %s7204_s2 }
 0xbf8   :  { %4200 = vrot.lane.b32.xlu1 %v7072_v41, %s7204_s2 }
 0xc32   :  { %v4175_v49 = vpop.permute.xlu0 %4174 }
 0xc33   :  { %v8924_v9 = vmul.f32 %v4175_v49, %v8844_v39  ;;  %v4173_v10 = vpop.permute.xlu1 %4172 }
 0xc34   :  { %v8927_v0 = vmul.f32 %v4173_v10, %v8847_v45 }
 0xc35   :  { %v4239_v5 = vsel %vm211_vm0, %v8924_v9, 0.0 }
 0xc36   :  { %4240 = vadd.xlane.f32.xlu0 %v4239_v5  ;;  %v4236_v12 = vsel %vm211_vm0, %v8927_v0, 0.0 }
 0xc37   :  { %4237 = vadd.xlane.f32.xlu1 %v4236_v12 }
 0xc3a   :  { %v4179_v11 = vpop.permute.xlu0 %4178 }
 0xc3b   :  { %v8934_v35 = vmul.f32 %v4179_v11, %v8852_v54  ;;  %v4177_v60 = vpop.permute.xlu1 %4176 }
 0xc3c   :  { %v8937_v39 = vmul.f32 %v4177_v60, %v8855_v1 }
 0xc3d   :  { %v4245_v45 = vsel %vm211_vm0, %v8934_v35, 0.0 }
 0xc3e   :  { %4246 = vadd.xlane.f32.xlu1 %v4245_v45  ;;  %v4242_v63 = vsel %vm211_vm0, %v8937_v39, 0.0 }
 0xc3f   :  { %4243 = vadd.xlane.f32.xlu0 %v4242_v63 }
 0xc42   :  { %v4183_v37 = vpop.permute.xlu0 %4182 }
 0xc43   :  { %v8944_v42 = vmul.f32 %v4183_v37, %v8860_v48  ;;  %v4181_v25 = vpop.permute.xlu1 %4180 }
 0xc44   :  { %v8947_v54 = vmul.f32 %v4181_v25, %v8863_v15 }
 0xc45   :  { %v4251_v1 = vsel %vm211_vm0, %v8944_v42, 0.0 }
 0xc46   :  { %4252 = vadd.xlane.f32.xlu1 %v4251_v1  ;;  %v4248_v18 = vsel %vm211_vm0, %v8947_v54, 0.0 }
 0xc47   :  { %4249 = vadd.xlane.f32.xlu0 %v4248_v18 }
 0xc4a   :  { %v4187_v14 = vpop.permute.xlu0 %4186 }
 0xc4b   :  { %v8954_v27 = vmul.f32 %v4187_v14, %v8868_v50  ;;  %v4185_v13 = vpop.permute.xlu1 %4184 }
 0xc4c   :  { %v8957_v48 = vmul.f32 %v4185_v13, %v8871_v33 }
 0xc4d   :  { %v4257_v15 = vsel %vm211_vm0, %v8954_v27, 0.0 }
 0xc4e   :  { %4258 = vadd.xlane.f32.xlu1 %v4257_v15  ;;  %v4254_v20 = vsel %vm211_vm0, %v8957_v48, 0.0 }
 0xc4f   :  { %4255 = vadd.xlane.f32.xlu0 %v4254_v20 }
 0xc52   :  { %v4191_v32 = vpop.permute.xlu0 %4190 }
 0xc53   :  { %v8964_v19 = vmul.f32 %v4191_v32, %v8878_v61  ;;  %v4189_v40 = vpop.permute.xlu1 %4188 }
 0xc54   :  { %v8967_v50 = vmul.f32 %v4189_v40, %v8881_v62 }
 0xc55   :  { %v4263_v33 = vsel %vm211_vm0, %v8964_v19, 0.0 }
 0xc56   :  { %4264 = vadd.xlane.f32.xlu1 %v4263_v33  ;;  %v4260_v58 = vsel %vm211_vm0, %v8967_v50, 0.0 }
 0xc57   :  { %4261 = vadd.xlane.f32.xlu0 %v4260_v58 }
 0xc5a   :  { %v4195_v6 = vpop.permute.xlu0 %4194 }
 0xc5b   :  { %v8974_v31 = vmul.f32 %v4195_v6, %v8888_v55  ;;  %v4193_v4 = vpop.permute.xlu1 %4192 }
 0xc5c   :  { %v8977_v61 = vmul.f32 %v4193_v4, %v8891_v3 }
 0xc5d   :  { %v4269_v62 = vsel %vm211_vm0, %v8974_v31, 0.0 }
 0xc5e   :  { %4270 = vadd.xlane.f32.xlu1 %v4269_v62  ;;  %v4266_v21 = vsel %vm211_vm0, %v8977_v61, 0.0 }
 0xc5f   :  { %4267 = vadd.xlane.f32.xlu0 %v4266_v21 }
 0xc62   :  { %v4199_v28 = vpop.permute.xlu0 %4198 }
 0xc63   :  { %v8984_v23 = vmul.f32 %v4199_v28, %v8898_v56  ;;  %v4197_v47 = vpop.permute.xlu1 %4196 }
 0xc64   :  { %v8987_v55 = vmul.f32 %v4197_v47, %v8901_v52 }
 0xc65   :  { %v4275_v3 = vsel %vm211_vm0, %v8984_v23, 0.0 }
 0xc66   :  { %4276 = vadd.xlane.f32.xlu1 %v4275_v3  ;;  %v4272_v2 = vsel %vm211_vm0, %v8987_v55, 0.0 }
 0xc67   :  { %4273 = vadd.xlane.f32.xlu0 %v4272_v2 }
 0xc69   :  { %v4203_v46 = vpop.permute.xlu0 %4202 }
 0xc6a   :  { %v8994_v17 = vmul.f32 %v4203_v46, %v8907_v43  ;;  %v4201_v7 = vpop.permute.xlu1 %4200 }
 0xc6b   :  { %v8997_v56 = vmul.f32 %v4201_v7, %v8911_v8 }
 0xc6c   :  { %v4281_v52 = vsel %vm211_vm0, %v8994_v17, 0.0 }
 0xc6d   :  { %4282 = vadd.xlane.f32.xlu1 %v4281_v52  ;;  %v4278_v26 = vsel %vm211_vm0, %v8997_v56, 0.0 }
 0xc6e   :  { %4279 = vadd.xlane.f32.xlu0 %v4278_v26 }
 0xcc3   :  { %v4241_v29 = vpop.xlane.xlu0 %4240 }
 0xcc4   :  { %v4285_v16 = vmul.f32 0.03125, %v4241_v29  ;;  %v4238_v30 = vpop.xlane.xlu1 %4237 }
 0xcc5   :  { %v4284_v24 = vmul.f32 0.03125, %v4238_v30 }
 0xcc6   :  { %v9004_v51 = vsub.f32 %v8924_v9, %v4285_v16 }
 0xcc7   :  { %v9007_v43 = vsub.f32 %v8927_v0, %v4284_v24 }
 0xcc8   :  { %v4317_v8 = vmul.f32 %v9004_v51, %v9004_v51 }
 0xcc9   :  { %v4316_v22 = vmul.f32 %v9007_v43, %v9007_v43 }
 0xcca   :  { %v4335_v38 = vsel %vm211_vm0, %v4317_v8, 0.0 }
 0xccb   :  { %4336 = vadd.xlane.f32.xlu1 %v4335_v38  ;;  %v4247_v44 = vpop.xlane.xlu1 %4246  ;;  %v4332_v36 = vsel %vm211_vm0, %v4316_v22, 0.0 }
 0xccc   :  { %v4287_v53 = vmul.f32 0.03125, %v4247_v44  ;;  %v4244_v59 = vpop.xlane.xlu0 %4243  ;;  %4333 = vadd.xlane.f32.xlu0 %v4332_v36 }
 0xccd   :  { %v4286_v57 = vmul.f32 0.03125, %v4244_v59 }
 0xcce   :  { %v9016_v41 = vsub.f32 %v8934_v35, %v4287_v53 }
 0xccf   :  { %v9019_v49 = vsub.f32 %v8937_v39, %v4286_v57 }
 0xcd0   :  { %v4319_v9 = vmul.f32 %v9016_v41, %v9016_v41 }
 0xcd1   :  { %v4318_v10 = vmul.f32 %v9019_v49, %v9019_v49 }
 0xcd2   :  { %v4341_v0 = vsel %vm211_vm0, %v4319_v9, 0.0 }
 0xcd3   :  { %4342 = vadd.xlane.f32.xlu1 %v4341_v0  ;;  %v4253_v5 = vpop.xlane.xlu1 %4252  ;;  %v4338_v12 = vsel %vm211_vm0, %v4318_v10, 0.0 }
 0xcd4   :  { %v4289_v11 = vmul.f32 0.03125, %v4253_v5  ;;  %v4250_v60 = vpop.xlane.xlu0 %4249  ;;  %4339 = vadd.xlane.f32.xlu0 %v4338_v12 }
 0xcd5   :  { %v4288_v35 = vmul.f32 0.03125, %v4250_v60 }
 0xcd6   :  { %v9028_v45 = vsub.f32 %v8944_v42, %v4289_v11 }
 0xcd7   :  { %v9031_v39 = vsub.f32 %v8947_v54, %v4288_v35  ;;  %v4630_v35 = vld [vmem:[%s9829_s18 + $0x10] sm:$0xff] }
 0xcd8   :  { %v4321_v63 = vmul.f32 %v9028_v45, %v9028_v45 }
 0xcd9   :  { %v4320_v37 = vmul.f32 %v9031_v39, %v9031_v39 }
 0xcda   :  { %v4347_v25 = vsel %vm211_vm0, %v4321_v63, 0.0 }
 0xcdb   :  { %4348 = vadd.xlane.f32.xlu1 %v4347_v25  ;;  %v4259_v1 = vpop.xlane.xlu1 %4258  ;;  %v4344_v18 = vsel %vm211_vm0, %v4320_v37, 0.0  ;;  %v4631_v37 = vld [vmem:[%s9829_s18 + $0x18] sm:$0xff] }
 0xcdc   :  { %v4291_v14 = vmul.f32 0.03125, %v4259_v1  ;;  %v4256_v13 = vpop.xlane.xlu0 %4255  ;;  %4345 = vadd.xlane.f32.xlu0 %v4344_v18  ;;  %v6753_v25 = vpack.c.bf16 %v4631_v37, %v4630_v35  ;;  %v4632_v1 = vld [vmem:[%s9829_s18 + $0x20] sm:$0xff]  ;;  %v4633_v18 = vld [vmem:[%s9829_s18 + $0x28] sm:$0xff] }
 0xcdd   :  { %v4290_v42 = vmul.f32 0.03125, %v4256_v13  ;;  %v4634_v13 = vld [vmem:[%s9829_s18 + $0x30] sm:$0xff] }
 0xcde   :  { %v9040_v15 = vsub.f32 %v8954_v27, %v4291_v14  ;;  %v6757_v14 = vpack.c.bf16 %v4633_v18, %v4632_v1 }
 0xcdf   :  { %v9043_v54 = vsub.f32 %v8957_v48, %v4290_v42  ;;  %v4635_v42 = vld [vmem:[%s9829_s18 + $0x38] sm:$0xff] }
 0xce0   :  { %v4323_v20 = vmul.f32 %v9040_v15, %v9040_v15 }
 0xce1   :  { %v4322_v32 = vmul.f32 %v9043_v54, %v9043_v54 }
 0xce2   :  { %v4353_v40 = vsel %vm211_vm0, %v4323_v20, 0.0  ;;  %v6761_v20 = vpack.c.bf16 %v4635_v42, %v4634_v13 }
 0xce3   :  { %4354 = vadd.xlane.f32.xlu1 %v4353_v40  ;;  %v4265_v33 = vpop.xlane.xlu1 %4264  ;;  %v4350_v58 = vsel %vm211_vm0, %v4322_v32, 0.0 }
 0xce4   :  { %v4293_v6 = vmul.f32 0.03125, %v4265_v33  ;;  %v4262_v4 = vpop.xlane.xlu0 %4261  ;;  %4351 = vadd.xlane.f32.xlu0 %v4350_v58 }
 0xce5   :  { %v4292_v27 = vmul.f32 0.03125, %v4262_v4 }
 0xce6   :  { %v9052_v62 = vsub.f32 %v8964_v19, %v4293_v6 }
 0xce7   :  { %v9055_v48 = vsub.f32 %v8967_v50, %v4292_v27 }
 0xce8   :  { %v4325_v21 = vmul.f32 %v9052_v62, %v9052_v62 }
 0xce9   :  { %v4324_v28 = vmul.f32 %v9055_v48, %v9055_v48 }
 0xcea   :  { %v4359_v47 = vsel %vm211_vm0, %v4325_v21, 0.0 }
 0xceb   :  { %4360 = vadd.xlane.f32.xlu1 %v4359_v47  ;;  %v4271_v3 = vpop.xlane.xlu1 %4270  ;;  %v4356_v2 = vsel %vm211_vm0, %v4324_v28, 0.0 }
 0xcec   :  { %v4295_v46 = vmul.f32 0.03125, %v4271_v3  ;;  %v4268_v7 = vpop.xlane.xlu0 %4267  ;;  %4357 = vadd.xlane.f32.xlu0 %v4356_v2  ;;  %v4636_v3 = vld [vmem:[%s9829_s18 + $0x40] sm:$0xff]  ;;  %v4637_v2 = vld [vmem:[%s9829_s18 + $0x48] sm:$0xff] }
 0xced   :  { %v4294_v19 = vmul.f32 0.03125, %v4268_v7 }
 0xcee   :  { %v9064_v52 = vsub.f32 %v8974_v31, %v4295_v46  ;;  %v4638_v46 = vld [vmem:[%s9829_s18 + $0x50] sm:$0xff] }
 0xcef   :  { %v9067_v50 = vsub.f32 %v8977_v61, %v4294_v19  ;;  %v6765_v19 = vpack.c.bf16 %v4637_v2, %v4636_v3 }
 0xcf0   :  { %v4327_v26 = vmul.f32 %v9064_v52, %v9064_v52 }
 0xcf1   :  { %v4326_v29 = vmul.f32 %v9067_v50, %v9067_v50 }
 0xcf2   :  { %v4365_v16 = vsel %vm211_vm0, %v4327_v26, 0.0  ;;  %v4639_v26 = vld [vmem:[%s9829_s18 + $0x58] sm:$0xff] }
 0xcf3   :  { %4366 = vadd.xlane.f32.xlu1 %v4365_v16  ;;  %v4277_v30 = vpop.xlane.xlu1 %4276  ;;  %v4362_v24 = vsel %vm211_vm0, %v4326_v29, 0.0  ;;  %v6769_v16 = vpack.c.bf16 %v4639_v26, %v4638_v46 }
 0xcf4   :  { %v4297_v8 = vmul.f32 0.03125, %v4277_v30  ;;  %v4274_v22 = vpop.xlane.xlu0 %4273  ;;  %4363 = vadd.xlane.f32.xlu0 %v4362_v24  ;;  %v9138_v24 = vld [vmem:[%s9830_s16] ss:$0 sm:$0xff] }
 0xcf5   :  { %v4296_v31 = vmul.f32 0.03125, %v4274_v22 }
 0xcf6   :  { %v9076_v38 = vsub.f32 %v8984_v23, %v4297_v8 }
 0xcf7   :  { %v9079_v61 = vsub.f32 %v8987_v55, %v4296_v31 }
 0xcf8   :  { %v4329_v44 = vmul.f32 %v9076_v38, %v9076_v38 }
 0xcf9   :  { %v4328_v36 = vmul.f32 %v9079_v61, %v9079_v61 }
 0xcfa   :  { %v4283_v53 = vpop.xlane.xlu1 %4282  ;;  %v4371_v59 = vsel %vm211_vm0, %v4329_v44, 0.0 }
 0xcfb   :  { %v4299_v57 = vmul.f32 0.03125, %v4283_v53  ;;  %v4280_v9 = vpop.xlane.xlu0 %4279  ;;  %4372 = vadd.xlane.f32.xlu1 %v4371_v59  ;;  %v4368_v10 = vsel %vm211_vm0, %v4328_v36, 0.0  ;;  %v9144_v53 = vld [vmem:[%s9831_s17] ss:$0 sm:$0xff] }
 0xcfc   :  { %v4298_v0 = vmul.f32 0.03125, %v4280_v9  ;;  %4369 = vadd.xlane.f32.xlu0 %v4368_v10 }
 0xcfd   :  { %v9088_v23 = vsub.f32 %v8994_v17, %v4299_v57  ;;  %v4628_v17 = vld [vmem:[%s9829_s18] sm:$0xff] }
 0xcfe   :  { %v9091_v55 = vsub.f32 %v8997_v56, %v4298_v0  ;;  %v4629_v56 = vld [vmem:[%s9829_s18 + $0x8] sm:$0xff] }
 0xcff   :  { %v4331_v5 = vmul.f32 %v9088_v23, %v9088_v23  ;;  %v6749_v63 = vpack.c.bf16 %v4629_v56, %v4628_v17 }
 0xd00   :  { %v4330_v12 = vmul.f32 %v9091_v55, %v9091_v55 }
 0xd01   :  { %v4377_v11 = vsel %vm211_vm0, %v4331_v5, 0.0  ;;  %6750 = vmatprep.subr.bf16.mxu1 %v6749_v63 }
 0xd02   :  { %4378 = vadd.xlane.f32.xlu1 %v4377_v11  ;;  %v4374_v60 = vsel %vm211_vm0, %v4330_v12, 0.0  ;;  %6752 = vmatpush3.bf16.msra.mxu1 %v6749_v63 }
 0xd03   :  { %4375 = vadd.xlane.f32.xlu0 %v4374_v60  ;;  %6754 = vmatprep.subr.bf16.mxu1 %v6753_v25 }
 0xd06   :  { %6756 = vmatpush3.bf16.msra.mxu1 %v6753_v25 }
 0xd07   :  { %6758 = vmatprep.subr.bf16.mxu1 %v6757_v14 }
 0xd0a   :  { %6760 = vmatpush3.bf16.msra.mxu1 %v6757_v14 }
 0xd0b   :  { %6762 = vmatprep.subr.bf16.mxu1 %v6761_v20 }
 0xd0e   :  { %6764 = vmatpush3.bf16.msra.mxu1 %v6761_v20 }
 0xd0f   :  { %6766 = vmatprep.subr.bf16.mxu1 %v6765_v19 }
 0xd12   :  { %6768 = vmatpush3.bf16.msra.mxu1 %v6765_v19 }
 0xd13   :  { %6770 = vmatprep.subr.bf16.mxu1 %v6769_v16 }
 0xd16   :  { %6772 = vmatpush3.bf16.msra.mxu1 %v6769_v16 }
 0xd58   :  { %v4337_v32 = vpop.xlane.xlu1 %4336 }
 0xd59   :  { %v4381_v40 = vmul.f32 0.03125, %v4337_v32  ;;  %v4334_v33 = vpop.xlane.xlu0 %4333 }
 0xd5a   :  { %v4380_v58 = vmul.f32 0.03125, %v4334_v33 }
 0xd5b   :  { %v4397_v6 = vadd.f32 1e-05, %v4381_v40 }
 0xd5c   :  { %v4396_v4 = vadd.f32 1e-05, %v4380_v58 }
 0xd5d   :  { %7073 = vrsqrt.f32 %v4397_v6 }
 0xd5e   :  { %7075 = vrsqrt.f32 %v4396_v4 }
 0xd60   :  { %v4343_v27 = vpop.xlane.xlu1 %4342 }
 0xd61   :  { %v4383_v21 = vmul.f32 0.03125, %v4343_v27  ;;  %v4340_v28 = vpop.xlane.xlu0 %4339 }
 0xd62   :  { %v4382_v47 = vmul.f32 0.03125, %v4340_v28 }
 0xd63   :  { %v4399_v7 = vadd.f32 1e-05, %v4383_v21 }
 0xd64   :  { %v4398_v29 = vadd.f32 1e-05, %v4382_v47 }
 0xd65   :  { %7077 = vrsqrt.f32 %v4399_v7 }
 0xd66   :  { %7079 = vrsqrt.f32 %v4398_v29 }
 0xd67   :  { %v7074_v30 = vpop.eup %7073 }
 0xd68   :  { %v7076_v8 = vpop.eup %7075  ;;  %v4349_v22 = vpop.xlane.xlu1 %4348  ;;  %v4429_v31 = vmul.f32 %v7074_v30, %v9004_v51 }
 0xd69   :  { %v4385_v44 = vmul.f32 0.03125, %v4349_v22  ;;  %v4346_v36 = vpop.xlane.xlu0 %4345  ;;  %v4428_v59 = vmul.f32 %v7076_v8, %v9007_v43 }
 0xd6a   :  { %v4384_v57 = vmul.f32 0.03125, %v4346_v36  ;;  %v4452_v9 = vmul.f32 %v9138_v24, %v4429_v31 }
 0xd6b   :  { %v4401_v10 = vadd.f32 1e-05, %v4385_v44  ;;  %v4451_v0 = vmul.f32 %v9138_v24, %v4428_v59 }
 0xd6c   :  { %v4400_v5 = vadd.f32 1e-05, %v4384_v57  ;;  %v9150_v12 = vadd.f32 %v9144_v53, %v4452_v9 }
 0xd6d   :  { %7081 = vrsqrt.f32 %v4401_v10  ;;  %v9153_v51 = vadd.f32 %v9144_v53, %v4451_v0 }
 0xd6e   :  { %7083 = vrsqrt.f32 %v4400_v5  ;;  %4508 = vrot.lane.b32.xlu1 %v9150_v12, %s7202_s29 }
 0xd6f   :  { %v7078_v43 = vpop.eup %7077  ;;  %4506 = vrot.lane.b32.xlu0 %v9153_v51, %s7202_s29 }
 0xd70   :  { %v7080_v11 = vpop.eup %7079  ;;  %v4355_v60 = vpop.xlane.xlu1 %4354  ;;  %v4431_v17 = vmul.f32 %v7078_v43, %v9016_v41 }
 0xd71   :  { %v4387_v56 = vmul.f32 0.03125, %v4355_v60  ;;  %v4352_v35 = vpop.xlane.xlu0 %4351  ;;  %v4430_v63 = vmul.f32 %v7080_v11, %v9019_v49 }
 0xd72   :  { %v4386_v37 = vmul.f32 0.03125, %v4352_v35  ;;  %v4454_v25 = vmul.f32 %v9138_v24, %v4431_v17 }
 0xd73   :  { %v4403_v1 = vadd.f32 1e-05, %v4387_v56  ;;  %v4453_v18 = vmul.f32 %v9138_v24, %v4430_v63 }
 0xd74   :  { %v4402_v14 = vadd.f32 1e-05, %v4386_v37  ;;  %v9164_v13 = vadd.f32 %v9144_v53, %v4454_v25 }
 0xd75   :  { %7085 = vrsqrt.f32 %v4403_v1  ;;  %v9167_v42 = vadd.f32 %v9144_v53, %v4453_v18 }
 0xd76   :  { %7087 = vrsqrt.f32 %v4402_v14  ;;  %4556 = vrot.lane.b32.xlu0 %v9164_v13, %s7201_s1 }
 0xd77   :  { %v7082_v41 = vpop.eup %7081  ;;  %4554 = vrot.lane.b32.xlu1 %v9167_v42, %s7201_s1 }
 0xd78   :  { %v7084_v49 = vpop.eup %7083  ;;  %v4361_v20 = vpop.xlane.xlu1 %4360  ;;  %v4433_v32 = vmul.f32 %v7082_v41, %v9028_v45 }
 0xd79   :  { %v4389_v40 = vmul.f32 0.03125, %v4361_v20  ;;  %v4358_v33 = vpop.xlane.xlu0 %4357  ;;  %v4432_v58 = vmul.f32 %v7084_v49, %v9031_v39 }
 0xd7a   :  { %v4388_v6 = vmul.f32 0.03125, %v4358_v33  ;;  %4512 = vrot.lane.b32.xlu0 %v9164_v13, %s7202_s29  ;;  %v4456_v4 = vmul.f32 %v9138_v24, %v4433_v32 }
 0xd7b   :  { %v4405_v27 = vadd.f32 1e-05, %v4389_v40  ;;  %4510 = vrot.lane.b32.xlu1 %v9167_v42, %s7202_s29  ;;  %v4455_v21 = vmul.f32 %v9138_v24, %v4432_v58 }
 0xd7c   :  { %v4404_v28 = vadd.f32 1e-05, %v4388_v6  ;;  %v9182_v47 = vadd.f32 %v9144_v53, %v4456_v4 }
 0xd7d   :  { %7089 = vrsqrt.f32 %v4405_v27  ;;  %v9185_v45 = vadd.f32 %v9144_v53, %v4455_v21 }
 0xd7e   :  { %7091 = vrsqrt.f32 %v4404_v28  ;;  %4560 = vrot.lane.b32.xlu0 %v9182_v47, %s7201_s1 }
 0xd7f   :  { %v7086_v39 = vpop.eup %7085  ;;  %4558 = vrot.lane.b32.xlu1 %v9185_v45, %s7201_s1 }
 0xd80   :  { %v7088_v3 = vpop.eup %7087  ;;  %v4367_v2 = vpop.xlane.xlu1 %4366  ;;  %v4435_v46 = vmul.f32 %v7086_v39, %v9040_v15 }
 0xd81   :  { %v4391_v7 = vmul.f32 0.03125, %v4367_v2  ;;  %v4364_v19 = vpop.xlane.xlu0 %4363  ;;  %v4434_v26 = vmul.f32 %v7088_v3, %v9043_v54 }
 0xd82   :  { %v4390_v29 = vmul.f32 0.03125, %v4364_v19  ;;  %4516 = vrot.lane.b32.xlu0 %v9182_v47, %s7202_s29  ;;  %v4458_v16 = vmul.f32 %v9138_v24, %v4435_v46 }
 0xd83   :  { %v4407_v30 = vadd.f32 1e-05, %v4391_v7  ;;  %4514 = vrot.lane.b32.xlu1 %v9185_v45, %s7202_s29  ;;  %v4457_v8 = vmul.f32 %v9138_v24, %v4434_v26 }
 0xd84   :  { %v4406_v22 = vadd.f32 1e-05, %v4390_v29  ;;  %v9200_v31 = vadd.f32 %v9144_v53, %v4458_v16 }
 0xd85   :  { %7093 = vrsqrt.f32 %v4407_v30  ;;  %v9203_v15 = vadd.f32 %v9144_v53, %v4457_v8 }
 0xd86   :  { %7095 = vrsqrt.f32 %v4406_v22  ;;  %4564 = vrot.lane.b32.xlu0 %v9200_v31, %s7201_s1 }
 0xd87   :  { %v7090_v54 = vpop.eup %7089  ;;  %4562 = vrot.lane.b32.xlu1 %v9203_v15, %s7201_s1 }
 0xd88   :  { %v7092_v44 = vpop.eup %7091  ;;  %v4373_v36 = vpop.xlane.xlu1 %4372  ;;  %v4437_v59 = vmul.f32 %v7090_v54, %v9052_v62 }
 0xd89   :  { %v4393_v57 = vmul.f32 0.03125, %v4373_v36  ;;  %v4370_v9 = vpop.xlane.xlu0 %4369  ;;  %v4436_v10 = vmul.f32 %v7092_v44, %v9055_v48 }
 0xd8a   :  { %v4392_v0 = vmul.f32 0.03125, %v4370_v9  ;;  %4520 = vrot.lane.b32.xlu0 %v9200_v31, %s7202_s29  ;;  %v4460_v5 = vmul.f32 %v9138_v24, %v4437_v59 }
 0xd8b   :  { %v4409_v43 = vadd.f32 1e-05, %v4393_v57  ;;  %4518 = vrot.lane.b32.xlu1 %v9203_v15, %s7202_s29  ;;  %v4459_v11 = vmul.f32 %v9138_v24, %v4436_v10 }
 0xd8c   :  { %v4408_v60 = vadd.f32 1e-05, %v4392_v0  ;;  %v9218_v17 = vadd.f32 %v9144_v53, %v4460_v5 }
 0xd8d   :  { %7097 = vrsqrt.f32 %v4409_v43  ;;  %v9221_v62 = vadd.f32 %v9144_v53, %v4459_v11 }
 0xd8e   :  { %7099 = vrsqrt.f32 %v4408_v60  ;;  %4568 = vrot.lane.b32.xlu0 %v9218_v17, %s7201_s1 }
 0xd8f   :  { %v7094_v48 = vpop.eup %7093  ;;  %v4379_v56 = vpop.xlane.xlu1 %4378  ;;  %4566 = vrot.lane.b32.xlu1 %v9221_v62, %s7201_s1 }
 0xd90   :  { %v7096_v35 = vpop.eup %7095  ;;  %v4395_v63 = vmul.f32 0.03125, %v4379_v56  ;;  %v4376_v37 = vpop.xlane.xlu0 %4375  ;;  %v4439_v25 = vmul.f32 %v7094_v48, %v9064_v52 }
 0xd91   :  { %v4394_v1 = vmul.f32 0.03125, %v4376_v37  ;;  %v4438_v18 = vmul.f32 %v7096_v35, %v9067_v50 }
 0xd92   :  { %v4411_v14 = vadd.f32 1e-05, %v4395_v63  ;;  %4524 = vrot.lane.b32.xlu0 %v9218_v17, %s7202_s29  ;;  %v4462_v41 = vmul.f32 %v9138_v24, %v4439_v25 }
 0xd93   :  { %v4410_v49 = vadd.f32 1e-05, %v4394_v1  ;;  %4522 = vrot.lane.b32.xlu1 %v9221_v62, %s7202_s29  ;;  %v4461_v20 = vmul.f32 %v9138_v24, %v4438_v18 }
 0xd94   :  { %7101 = vrsqrt.f32 %v4411_v14  ;;  %v9236_v32 = vadd.f32 %v9144_v53, %v4462_v41 }
 0xd95   :  { %7103 = vrsqrt.f32 %v4410_v49  ;;  %v9239_v52 = vadd.f32 %v9144_v53, %v4461_v20 }
 0xd96   :  { %4572 = vrot.lane.b32.xlu0 %v9236_v32, %s7201_s1 }
 0xd97   :  { %v7098_v50 = vpop.eup %7097  ;;  %4570 = vrot.lane.b32.xlu1 %v9239_v52, %s7201_s1 }
 0xd98   :  { %v7100_v40 = vpop.eup %7099  ;;  %v4441_v33 = vmul.f32 %v7098_v50, %v9076_v38 }
 0xd99   :  { %v4440_v58 = vmul.f32 %v7100_v40, %v9079_v61 }
 0xd9a   :  { %4528 = vrot.lane.b32.xlu0 %v9236_v32, %s7202_s29  ;;  %v4464_v6 = vmul.f32 %v9138_v24, %v4441_v33 }
 0xd9b   :  { %4526 = vrot.lane.b32.xlu1 %v9239_v52, %s7202_s29  ;;  %v4463_v4 = vmul.f32 %v9138_v24, %v4440_v58 }
 0xd9c   :  { %v9254_v27 = vadd.f32 %v9144_v53, %v4464_v6 }
 0xd9d   :  { %v9257_v21 = vadd.f32 %v9144_v53, %v4463_v4 }
 0xd9e   :  { %v7102_v28 = vpop.eup %7101  ;;  %4576 = vrot.lane.b32.xlu0 %v9254_v27, %s7201_s1 }
 0xd9f   :  { %v7104_v38 = vpop.eup %7103  ;;  %4574 = vrot.lane.b32.xlu1 %v9257_v21, %s7201_s1  ;;  %v4443_v61 = vmul.f32 %v7102_v28, %v9088_v23 }
 0xda0   :  { %v4442_v39 = vmul.f32 %v7104_v38, %v9091_v55 }
 0xda1   :  { %v4466_v3 = vmul.f32 %v9138_v24, %v4443_v61 }
 0xda2   :  { %4532 = vrot.lane.b32.xlu0 %v9254_v27, %s7202_s29  ;;  %v4465_v2 = vmul.f32 %v9138_v24, %v4442_v39 }
 0xda3   :  { %4530 = vrot.lane.b32.xlu1 %v9257_v21, %s7202_s29  ;;  %v4489_v46 = vadd.f32 %v9144_v53, %v4466_v3 }
 0xda4   :  { %v4488_v7 = vadd.f32 %v9144_v53, %v4465_v2 }
 0xda6   :  { %4580 = vrot.lane.b32.xlu0 %v4489_v46, %s7201_s1 }
 0xda7   :  { %4578 = vrot.lane.b32.xlu1 %v4488_v7, %s7201_s1 }
 0xdaa   :  { %4536 = vrot.lane.b32.xlu0 %v4489_v46, %s7202_s29 }
 0xdab   :  { %4534 = vrot.lane.b32.xlu1 %v4488_v7, %s7202_s29 }
 0xde0   :  { %v4509_v55 = vpop.permute.xlu1 %4508 }
 0xde1   :  { %v4507_v23 = vpop.permute.xlu0 %4506  ;;  %v4597_v29 = vsel %vm211_vm0, 0.0, %v4509_v55  ;;  %v9344_v55 = vld [vmem:[%s9832_s19] ss:$0 sm:$0xff] }
 0xde2   :  { %v4596_v24 = vsel %vm211_vm0, 0.0, %v4507_v23 }
 0xde8   :  { %v4557_v19 = vpop.permute.xlu0 %4556 }
 0xde9   :  { %v4555_v26 = vpop.permute.xlu1 %4554  ;;  %v4613_v53 = vsel %vm228_vm1, %v4597_v29, %v4557_v19 }
 0xdea   :  { %v4612_v16 = vsel %vm228_vm1, %v4596_v24, %v4555_v26 }
 0xdeb   :  { %6517 = vmatprep.mubr.msk.f32.mxu1 %vm264_vm2, %v4612_v16 }
 0xdec   :  { %v4513_v30 = vpop.permute.xlu0 %4512  ;;  %6518 = vmatmul.mubr.msk.f32.vlgmr.msra.gmra.mrb[62].mxu1 %vm264_vm2, %v4613_v53 }
 0xded   :  { %v4511_v8 = vpop.permute.xlu1 %4510  ;;  %v4599_v36 = vsel %vm211_vm0, %v9150_v12, %v4513_v30 }
 0xdee   :  { %v4598_v54 = vsel %vm211_vm0, %v9153_v51, %v4511_v8 }
 0xdf0   :  { %v4561_v22 = vpop.permute.xlu0 %4560 }
 0xdf1   :  { %v4559_v44 = vpop.permute.xlu1 %4558  ;;  %v4615_v57 = vsel %vm228_vm1, %v4599_v36, %v4561_v22 }
 0xdf2   :  { %v4614_v59 = vsel %vm228_vm1, %v4598_v54, %v4559_v44 }
 0xdf3   :  { %6520 = vmatprep.mubr.msk.f32.mxu1 %vm264_vm2, %v4614_v59 }
 0xdf4   :  { %v4517_v9 = vpop.permute.xlu0 %4516  ;;  %6521 = vmatmul.mubr.msk.f32.gmra.mrb[64].mxu1 %vm264_vm2, %v4615_v57 }
 0xdf5   :  { %v4515_v10 = vpop.permute.xlu1 %4514  ;;  %v4601_v51 = vsel %vm211_vm0, %v9164_v13, %v4517_v9 }
 0xdf6   :  { %v4600_v5 = vsel %vm211_vm0, %v9167_v42, %v4515_v10 }
 0xdf8   :  { %v4565_v0 = vpop.permute.xlu0 %4564 }
 0xdf9   :  { %v4563_v43 = vpop.permute.xlu1 %4562  ;;  %v4617_v11 = vsel %vm228_vm1, %v4601_v51, %v4565_v0 }
 0xdfa   :  { %v4616_v12 = vsel %vm228_vm1, %v4600_v5, %v4563_v43 }
 0xdfb   :  { %6523 = vmatprep.mubr.msk.f32.mxu1 %vm264_vm2, %v4616_v12 }
 0xdfc   :  { %v4521_v60 = vpop.permute.xlu0 %4520  ;;  %6524 = vmatmul.mubr.msk.f32.gmra.mrb[66].mxu1 %vm264_vm2, %v4617_v11 }
 0xdfd   :  { %v4519_v48 = vpop.permute.xlu1 %4518  ;;  %v4603_v42 = vsel %vm211_vm0, %v9182_v47, %v4521_v60 }
 0xdfe   :  { %v4602_v35 = vsel %vm211_vm0, %v9185_v45, %v4519_v48 }
 0xe00   :  { %v4569_v56 = vpop.permute.xlu0 %4568 }
 0xe01   :  { %v4567_v63 = vpop.permute.xlu1 %4566  ;;  %v4619_v37 = vsel %vm228_vm1, %v4603_v42, %v4569_v56 }
 0xe02   :  { %v4618_v13 = vsel %vm228_vm1, %v4602_v35, %v4567_v63 }
 0xe03   :  { %6526 = vmatprep.mubr.msk.f32.mxu1 %vm264_vm2, %v4618_v13 }
 0xe04   :  { %v4525_v25 = vpop.permute.xlu0 %4524  ;;  %6527 = vmatmul.mubr.msk.f32.gmra.mrb[68].mxu1 %vm264_vm2, %v4619_v37 }
 0xe05   :  { %v4523_v1 = vpop.permute.xlu1 %4522  ;;  %v4605_v45 = vsel %vm211_vm0, %v9200_v31, %v4525_v25 }
 0xe06   :  { %v4604_v14 = vsel %vm211_vm0, %v9203_v15, %v4523_v1 }
 0xe08   :  { %v4573_v18 = vpop.permute.xlu0 %4572 }
 0xe09   :  { %v4571_v41 = vpop.permute.xlu1 %4570  ;;  %v4621_v49 = vsel %vm228_vm1, %v4605_v45, %v4573_v18 }
 0xe0a   :  { %v4620_v47 = vsel %vm228_vm1, %v4604_v14, %v4571_v41 }
 0xe0b   :  { %6529 = vmatprep.mubr.msk.f32.mxu1 %vm264_vm2, %v4620_v47 }
 0xe0c   :  { %v4529_v20 = vpop.permute.xlu0 %4528  ;;  %6530 = vmatmul.mubr.msk.f32.gmra.mrb[70].mxu1 %vm264_vm2, %v4621_v49 }
 0xe0d   :  { %v4527_v50 = vpop.permute.xlu1 %4526  ;;  %v4607_v15 = vsel %vm211_vm0, %v9218_v17, %v4529_v20 }
 0xe0e   :  { %v4606_v33 = vsel %vm211_vm0, %v9221_v62, %v4527_v50 }
 0xe10   :  { %v4577_v40 = vpop.permute.xlu0 %4576 }
 0xe11   :  { %v4575_v58 = vpop.permute.xlu1 %4574  ;;  %v4623_v6 = vsel %vm228_vm1, %v4607_v15, %v4577_v40 }
 0xe12   :  { %v4622_v31 = vsel %vm228_vm1, %v4606_v33, %v4575_v58 }
 0xe13   :  { %6532 = vmatprep.mubr.msk.f32.mxu1 %vm264_vm2, %v4622_v31 }
 0xe14   :  { %v4533_v4 = vpop.permute.xlu0 %4532  ;;  %6533 = vmatmul.mubr.msk.f32.gmra.mrb[72].mxu1 %vm264_vm2, %v4623_v6 }
 0xe15   :  { %v4531_v28 = vpop.permute.xlu1 %4530  ;;  %v4609_v62 = vsel %vm211_vm0, %v9236_v32, %v4533_v4 }
 0xe16   :  { %v4608_v61 = vsel %vm211_vm0, %v9239_v52, %v4531_v28 }
 0xe18   :  { %v4581_v38 = vpop.permute.xlu0 %4580 }
 0xe19   :  { %v4579_v39 = vpop.permute.xlu1 %4578  ;;  %v4625_v3 = vsel %vm228_vm1, %v4609_v62, %v4581_v38 }
 0xe1a   :  { %v4624_v17 = vsel %vm228_vm1, %v4608_v61, %v4579_v39 }
 0xe1b   :  { %6535 = vmatprep.mubr.msk.f32.mxu1 %vm264_vm2, %v4624_v17 }
 0xe1c   :  { %v4537_v2 = vpop.permute.xlu0 %4536  ;;  %6536 = vmatmul.mubr.msk.f32.gmra.mrb[74].mxu1 %vm264_vm2, %v4625_v3 }
 0xe1d   :  { %v4611_v46 = vsel %vm211_vm0, %v9254_v27, %v4537_v2  ;;  %v4535_v7 = vpop.permute.xlu1 %4534 }
 0xe1e   :  { %v4610_v52 = vsel %vm211_vm0, %v9257_v21, %v4535_v7  ;;  %v4627_v32 = vsel %vm228_vm1, %v4611_v46, %v7567_v34 }
 0xe1f   :  { %v4626_v23 = vsel %vm228_vm1, %v4610_v52, %v7567_v34 }
 0xe20   :  { %6538 = vmatprep.mubr.msk.f32.mxu1 %vm264_vm2, %v4626_v23 }
 0xe21   :  { %6539 = vmatmul.mubr.msk.f32.gmra.mrb[76].mxu1 %vm264_vm2, %v4627_v32 }
 0xebf   :  { %v6519_v27 = vpop.f32.mrb[62].mxu1 }
 0xec0   :  { %v9347_v19 = vadd.f32 %v6519_v27, %v9344_v55  ;;  %v4761_v21 = vpop.f32.mrb[63].mxu1 }
 0xec1   :  { %v9350_v24 = vadd.f32 %v9344_v55, %v4761_v21 }
 0xec2   :  { %v5825_v26 = vmul.f32 -1.442695, %v9347_v19 }
 0xec3   :  { %v5824_v29 = vmul.f32 -1.442695, %v9350_v24 }
 0xec4   :  { %7105 = vpow2.f32 %v5825_v26 }
 0xec5   :  { %7107 = vpow2.f32 %v5824_v29 }
 0xec7   :  { %v6522_v34 = vpop.f32.mrb[64].mxu1 }
 0xec8   :  { %v9355_v16 = vadd.f32 %v6522_v34, %v9344_v55  ;;  %v4771_v53 = vpop.f32.mrb[65].mxu1 }
 0xec9   :  { %v9358_v30 = vadd.f32 %v9344_v55, %v4771_v53 }
 0xeca   :  { %v5827_v8 = vmul.f32 -1.442695, %v9355_v16 }
 0xecb   :  { %v5826_v22 = vmul.f32 -1.442695, %v9358_v30 }
 0xecc   :  { %7109 = vpow2.f32 %v5827_v8 }
 0xecd   :  { %7111 = vpow2.f32 %v5826_v22 }
 0xece   :  { %v7106_v54 = vpop.eup %7105 }
 0xecf   :  { %v7108_v44 = vpop.eup %7107  ;;  %v4889_v36 = vadd.f32 1.0, %v7106_v54  ;;  %v6525_v59 = vpop.f32.mrb[66].mxu1 }
 0xed0   :  { %v4888_v57 = vadd.f32 1.0, %v7108_v44  ;;  %v9363_v9 = vadd.f32 %v6525_v59, %v9344_v55  ;;  %v4781_v10 = vpop.f32.mrb[67].mxu1 }
 0xed1   :  { %7113 = vrcp.f32 %v4889_v36  ;;  %v9366_v0 = vadd.f32 %v9344_v55, %v4781_v10 }
 0xed2   :  { %7115 = vrcp.f32 %v4888_v57  ;;  %v5829_v5 = vmul.f32 -1.442695, %v9363_v9 }
 0xed3   :  { %v5828_v43 = vmul.f32 -1.442695, %v9366_v0 }
 0xed4   :  { %7117 = vpow2.f32 %v5829_v5 }
 0xed5   :  { %7119 = vpow2.f32 %v5828_v43 }
 0xed6   :  { %v7110_v51 = vpop.eup %7109 }
 0xed7   :  { %v7112_v12 = vpop.eup %7111  ;;  %v4891_v11 = vadd.f32 1.0, %v7110_v51  ;;  %v6528_v60 = vpop.f32.mrb[68].mxu1 }
 0xed8   :  { %v4890_v48 = vadd.f32 1.0, %v7112_v12  ;;  %v9371_v56 = vadd.f32 %v6528_v60, %v9344_v55  ;;  %v4791_v35 = vpop.f32.mrb[69].mxu1 }
 0xed9   :  { %7121 = vrcp.f32 %v4891_v11  ;;  %v9374_v63 = vadd.f32 %v9344_v55, %v4791_v35 }
 0xeda   :  { %7123 = vrcp.f32 %v4890_v48  ;;  %v5831_v42 = vmul.f32 -1.442695, %v9371_v56 }
 0xedb   :  { %v7114_v13 = vpop.eup %7113  ;;  %v5830_v37 = vmul.f32 -1.442695, %v9374_v63 }
 0xedc   :  { %v7116_v25 = vpop.eup %7115  ;;  %7125 = vpow2.f32 %v5831_v42  ;;  %4954 = vrot.lane.b32.xlu0 %v7114_v13, %s7204_s2 }
 0xedd   :  { %7127 = vpow2.f32 %v5830_v37  ;;  %4952 = vrot.lane.b32.xlu1 %v7116_v25, %s7204_s2 }
 0xede   :  { %v7118_v1 = vpop.eup %7117 }
 0xedf   :  { %v7120_v18 = vpop.eup %7119  ;;  %v4893_v14 = vadd.f32 1.0, %v7118_v1  ;;  %v6531_v41 = vpop.f32.mrb[70].mxu1 }
 0xee0   :  { %v4892_v45 = vadd.f32 1.0, %v7120_v18  ;;  %v9381_v47 = vadd.f32 %v6531_v41, %v9344_v55  ;;  %v4801_v49 = vpop.f32.mrb[71].mxu1 }
 0xee1   :  { %7129 = vrcp.f32 %v4893_v14  ;;  %v9384_v20 = vadd.f32 %v9344_v55, %v4801_v49 }
 0xee2   :  { %7131 = vrcp.f32 %v4892_v45  ;;  %v5833_v50 = vmul.f32 -1.442695, %v9381_v47 }
 0xee3   :  { %v7122_v40 = vpop.eup %7121  ;;  %v5832_v33 = vmul.f32 -1.442695, %v9384_v20 }
 0xee4   :  { %v7124_v58 = vpop.eup %7123  ;;  %7133 = vpow2.f32 %v5833_v50  ;;  %4958 = vrot.lane.b32.xlu0 %v7122_v40, %s7204_s2 }
 0xee5   :  { %7135 = vpow2.f32 %v5832_v33  ;;  %4956 = vrot.lane.b32.xlu1 %v7124_v58, %s7204_s2 }
 0xee6   :  { %v7126_v15 = vpop.eup %7125 }
 0xee7   :  { %v7128_v31 = vpop.eup %7127  ;;  %v4895_v6 = vadd.f32 1.0, %v7126_v15  ;;  %v6534_v4 = vpop.f32.mrb[72].mxu1 }
 0xee8   :  { %v4894_v28 = vadd.f32 1.0, %v7128_v31  ;;  %v9391_v38 = vadd.f32 %v6534_v4, %v9344_v55  ;;  %v4811_v61 = vpop.f32.mrb[73].mxu1 }
 0xee9   :  { %7137 = vrcp.f32 %v4895_v6  ;;  %v9394_v39 = vadd.f32 %v9344_v55, %v4811_v61 }
 0xeea   :  { %7139 = vrcp.f32 %v4894_v28  ;;  %v5835_v62 = vmul.f32 -1.442695, %v9391_v38 }
 0xeeb   :  { %v7130_v17 = vpop.eup %7129  ;;  %v5834_v3 = vmul.f32 -1.442695, %v9394_v39 }
 0xeec   :  { %v7132_v2 = vpop.eup %7131  ;;  %7141 = vpow2.f32 %v5835_v62  ;;  %4962 = vrot.lane.b32.xlu0 %v7130_v17, %s7204_s2 }
 0xeed   :  { %7143 = vpow2.f32 %v5834_v3  ;;  %4960 = vrot.lane.b32.xlu1 %v7132_v2, %s7204_s2 }
 0xeee   :  { %v7134_v46 = vpop.eup %7133 }
 0xeef   :  { %v7136_v7 = vpop.eup %7135  ;;  %v4897_v52 = vadd.f32 1.0, %v7134_v46  ;;  %v6537_v23 = vpop.f32.mrb[74].mxu1 }
 0xef0   :  { %v4896_v32 = vadd.f32 1.0, %v7136_v7  ;;  %v9401_v27 = vadd.f32 %v6537_v23, %v9344_v55  ;;  %v4821_v21 = vpop.f32.mrb[75].mxu1 }
 0xef1   :  { %7145 = vrcp.f32 %v4897_v52  ;;  %v9404_v26 = vadd.f32 %v9344_v55, %v4821_v21 }
 0xef2   :  { %7147 = vrcp.f32 %v4896_v32  ;;  %v5837_v29 = vmul.f32 -1.442695, %v9401_v27 }
 0xef3   :  { %v7138_v34 = vpop.eup %7137  ;;  %v5836_v53 = vmul.f32 -1.442695, %v9404_v26 }
 0xef4   :  { %v7140_v8 = vpop.eup %7139  ;;  %7149 = vpow2.f32 %v5837_v29  ;;  %4966 = vrot.lane.b32.xlu0 %v7138_v34, %s7204_s2  ;;  %v6540_v22 = vpop.f32.mrb[76].mxu1 }
 0xef5   :  { %7151 = vpow2.f32 %v5836_v53  ;;  %v9410_v54 = vadd.f32 %v6540_v22, %v9344_v55  ;;  %4964 = vrot.lane.b32.xlu1 %v7140_v8, %s7204_s2  ;;  %v4831_v44 = vpop.f32.mrb[77].mxu1 }
 0xef6   :  { %v7142_v36 = vpop.eup %7141  ;;  %v9414_v59 = vadd.f32 %v9344_v55, %v4831_v44 }
 0xef7   :  { %v7144_v57 = vpop.eup %7143  ;;  %v4899_v10 = vadd.f32 1.0, %v7142_v36  ;;  %v5839_v5 = vmul.f32 -1.442695, %v9410_v54 }
 0xef8   :  { %v4898_v43 = vadd.f32 1.0, %v7144_v57  ;;  %v5838_v51 = vmul.f32 -1.442695, %v9414_v59 }
 0xef9   :  { %7153 = vrcp.f32 %v4899_v10 }
 0xefa   :  { %7155 = vrcp.f32 %v4898_v43 }
 0xefb   :  { %v7146_v12 = vpop.eup %7145  ;;  %7157 = vpow2.f32 %v5839_v5 }
 0xefc   :  { %v7148_v11 = vpop.eup %7147  ;;  %7159 = vpow2.f32 %v5838_v51  ;;  %4970 = vrot.lane.b32.xlu0 %v7146_v12, %s7204_s2 }
 0xefd   :  { %4968 = vrot.lane.b32.xlu1 %v7148_v11, %s7204_s2 }
 0xefe   :  { %v7150_v60 = vpop.eup %7149 }
 0xeff   :  { %v7152_v55 = vpop.eup %7151  ;;  %v4901_v48 = vadd.f32 1.0, %v7150_v60 }
 0xf00   :  { %v4900_v35 = vadd.f32 1.0, %v7152_v55 }
 0xf01   :  { %7161 = vrcp.f32 %v4901_v48 }
 0xf02   :  { %7163 = vrcp.f32 %v4900_v35 }
 0xf03   :  { %v7154_v42 = vpop.eup %7153 }
 0xf04   :  { %v7156_v13 = vpop.eup %7155  ;;  %4974 = vrot.lane.b32.xlu0 %v7154_v42, %s7204_s2 }
 0xf05   :  { %v7158_v37 = vpop.eup %7157  ;;  %4972 = vrot.lane.b32.xlu1 %v7156_v13, %s7204_s2 }
 0xf06   :  { %v7160_v25 = vpop.eup %7159  ;;  %v4903_v1 = vadd.f32 1.0, %v7158_v37 }
 0xf07   :  { %v4902_v18 = vadd.f32 1.0, %v7160_v25 }
 0xf08   :  { %7165 = vrcp.f32 %v4903_v1 }
 0xf09   :  { %7167 = vrcp.f32 %v4902_v18 }
 0xf0b   :  { %v7162_v14 = vpop.eup %7161 }
 0xf0c   :  { %v7164_v41 = vpop.eup %7163  ;;  %4978 = vrot.lane.b32.xlu0 %v7162_v14, %s7204_s2 }
 0xf0d   :  { %4976 = vrot.lane.b32.xlu1 %v7164_v41, %s7204_s2 }
 0xf12   :  { %v7166_v45 = vpop.eup %7165 }
 0xf13   :  { %v7168_v49 = vpop.eup %7167  ;;  %4982 = vrot.lane.b32.xlu0 %v7166_v45, %s7204_s2 }
 0xf14   :  { %4980 = vrot.lane.b32.xlu1 %v7168_v49, %s7204_s2 }
 0xf4e   :  { %v4955_v50 = vpop.permute.xlu0 %4954 }
 0xf4f   :  { %v9427_v40 = vmul.f32 %v4955_v50, %v9347_v19  ;;  %v4953_v33 = vpop.permute.xlu1 %4952 }
 0xf50   :  { %v9430_v58 = vmul.f32 %v4953_v33, %v9350_v24 }
 0xf51   :  { %v5019_v15 = vsel %vm211_vm0, %v9427_v40, 0.0 }
 0xf52   :  { %5020 = vadd.xlane.f32.xlu0 %v5019_v15  ;;  %v5016_v31 = vsel %vm211_vm0, %v9430_v58, 0.0 }
 0xf53   :  { %5017 = vadd.xlane.f32.xlu1 %v5016_v31 }
 0xf56   :  { %v4959_v6 = vpop.permute.xlu0 %4958 }
 0xf57   :  { %v9437_v4 = vmul.f32 %v4959_v6, %v9355_v16  ;;  %v4957_v28 = vpop.permute.xlu1 %4956 }
 0xf58   :  { %v9440_v19 = vmul.f32 %v4957_v28, %v9358_v30 }
 0xf59   :  { %v5025_v24 = vsel %vm211_vm0, %v9437_v4, 0.0 }
 0xf5a   :  { %5026 = vadd.xlane.f32.xlu1 %v5025_v24  ;;  %v5022_v61 = vsel %vm211_vm0, %v9440_v19, 0.0 }
 0xf5b   :  { %5023 = vadd.xlane.f32.xlu0 %v5022_v61 }
 0xf5e   :  { %v4963_v62 = vpop.permute.xlu0 %4962 }
 0xf5f   :  { %v9447_v17 = vmul.f32 %v4963_v62, %v9363_v9  ;;  %v4961_v3 = vpop.permute.xlu1 %4960 }
 0xf60   :  { %v9450_v16 = vmul.f32 %v4961_v3, %v9366_v0 }
 0xf61   :  { %v5031_v30 = vsel %vm211_vm0, %v9447_v17, 0.0 }
 0xf62   :  { %5032 = vadd.xlane.f32.xlu1 %v5031_v30  ;;  %v5028_v2 = vsel %vm211_vm0, %v9450_v16, 0.0 }
 0xf63   :  { %5029 = vadd.xlane.f32.xlu0 %v5028_v2 }
 0xf66   :  { %v4967_v46 = vpop.permute.xlu0 %4966 }
 0xf67   :  { %v9457_v7 = vmul.f32 %v4967_v46, %v9371_v56  ;;  %v4965_v52 = vpop.permute.xlu1 %4964 }
 0xf68   :  { %v9460_v9 = vmul.f32 %v4965_v52, %v9374_v63 }
 0xf69   :  { %v5037_v0 = vsel %vm211_vm0, %v9457_v7, 0.0 }
 0xf6a   :  { %5038 = vadd.xlane.f32.xlu1 %v5037_v0  ;;  %v5034_v23 = vsel %vm211_vm0, %v9460_v9, 0.0 }
 0xf6b   :  { %5035 = vadd.xlane.f32.xlu0 %v5034_v23 }
 0xf6e   :  { %v4971_v32 = vpop.permute.xlu0 %4970 }
 0xf6f   :  { %v9467_v21 = vmul.f32 %v4971_v32, %v9381_v47  ;;  %v4969_v29 = vpop.permute.xlu1 %4968 }
 0xf70   :  { %v9470_v56 = vmul.f32 %v4969_v29, %v9384_v20 }
 0xf71   :  { %v5043_v63 = vsel %vm211_vm0, %v9467_v21, 0.0 }
 0xf72   :  { %5044 = vadd.xlane.f32.xlu1 %v5043_v63  ;;  %v5040_v34 = vsel %vm211_vm0, %v9470_v56, 0.0 }
 0xf73   :  { %5041 = vadd.xlane.f32.xlu0 %v5040_v34 }
 0xf76   :  { %v4975_v53 = vpop.permute.xlu0 %4974 }
 0xf77   :  { %v9477_v8 = vmul.f32 %v4975_v53, %v9391_v38  ;;  %v4973_v22 = vpop.permute.xlu1 %4972 }
 0xf78   :  { %v9480_v47 = vmul.f32 %v4973_v22, %v9394_v39 }
 0xf79   :  { %v5049_v20 = vsel %vm211_vm0, %v9477_v8, 0.0 }
 0xf7a   :  { %5050 = vadd.xlane.f32.xlu1 %v5049_v20  ;;  %v5046_v44 = vsel %vm211_vm0, %v9480_v47, 0.0  ;;  %v5270_v20 = vld [vmem:[%s9833_s22] sm:$0xff] }
 0xf7b   :  { %5047 = vadd.xlane.f32.xlu0 %v5046_v44  ;;  %v5271_v44 = vld [vmem:[%s9833_s22 + $0x8] sm:$0xff] }
 0xf7e   :  { %v4979_v36 = vpop.permute.xlu0 %4978 }
 0xf7f   :  { %v9487_v57 = vmul.f32 %v4979_v36, %v9401_v27  ;;  %v4977_v10 = vpop.permute.xlu1 %4976 }
 0xf80   :  { %v9490_v38 = vmul.f32 %v4977_v10, %v9404_v26  ;;  %v6773_v10 = vpack.c.bf16 %v5271_v44, %v5270_v20 }
 0xf81   :  { %v5055_v39 = vsel %vm211_vm0, %v9487_v57, 0.0 }
 0xf82   :  { %5056 = vadd.xlane.f32.xlu1 %v5055_v39  ;;  %v5052_v5 = vsel %vm211_vm0, %v9490_v38, 0.0  ;;  %6774 = vmatprep.subr.bf16.mxu0 %v6773_v10 }
 0xf83   :  { %5053 = vadd.xlane.f32.xlu0 %v5052_v5  ;;  %6776 = vmatpush3.bf16.msra.mxu0 %v6773_v10 }
 0xf85   :  { %v4983_v43 = vpop.permute.xlu0 %4982 }
 0xf86   :  { %v9497_v51 = vmul.f32 %v4983_v43, %v9410_v54  ;;  %v4981_v12 = vpop.permute.xlu1 %4980  ;;  %v5272_v43 = vld [vmem:[%s9833_s22 + $0x10] sm:$0xff] }
 0xf87   :  { %v9500_v27 = vmul.f32 %v4981_v12, %v9414_v59  ;;  %v5273_v12 = vld [vmem:[%s9833_s22 + $0x18] sm:$0xff] }
 0xf88   :  { %v5061_v26 = vsel %vm211_vm0, %v9497_v51, 0.0 }
 0xf89   :  { %5062 = vadd.xlane.f32.xlu1 %v5061_v26  ;;  %v5058_v11 = vsel %vm211_vm0, %v9500_v27, 0.0 }
 0xf8a   :  { %5059 = vadd.xlane.f32.xlu0 %v5058_v11 }
 0xfdf   :  { %v5021_v60 = vpop.xlane.xlu0 %5020 }
 0xfe0   :  { %v5065_v55 = vmul.f32 0.03125, %v5021_v60  ;;  %v5018_v48 = vpop.xlane.xlu1 %5017  ;;  %v6777_v60 = vpack.c.bf16 %v5273_v12, %v5272_v43 }
 0xfe1   :  { %v5064_v35 = vmul.f32 0.03125, %v5018_v48 }
 0xfe2   :  { %v9507_v42 = vsub.f32 %v9427_v40, %v5065_v55  ;;  %6778 = vmatprep.subr.bf16.mxu0 %v6777_v60 }
 0xfe3   :  { %v9510_v54 = vsub.f32 %v9430_v58, %v5064_v35  ;;  %6780 = vmatpush3.bf16.msra.mxu0 %v6777_v60 }
 0xfe4   :  { %v5097_v59 = vmul.f32 %v9507_v42, %v9507_v42 }
 0xfe5   :  { %v5096_v13 = vmul.f32 %v9510_v54, %v9510_v54 }
 0xfe6   :  { %v5115_v37 = vsel %vm211_vm0, %v5097_v59, 0.0 }
 0xfe7   :  { %5116 = vadd.xlane.f32.xlu1 %v5115_v37  ;;  %v5027_v25 = vpop.xlane.xlu1 %5026  ;;  %v5112_v1 = vsel %vm211_vm0, %v5096_v13, 0.0 }
 0xfe8   :  { %v5067_v18 = vmul.f32 0.03125, %v5027_v25  ;;  %v5024_v14 = vpop.xlane.xlu0 %5023  ;;  %5113 = vadd.xlane.f32.xlu0 %v5112_v1 }
 0xfe9   :  { %v5066_v41 = vmul.f32 0.03125, %v5024_v14 }
 0xfea   :  { %v9519_v45 = vsub.f32 %v9437_v4, %v5067_v18 }
 0xfeb   :  { %v9522_v49 = vsub.f32 %v9440_v19, %v5066_v41 }
 0xfec   :  { %v5099_v50 = vmul.f32 %v9519_v45, %v9519_v45 }
 0xfed   :  { %v5098_v40 = vmul.f32 %v9522_v49, %v9522_v49 }
 0xfee   :  { %v5121_v33 = vsel %vm211_vm0, %v5099_v50, 0.0 }
 0xfef   :  { %5122 = vadd.xlane.f32.xlu1 %v5121_v33  ;;  %v5033_v58 = vpop.xlane.xlu1 %5032  ;;  %v5118_v15 = vsel %vm211_vm0, %v5098_v40, 0.0 }
 0xff0   :  { %v5069_v31 = vmul.f32 0.03125, %v5033_v58  ;;  %v5030_v6 = vpop.xlane.xlu0 %5029  ;;  %5119 = vadd.xlane.f32.xlu0 %v5118_v15 }
 0xff1   :  { %v5068_v4 = vmul.f32 0.03125, %v5030_v6 }
 0xff2   :  { %v9531_v28 = vsub.f32 %v9447_v17, %v5069_v31 }
 0xff3   :  { %v9534_v19 = vsub.f32 %v9450_v16, %v5068_v4 }
 0xff4   :  { %v5101_v24 = vmul.f32 %v9531_v28, %v9531_v28 }
 0xff5   :  { %v5100_v61 = vmul.f32 %v9534_v19, %v9534_v19 }
 0xff6   :  { %v5127_v62 = vsel %vm211_vm0, %v5101_v24, 0.0 }
 0xff7   :  { %5128 = vadd.xlane.f32.xlu1 %v5127_v62  ;;  %v5039_v3 = vpop.xlane.xlu1 %5038  ;;  %v5124_v30 = vsel %vm211_vm0, %v5100_v61, 0.0 }
 0xff8   :  { %v5071_v2 = vmul.f32 0.03125, %v5039_v3  ;;  %v5036_v46 = vpop.xlane.xlu0 %5035  ;;  %5125 = vadd.xlane.f32.xlu0 %v5124_v30 }
 0xff9   :  { %v5070_v17 = vmul.f32 0.03125, %v5036_v46 }
 0xffa   :  { %v9543_v52 = vsub.f32 %v9457_v7, %v5071_v2 }
 0xffb   :  { %v9546_v16 = vsub.f32 %v9460_v9, %v5070_v17 }
 0xffc   :  { %v5103_v0 = vmul.f32 %v9543_v52, %v9543_v52 }
 0xffd   :  { %v5102_v23 = vmul.f32 %v9546_v16, %v9546_v16 }
 0xffe   :  { %v5133_v32 = vsel %vm211_vm0, %v5103_v0, 0.0 }
 0xfff   :  { %5134 = vadd.xlane.f32.xlu1 %v5133_v32  ;;  %v5045_v29 = vpop.xlane.xlu1 %5044  ;;  %v5130_v63 = vsel %vm211_vm0, %v5102_v23, 0.0 }
0x1000   :  { %v5073_v34 = vmul.f32 0.03125, %v5045_v29  ;;  %v5042_v53 = vpop.xlane.xlu0 %5041  ;;  %5131 = vadd.xlane.f32.xlu0 %v5130_v63 }
0x1001   :  { %v5072_v7 = vmul.f32 0.03125, %v5042_v53 }
0x1002   :  { %v9555_v22 = vsub.f32 %v9467_v21, %v5073_v34 }
0x1003   :  { %v9558_v9 = vsub.f32 %v9470_v56, %v5072_v7  ;;  %v9617_v7 = vld [vmem:[%s9834_s20] ss:$0 sm:$0xff] }
0x1004   :  { %v5105_v36 = vmul.f32 %v9555_v22, %v9555_v22 }
0x1005   :  { %v5104_v39 = vmul.f32 %v9558_v9, %v9558_v9 }
0x1006   :  { %v5139_v21 = vsel %vm211_vm0, %v5105_v36, 0.0 }
0x1007   :  { %5140 = vadd.xlane.f32.xlu1 %v5139_v21  ;;  %v5051_v56 = vpop.xlane.xlu1 %5050  ;;  %v5136_v5 = vsel %vm211_vm0, %v5104_v39, 0.0 }
0x1008   :  { %v5075_v26 = vmul.f32 0.03125, %v5051_v56  ;;  %v5048_v11 = vpop.xlane.xlu0 %5047  ;;  %5137 = vadd.xlane.f32.xlu0 %v5136_v5  ;;  %v9624_v56 = vld [vmem:[%s9835_s21] ss:$0 sm:$0xff] }
0x1009   :  { %v5074_v55 = vmul.f32 0.03125, %v5048_v11 }
0x100a   :  { %v9579_v48 = vsub.f32 %v9477_v8, %v5075_v26 }
0x100b   :  { %v9582_v35 = vsub.f32 %v9480_v47, %v5074_v55 }
0x100c   :  { %v5107_v59 = vmul.f32 %v9579_v48, %v9579_v48 }
0x100d   :  { %v5106_v13 = vmul.f32 %v9582_v35, %v9582_v35 }
0x100e   :  { %v5145_v37 = vsel %vm211_vm0, %v5107_v59, 0.0 }
0x100f   :  { %5146 = vadd.xlane.f32.xlu1 %v5145_v37  ;;  %v5057_v25 = vpop.xlane.xlu1 %5056  ;;  %v5142_v1 = vsel %vm211_vm0, %v5106_v13, 0.0 }
0x1010   :  { %v5077_v18 = vmul.f32 0.03125, %v5057_v25  ;;  %v5054_v8 = vpop.xlane.xlu0 %5053  ;;  %5143 = vadd.xlane.f32.xlu0 %v5142_v1 }
0x1011   :  { %v5076_v14 = vmul.f32 0.03125, %v5054_v8 }
0x1012   :  { %v9591_v47 = vsub.f32 %v9487_v57, %v5077_v18 }
0x1013   :  { %v9594_v41 = vsub.f32 %v9490_v38, %v5076_v14 }
0x1014   :  { %v5109_v50 = vmul.f32 %v9591_v47, %v9591_v47 }
0x1015   :  { %v5108_v40 = vmul.f32 %v9594_v41, %v9594_v41 }
0x1016   :  { %v5063_v33 = vpop.xlane.xlu1 %5062  ;;  %v5151_v58 = vsel %vm211_vm0, %v5109_v50, 0.0 }
0x1017   :  { %v5079_v15 = vmul.f32 0.03125, %v5063_v33  ;;  %v5060_v31 = vpop.xlane.xlu0 %5059  ;;  %5152 = vadd.xlane.f32.xlu1 %v5151_v58  ;;  %v5148_v6 = vsel %vm211_vm0, %v5108_v40, 0.0 }
0x1018   :  { %v5078_v4 = vmul.f32 0.03125, %v5060_v31  ;;  %5149 = vadd.xlane.f32.xlu0 %v5148_v6 }
0x1019   :  { %v9603_v57 = vsub.f32 %v9497_v51, %v5079_v15 }
0x101a   :  { %v9606_v38 = vsub.f32 %v9500_v27, %v5078_v4 }
0x101b   :  { %v5111_v24 = vmul.f32 %v9603_v57, %v9603_v57 }
0x101c   :  { %v5110_v61 = vmul.f32 %v9606_v38, %v9606_v38 }
0x101d   :  { %v5157_v62 = vsel %vm211_vm0, %v5111_v24, 0.0 }
0x101e   :  { %5158 = vadd.xlane.f32.xlu1 %v5157_v62  ;;  %v5154_v3 = vsel %vm211_vm0, %v5110_v61, 0.0 }
0x101f   :  { %5155 = vadd.xlane.f32.xlu0 %v5154_v3 }
0x1074   :  { %v5117_v30 = vpop.xlane.xlu1 %5116 }
0x1075   :  { %v5161_v2 = vmul.f32 0.03125, %v5117_v30  ;;  %v5114_v46 = vpop.xlane.xlu0 %5113 }
0x1076   :  { %v5160_v51 = vmul.f32 0.03125, %v5114_v46 }
0x1077   :  { %v5177_v17 = vadd.f32 1e-05, %v5161_v2 }
0x1078   :  { %v5176_v0 = vadd.f32 1e-05, %v5160_v51 }
0x1079   :  { %7169 = vrsqrt.f32 %v5177_v17 }
0x107a   :  { %7171 = vrsqrt.f32 %v5176_v0 }
0x107c   :  { %v5123_v27 = vpop.xlane.xlu1 %5122 }
0x107d   :  { %v5163_v23 = vmul.f32 0.03125, %v5123_v27  ;;  %v5120_v32 = vpop.xlane.xlu0 %5119 }
0x107e   :  { %v5162_v29 = vmul.f32 0.03125, %v5120_v32 }
0x107f   :  { %v5179_v63 = vadd.f32 1e-05, %v5163_v23 }
0x1080   :  { %v5178_v34 = vadd.f32 1e-05, %v5162_v29 }
0x1081   :  { %7173 = vrsqrt.f32 %v5179_v63 }
0x1082   :  { %7175 = vrsqrt.f32 %v5178_v34 }
0x1083   :  { %v7170_v53 = vpop.eup %7169 }
0x1084   :  { %v7172_v20 = vpop.eup %7171  ;;  %v5209_v44 = vmul.f32 %v7170_v53, %v9507_v42  ;;  %v5129_v36 = vpop.xlane.xlu1 %5128 }
0x1085   :  { %v5165_v10 = vmul.f32 0.03125, %v5129_v36  ;;  %v5126_v39 = vpop.xlane.xlu0 %5125  ;;  %v5208_v21 = vmul.f32 %v7172_v20, %v9510_v54 }
0x1086   :  { %v5232_v5 = vmul.f32 %v9617_v7, %v5209_v44  ;;  %v5164_v43 = vmul.f32 0.03125, %v5126_v39 }
0x1087   :  { %v5181_v12 = vadd.f32 1e-05, %v5165_v10  ;;  %v5231_v26 = vmul.f32 %v9617_v7, %v5208_v21 }
0x1088   :  { %v5180_v11 = vadd.f32 1e-05, %v5164_v43  ;;  %v5255_v60 = vadd.f32 %v9624_v56, %v5232_v5 }
0x1089   :  { %7177 = vrsqrt.f32 %v5181_v12  ;;  %v5254_v42 = vadd.f32 %v9624_v56, %v5231_v26 }
0x108a   :  { %7179 = vrsqrt.f32 %v5180_v11 }
0x108b   :  { %v7174_v55 = vpop.eup %7173  ;;  %6549 = vmatprep.mubr.msk.f32.mxu0 %vm211_vm0, %v5254_v42 }
0x108c   :  { %v7176_v54 = vpop.eup %7175  ;;  %6550 = vmatmul.mubr.msk.f32.vlgmr.msra.gmra.mrb[66].mxu0 %vm211_vm0, %v5255_v60  ;;  %v5135_v59 = vpop.xlane.xlu1 %5134  ;;  %v5211_v13 = vmul.f32 %v7174_v55, %v9519_v45 }
0x108d   :  { %v5167_v37 = vmul.f32 0.03125, %v5135_v59  ;;  %v5132_v25 = vpop.xlane.xlu0 %5131  ;;  %v5210_v1 = vmul.f32 %v7176_v54, %v9522_v49 }
0x108e   :  { %v5166_v18 = vmul.f32 0.03125, %v5132_v25  ;;  %v5234_v8 = vmul.f32 %v9617_v7, %v5211_v13 }
0x108f   :  { %v5183_v14 = vadd.f32 1e-05, %v5167_v37  ;;  %v5233_v50 = vmul.f32 %v9617_v7, %v5210_v1 }
0x1090   :  { %v5182_v40 = vadd.f32 1e-05, %v5166_v18  ;;  %v5257_v58 = vadd.f32 %v9624_v56, %v5234_v8 }
0x1091   :  { %7181 = vrsqrt.f32 %v5183_v14  ;;  %v5256_v33 = vadd.f32 %v9624_v56, %v5233_v50 }
0x1092   :  { %7183 = vrsqrt.f32 %v5182_v40 }
0x1093   :  { %v7178_v15 = vpop.eup %7177  ;;  %6552 = vmatprep.mubr.msk.f32.mxu0 %vm211_vm0, %v5256_v33 }
0x1094   :  { %v7180_v45 = vpop.eup %7179  ;;  %6553 = vmatmul.mubr.msk.f32.gmra.mrb[68].mxu0 %vm211_vm0, %v5257_v58  ;;  %v5141_v49 = vpop.xlane.xlu1 %5140  ;;  %v5213_v31 = vmul.f32 %v7178_v15, %v9531_v28 }
0x1095   :  { %v5169_v6 = vmul.f32 0.03125, %v5141_v49  ;;  %v5138_v4 = vpop.xlane.xlu0 %5137  ;;  %v5212_v24 = vmul.f32 %v7180_v45, %v9534_v19 }
0x1096   :  { %v5168_v61 = vmul.f32 0.03125, %v5138_v4  ;;  %v5236_v62 = vmul.f32 %v9617_v7, %v5213_v31 }
0x1097   :  { %v5185_v3 = vadd.f32 1e-05, %v5169_v6  ;;  %v5235_v30 = vmul.f32 %v9617_v7, %v5212_v24 }
0x1098   :  { %v5184_v2 = vadd.f32 1e-05, %v5168_v61  ;;  %v5259_v51 = vadd.f32 %v9624_v56, %v5236_v62 }
0x1099   :  { %7185 = vrsqrt.f32 %v5185_v3  ;;  %v5258_v46 = vadd.f32 %v9624_v56, %v5235_v30 }
0x109a   :  { %7187 = vrsqrt.f32 %v5184_v2 }
0x109b   :  { %v7182_v17 = vpop.eup %7181  ;;  %6555 = vmatprep.mubr.msk.f32.mxu0 %vm211_vm0, %v5258_v46 }
0x109c   :  { %v7184_v28 = vpop.eup %7183  ;;  %6556 = vmatmul.mubr.msk.f32.gmra.mrb[70].mxu0 %vm211_vm0, %v5259_v51  ;;  %v5147_v19 = vpop.xlane.xlu1 %5146  ;;  %v5215_v0 = vmul.f32 %v7182_v17, %v9543_v52 }
0x109d   :  { %v5171_v27 = vmul.f32 0.03125, %v5147_v19  ;;  %v5144_v23 = vpop.xlane.xlu0 %5143  ;;  %v5214_v32 = vmul.f32 %v7184_v28, %v9546_v16 }
0x109e   :  { %v5170_v29 = vmul.f32 0.03125, %v5144_v23  ;;  %v5238_v63 = vmul.f32 %v9617_v7, %v5215_v0 }
0x109f   :  { %v5187_v34 = vadd.f32 1e-05, %v5171_v27  ;;  %v5237_v53 = vmul.f32 %v9617_v7, %v5214_v32 }
0x10a0   :  { %v5186_v20 = vadd.f32 1e-05, %v5170_v29  ;;  %v5261_v36 = vadd.f32 %v9624_v56, %v5238_v63 }
0x10a1   :  { %7189 = vrsqrt.f32 %v5187_v34  ;;  %v5260_v44 = vadd.f32 %v9624_v56, %v5237_v53 }
0x10a2   :  { %7191 = vrsqrt.f32 %v5186_v20 }
0x10a3   :  { %v7186_v10 = vpop.eup %7185  ;;  %6558 = vmatprep.mubr.msk.f32.mxu0 %vm211_vm0, %v5260_v44 }
0x10a4   :  { %v7188_v52 = vpop.eup %7187  ;;  %6559 = vmatmul.mubr.msk.f32.gmra.mrb[72].mxu0 %vm211_vm0, %v5261_v36  ;;  %v5153_v16 = vpop.xlane.xlu1 %5152  ;;  %v5217_v39 = vmul.f32 %v7186_v10, %v9555_v22 }
0x10a5   :  { %v5173_v21 = vmul.f32 0.03125, %v5153_v16  ;;  %v5150_v5 = vpop.xlane.xlu0 %5149  ;;  %v5216_v43 = vmul.f32 %v7188_v52, %v9558_v9 }
0x10a6   :  { %v5172_v12 = vmul.f32 0.03125, %v5150_v5  ;;  %v5240_v26 = vmul.f32 %v9617_v7, %v5217_v39 }
0x10a7   :  { %v5189_v11 = vadd.f32 1e-05, %v5173_v21  ;;  %v5239_v42 = vmul.f32 %v9617_v7, %v5216_v43 }
0x10a8   :  { %v5188_v60 = vadd.f32 1e-05, %v5172_v12  ;;  %v5263_v54 = vadd.f32 %v9624_v56, %v5240_v26 }
0x10a9   :  { %7193 = vrsqrt.f32 %v5189_v11  ;;  %v5262_v55 = vadd.f32 %v9624_v56, %v5239_v42 }
0x10aa   :  { %7195 = vrsqrt.f32 %v5188_v60 }
0x10ab   :  { %v7190_v59 = vpop.eup %7189  ;;  %v5159_v13 = vpop.xlane.xlu1 %5158  ;;  %6561 = vmatprep.mubr.msk.f32.mxu0 %vm211_vm0, %v5262_v55 }
0x10ac   :  { %v7192_v22 = vpop.eup %7191  ;;  %v5175_v37 = vmul.f32 0.03125, %v5159_v13  ;;  %v5156_v9 = vpop.xlane.xlu0 %5155  ;;  %6562 = vmatmul.mubr.msk.f32.gmra.mrb[74].mxu0 %vm211_vm0, %v5263_v54  ;;  %v5219_v25 = vmul.f32 %v7190_v59, %v9579_v48 }
0x10ad   :  { %v5174_v1 = vmul.f32 0.03125, %v5156_v9  ;;  %v5218_v18 = vmul.f32 %v7192_v22, %v9582_v35 }
0x10ae   :  { %v5191_v8 = vadd.f32 1e-05, %v5175_v37  ;;  %v5242_v14 = vmul.f32 %v9617_v7, %v5219_v25 }
0x10af   :  { %v5190_v50 = vadd.f32 1e-05, %v5174_v1  ;;  %v5241_v40 = vmul.f32 %v9617_v7, %v5218_v18 }
0x10b0   :  { %7197 = vrsqrt.f32 %v5191_v8  ;;  %v5265_v58 = vadd.f32 %v9624_v56, %v5242_v14 }
0x10b1   :  { %7199 = vrsqrt.f32 %v5190_v50  ;;  %v5264_v33 = vadd.f32 %v9624_v56, %v5241_v40 }
0x10b3   :  { %v7194_v15 = vpop.eup %7193  ;;  %6564 = vmatprep.mubr.msk.f32.mxu0 %vm211_vm0, %v5264_v33 }
0x10b4   :  { %v7196_v45 = vpop.eup %7195  ;;  %6565 = vmatmul.mubr.msk.f32.gmra.mrb[76].mxu0 %vm211_vm0, %v5265_v58  ;;  %v5221_v48 = vmul.f32 %v7194_v15, %v9591_v47 }
0x10b5   :  { %v5220_v35 = vmul.f32 %v7196_v45, %v9594_v41 }
0x10b6   :  { %v5244_v49 = vmul.f32 %v9617_v7, %v5221_v48 }
0x10b7   :  { %v5243_v31 = vmul.f32 %v9617_v7, %v5220_v35 }
0x10b8   :  { %v5267_v24 = vadd.f32 %v9624_v56, %v5244_v49 }
0x10b9   :  { %v5266_v6 = vadd.f32 %v9624_v56, %v5243_v31 }
0x10ba   :  { %v7198_v4 = vpop.eup %7197 }
0x10bb   :  { %v7200_v61 = vpop.eup %7199  ;;  %6567 = vmatprep.mubr.msk.f32.mxu0 %vm211_vm0, %v5266_v6  ;;  %v5223_v62 = vmul.f32 %v7198_v4, %v9603_v57  ;;  %v31_v57 = vstv %s9836_s25 }
0x10bc   :  { %6568 = vmatmul.mubr.msk.f32.gmra.mrb[78].mxu0 %vm211_vm0, %v5267_v24  ;;  %v5222_v47 = vmul.f32 %v7200_v61, %v9606_v38  ;;  %32 = vst [vmem:[#allocation2] sm:$0x1] %v31_v57  ;;  %v9694_v38 = vld [vmem:[%s9837_s23] ss:$0 sm:$0xff] }
0x10bd   :  { %v5246_v41 = vmul.f32 %v9617_v7, %v5223_v62 }
0x10be   :  { %v5245_v3 = vmul.f32 %v9617_v7, %v5222_v47 }
0x10bf   :  { %v5269_v2 = vadd.f32 %v9624_v56, %v5246_v41 }
0x10c0   :  { %v5268_v30 = vadd.f32 %v9624_v56, %v5245_v3  ;;  %v9700_v56 = vld [vmem:[%s9838_s24] ss:$0 sm:$0xff] }
0x10c2   :  { %6570 = vmatprep.mubr.msk.f32.mxu0 %vm211_vm0, %v5268_v30 }
0x10c3   :  { %6571 = vmatmul.mubr.msk.f32.gmra.mrb[80].mxu0 %vm211_vm0, %v5269_v2 }
0x115f   :  { %v6551_v46 = vpop.f32.mrb[66].mxu0 }
0x1160   :  { %v5401_v7 = vadd.f32 %v6551_v46, %v9694_v38  ;;  %v5395_v51 = vpop.f32.mrb[67].mxu0 }
0x1161   :  { %v5396_v17 = vadd.f32 %v9694_v38, %v5395_v51 }
0x1162   :  { %v5475_v28 = vmax.f32 %v5401_v7, 0.0 }
0x1163   :  { %v5474_v19 = vmax.f32 %v5396_v17, 0.0 }
0x1164   :  { %v5498_v0 = vmul.f32 %v9700_v56, %v5475_v28 }
0x1165   :  { %v5497_v27 = vmul.f32 %v9700_v56, %v5474_v19 }
0x1166   :  { %v5516_v23 = vsel %vm211_vm0, %v5498_v0, 0.0 }
0x1167   :  { %5517 = vadd.xlane.f32.xlu1 %v5516_v23  ;;  %v6554_v32 = vpop.f32.mrb[68].mxu0  ;;  %v5513_v29 = vsel %vm211_vm0, %v5497_v27, 0.0 }
0x1168   :  { %v5411_v63 = vadd.f32 %v6554_v32, %v9694_v38  ;;  %5514 = vadd.xlane.f32.xlu0 %v5513_v29  ;;  %v5405_v34 = vpop.f32.mrb[69].mxu0 }
0x1169   :  { %v5406_v53 = vadd.f32 %v9694_v38, %v5405_v34 }
0x116a   :  { %v5477_v20 = vmax.f32 %v5411_v63, 0.0 }
0x116b   :  { %v5476_v44 = vmax.f32 %v5406_v53, 0.0 }
0x116c   :  { %v5500_v36 = vmul.f32 %v9700_v56, %v5477_v20 }
0x116d   :  { %v5499_v10 = vmul.f32 %v9700_v56, %v5476_v44 }
0x116e   :  { %v5522_v52 = vsel %vm211_vm0, %v5500_v36, 0.0 }
0x116f   :  { %5523 = vadd.xlane.f32.xlu1 %v5522_v52  ;;  %v6557_v16 = vpop.f32.mrb[70].mxu0  ;;  %v5519_v39 = vsel %vm211_vm0, %v5499_v10, 0.0  ;;  %v5860_v52 = vld [vmem:[#allocation2] ss:$0 sm:$0xff] }
0x1170   :  { %v5421_v21 = vadd.f32 %v6557_v16, %v9694_v38  ;;  %5520 = vadd.xlane.f32.xlu0 %v5519_v39  ;;  %v5415_v5 = vpop.f32.mrb[71].mxu0 }
0x1171   :  { %v5416_v43 = vadd.f32 %v9694_v38, %v5415_v5 }
0x1172   :  { %v5479_v12 = vmax.f32 %v5421_v21, 0.0 }
0x1173   :  { %v5478_v26 = vmax.f32 %v5416_v43, 0.0 }
0x1174   :  { %v5502_v11 = vmul.f32 %v9700_v56, %v5479_v12 }
0x1175   :  { %v5501_v42 = vmul.f32 %v9700_v56, %v5478_v26 }
0x1176   :  { %v5528_v60 = vsel %vm211_vm0, %v5502_v11, 0.0 }
0x1177   :  { %5529 = vadd.xlane.f32.xlu1 %v5528_v60  ;;  %v6560_v55 = vpop.f32.mrb[72].mxu0  ;;  %v5525_v54 = vsel %vm211_vm0, %v5501_v42, 0.0 }
0x1178   :  { %v5431_v59 = vadd.f32 %v6560_v55, %v9694_v38  ;;  %5526 = vadd.xlane.f32.xlu0 %v5525_v54  ;;  %v5425_v13 = vpop.f32.mrb[73].mxu0 }
0x1179   :  { %v5426_v22 = vadd.f32 %v9694_v38, %v5425_v13 }
0x117a   :  { %v5481_v37 = vmax.f32 %v5431_v59, 0.0 }
0x117b   :  { %v5480_v9 = vmax.f32 %v5426_v22, 0.0 }
0x117c   :  { %v5504_v25 = vmul.f32 %v9700_v56, %v5481_v37 }
0x117d   :  { %v5503_v1 = vmul.f32 %v9700_v56, %v5480_v9 }
0x117e   :  { %v5534_v18 = vsel %vm211_vm0, %v5504_v25, 0.0 }
0x117f   :  { %5535 = vadd.xlane.f32.xlu1 %v5534_v18  ;;  %v6563_v8 = vpop.f32.mrb[74].mxu0  ;;  %v5531_v14 = vsel %vm211_vm0, %v5503_v1, 0.0 }
0x1180   :  { %v5441_v50 = vadd.f32 %v6563_v8, %v9694_v38  ;;  %5532 = vadd.xlane.f32.xlu0 %v5531_v14  ;;  %v5435_v40 = vpop.f32.mrb[75].mxu0 }
0x1181   :  { %v5436_v33 = vadd.f32 %v9694_v38, %v5435_v40 }
0x1182   :  { %v5483_v58 = vmax.f32 %v5441_v50, 0.0 }
0x1183   :  { %v5482_v15 = vmax.f32 %v5436_v33, 0.0 }
0x1184   :  { %v5506_v45 = vmul.f32 %v9700_v56, %v5483_v58 }
0x1185   :  { %v5505_v48 = vmul.f32 %v9700_v56, %v5482_v15 }
0x1186   :  { %v5540_v35 = vsel %vm211_vm0, %v5506_v45, 0.0 }
0x1187   :  { %5541 = vadd.xlane.f32.xlu1 %v5540_v35  ;;  %v6566_v49 = vpop.f32.mrb[76].mxu0  ;;  %v5537_v31 = vsel %vm211_vm0, %v5505_v48, 0.0 }
0x1188   :  { %v5451_v6 = vadd.f32 %v6566_v49, %v9694_v38  ;;  %5538 = vadd.xlane.f32.xlu0 %v5537_v31  ;;  %v5445_v4 = vpop.f32.mrb[77].mxu0 }
0x1189   :  { %v5446_v24 = vadd.f32 %v9694_v38, %v5445_v4 }
0x118a   :  { %v5485_v61 = vmax.f32 %v5451_v6, 0.0 }
0x118b   :  { %v5484_v62 = vmax.f32 %v5446_v24, 0.0 }
0x118c   :  { %v5508_v47 = vmul.f32 %v9700_v56, %v5485_v61 }
0x118d   :  { %v5507_v41 = vmul.f32 %v9700_v56, %v5484_v62 }
0x118e   :  { %v5546_v3 = vsel %vm211_vm0, %v5508_v47, 0.0 }
0x118f   :  { %5547 = vadd.xlane.f32.xlu1 %v5546_v3  ;;  %v6569_v30 = vpop.f32.mrb[78].mxu0  ;;  %v5543_v2 = vsel %vm211_vm0, %v5507_v41, 0.0 }
0x1190   :  { %v5461_v57 = vadd.f32 %v6569_v30, %v9694_v38  ;;  %5544 = vadd.xlane.f32.xlu0 %v5543_v2  ;;  %v5455_v46 = vpop.f32.mrb[79].mxu0 }
0x1191   :  { %v5456_v7 = vadd.f32 %v9694_v38, %v5455_v46 }
0x1192   :  { %v5487_v51 = vmax.f32 %v5461_v57, 0.0 }
0x1193   :  { %v5486_v17 = vmax.f32 %v5456_v7, 0.0 }
0x1194   :  { %v5510_v28 = vmul.f32 %v9700_v56, %v5487_v51 }
0x1195   :  { %v5509_v19 = vmul.f32 %v9700_v56, %v5486_v17 }
0x1196   :  { %v6572_v0 = vpop.f32.mrb[80].mxu0  ;;  %v5552_v27 = vsel %vm211_vm0, %v5510_v28, 0.0 }
0x1197   :  { %v5471_v23 = vadd.f32 %v6572_v0, %v9694_v38  ;;  %v5465_v32 = vpop.f32.mrb[81].mxu0  ;;  %5553 = vadd.xlane.f32.xlu1 %v5552_v27  ;;  %v5549_v29 = vsel %vm211_vm0, %v5509_v19, 0.0 }
0x1198   :  { %v5466_v63 = vadd.f32 %v9694_v38, %v5465_v32  ;;  %5550 = vadd.xlane.f32.xlu0 %v5549_v29 }
0x1199   :  { %v5489_v34 = vmax.f32 %v5471_v23, 0.0 }
0x119a   :  { %v5488_v53 = vmax.f32 %v5466_v63, 0.0 }
0x119b   :  { %v5512_v20 = vmul.f32 %v9700_v56, %v5489_v34 }
0x119c   :  { %v5511_v44 = vmul.f32 %v9700_v56, %v5488_v53 }
0x119d   :  { %v5558_v36 = vsel %vm211_vm0, %v5512_v20, 0.0 }
0x119e   :  { %5559 = vadd.xlane.f32.xlu1 %v5558_v36  ;;  %v5555_v10 = vsel %vm211_vm0, %v5511_v44, 0.0 }
0x119f   :  { %5556 = vadd.xlane.f32.xlu0 %v5555_v10 }
0x11f4   :  { %v5518_v16 = vpop.xlane.xlu1 %5517 }
0x11f5   :  { %v5569_v39 = vadd.f32 %v5860_v52, %v5518_v16  ;;  %v5515_v21 = vpop.xlane.xlu0 %5514 }
0x11f6   :  { %v5568_v5 = vadd.f32 %v5860_v52, %v5515_v21 }
0x11f7   :  { %5586 = vst.msk [vmem:[%s9839_s26 + $0x8] sm:$0xff] %vm5584_vm4, %v5569_v39 }
0x11f8   :  { %5585 = vst.msk [vmem:[%s9839_s26] sm:$0xff] %vm5584_vm4, %v5568_v5 }
0x11fc   :  { %v5524_v38 = vpop.xlane.xlu1 %5523 }
0x11fd   :  { %v5571_v56 = vadd.f32 %v5860_v52, %v5524_v38  ;;  %v5521_v43 = vpop.xlane.xlu0 %5520 }
0x11fe   :  { %v5570_v12 = vadd.f32 %v5860_v52, %v5521_v43 }
0x11ff   :  { %5588 = vst.msk [vmem:[%s9839_s26 + $0x18] sm:$0xff] %vm5584_vm4, %v5571_v56 }
0x1200   :  { %5587 = vst.msk [vmem:[%s9839_s26 + $0x10] sm:$0xff] %vm5584_vm4, %v5570_v12 }
0x1204   :  { %v5530_v26 = vpop.xlane.xlu1 %5529 }
0x1205   :  { %v5573_v11 = vadd.f32 %v5860_v52, %v5530_v26  ;;  %v5527_v42 = vpop.xlane.xlu0 %5526 }
0x1206   :  { %v5572_v60 = vadd.f32 %v5860_v52, %v5527_v42 }
0x1207   :  { %5590 = vst.msk [vmem:[%s9839_s26 + $0x28] sm:$0xff] %vm5584_vm4, %v5573_v11 }
0x1208   :  { %5589 = vst.msk [vmem:[%s9839_s26 + $0x20] sm:$0xff] %vm5584_vm4, %v5572_v60 }
0x120c   :  { %v5536_v55 = vpop.xlane.xlu1 %5535 }
0x120d   :  { %v5575_v54 = vadd.f32 %v5860_v52, %v5536_v55  ;;  %v5533_v59 = vpop.xlane.xlu0 %5532 }
0x120e   :  { %v5574_v13 = vadd.f32 %v5860_v52, %v5533_v59 }
0x120f   :  { %5592 = vst.msk [vmem:[%s9839_s26 + $0x38] sm:$0xff] %vm5584_vm4, %v5575_v54 }
0x1210   :  { %5591 = vst.msk [vmem:[%s9839_s26 + $0x30] sm:$0xff] %vm5584_vm4, %v5574_v13 }
0x1214   :  { %v5542_v22 = vpop.xlane.xlu1 %5541 }
0x1215   :  { %v5577_v37 = vadd.f32 %v5860_v52, %v5542_v22  ;;  %v5539_v9 = vpop.xlane.xlu0 %5538 }
0x1216   :  { %v5576_v25 = vadd.f32 %v5860_v52, %v5539_v9 }
0x1217   :  { %5594 = vst.msk [vmem:[%s9839_s26 + $0x48] sm:$0xff] %vm5584_vm4, %v5577_v37 }
0x1218   :  { %5593 = vst.msk [vmem:[%s9839_s26 + $0x40] sm:$0xff] %vm5584_vm4, %v5576_v25 }
0x121c   :  { %v5548_v1 = vpop.xlane.xlu1 %5547 }
0x121d   :  { %v5579_v18 = vadd.f32 %v5860_v52, %v5548_v1  ;;  %v5545_v8 = vpop.xlane.xlu0 %5544 }
0x121e   :  { %v5578_v14 = vadd.f32 %v5860_v52, %v5545_v8 }
0x121f   :  { %5596 = vst.msk [vmem:[%s9839_s26 + $0x58] sm:$0xff] %vm5584_vm4, %v5579_v18 }
0x1220   :  { %5595 = vst.msk [vmem:[%s9839_s26 + $0x50] sm:$0xff] %vm5584_vm4, %v5578_v14 }
0x1224   :  { %v5554_v50 = vpop.xlane.xlu1 %5553 }
0x1225   :  { %v5581_v40 = vadd.f32 %v5860_v52, %v5554_v50  ;;  %v5551_v33 = vpop.xlane.xlu0 %5550 }
0x1226   :  { %v5580_v58 = vadd.f32 %v5860_v52, %v5551_v33 }
0x1227   :  { %5598 = vst.msk [vmem:[%s9839_s26 + $0x68] sm:$0xff] %vm5584_vm4, %v5581_v40 }
0x1228   :  { %5597 = vst.msk [vmem:[%s9839_s26 + $0x60] sm:$0xff] %vm5584_vm4, %v5580_v58 }
0x122b   :  { %v5560_v15 = vpop.xlane.xlu1 %5559 }
0x122c   :  { %v5583_v45 = vadd.f32 %v5860_v52, %v5560_v15  ;;  %v5557_v48 = vpop.xlane.xlu0 %5556 }
0x122d   :  { %v5582_v35 = vadd.f32 %v5860_v52, %v5557_v48 }
0x122e   :  { %5600 = vst.msk [vmem:[%s9839_s26 + $0x78] sm:$0xff] %vm5584_vm4, %v5583_v45 }
0x122f   :  { %5599 = vst.msk [vmem:[%s9839_s26 + $0x70] sm:$0xff] %vm5584_vm4, %v5582_v35 }

</bundles_post_ra>
